<compile_context>
chip_gen: v5e
topology: v5e:2x2
jax: 0.10.0
libtpu: 0.0.40
codegen_flags: <defaults>
</compile_context>

<pallas_src>
import functools

import jax
import jax.numpy as jnp
from jax.experimental import pallas as pl
from jax.experimental.pallas import tpu as pltpu


def _round_up(x, m):
    return (x + m - 1) // m * m


# -----------------------------------------------------------------------------
# Kernel: an entire token sequence is processed inside ONE pallas_call.
# -----------------------------------------------------------------------------
def rnn_seq_kernel(ids_ref, embed_ref, h0_ref, c0_ref,
                   w_ref, b_ref, fc_w_ref, fc_b_ref,
                   out_ref, h_ref, c_ref,
                   xh_ref,
                   *, num_layers, hidden_size, batch, seq_len):
    H = hidden_size

    # Working state lives in the (aliased) output blocks for the whole sequence.
    h_ref[...] = h0_ref[...]
    c_ref[...] = c0_ref[...]

    def step(t, carry):
        # ---- embedding gather (ids in SMEM, table in VMEM) into the x slot of
        #      the persistent fused-LHS scratch:  xh = [x | h_prev]  (B, 2H) ---
        for bi in range(batch):
            tok = ids_ref[t * batch + bi]
            xh_ref[pl.ds(bi, 1), 0:H] = embed_ref[pl.ds(tok, 1), :]

        h_last = None
        for l in range(num_layers):                      # static unroll, L tiny
            xh_ref[:, H:2 * H] = h_ref[l]                # h slot
            # gates = [x, h] @ [W_ih^T ; W_hh^T] + (b_ih + b_hh): one MXU push.
            gates = (jnp.dot(xh_ref[...], w_ref[l],
                             preferred_element_type=jnp.float32)
                     + b_ref[l])                         # (B, 4H) f32
            # Full-vreg transcendentals on the EUP slot, then cheap lane slices.
            sig = jax.nn.sigmoid(gates)
            tnh = jnp.tanh(gates)
            i_g = sig[:, 0 * H:1 * H]                    # PyTorch order: i,f,g,o
            f_g = sig[:, 1 * H:2 * H]
            g_g = tnh[:, 2 * H:3 * H]
            o_g = sig[:, 3 * H:4 * H]
            c_new = f_g * c_ref[l] + i_g * g_g
            h_new = o_g * jnp.tanh(c_new)
            h_ref[l] = h_new                             # in-place (aliased)
            c_ref[l] = c_new
            if l + 1 < num_layers:
                xh_ref[:, 0:H] = h_new                   # x slot for next layer
            h_last = h_new

        # Final Linear, lane-padded to O_pad=128 -> unmasked full-vreg store.
        out_ref[t] = (jnp.dot(h_last, fc_w_ref[...],
                              preferred_element_type=jnp.float32)
                      + fc_b_ref[...])
        return carry

    # Short fixed trip count -> unrolled for LLO scheduler visibility.
    jax.lax.fori_loop(0, seq_len, step, 0, unroll=True)


# -----------------------------------------------------------------------------
# Parameters (PyTorch-native layout) and one-time re-layout.
# -----------------------------------------------------------------------------
def init_params(key, input_size, hidden_size, num_layers, output_size):
    ks = jax.random.split(key, 8)
    H, L, O = hidden_size, num_layers, output_size
    scale = 0.1
    return {
        "embed": scale * jax.random.normal(ks[0], (input_size, H), jnp.float32),
        "w_ih": scale * jax.random.normal(ks[1], (L, 4 * H, H), jnp.float32),
        "w_hh": scale * jax.random.normal(ks[2], (L, 4 * H, H), jnp.float32),
        "b_ih": scale * jax.random.normal(ks[3], (L, 4 * H), jnp.float32),
        "b_hh": scale * jax.random.normal(ks[4], (L, 4 * H), jnp.float32),
        "fc_w": scale * jax.random.normal(ks[5], (O, H), jnp.float32),
        "fc_b": scale * jax.random.normal(ks[6], (O,), jnp.float32),
    }


def prepare_params(params):
    """One-time weight re-layout; run ONCE, outside the hot path. All fp32."""
    L, fourH, H = params["w_ih"].shape
    O = params["fc_w"].shape[0]
    O_pad = _round_up(max(O, 128), 128)                  # lane-dense FC output

    w_ih_t = jnp.transpose(params["w_ih"], (0, 2, 1))    # (L, H, 4H)
    w_hh_t = jnp.transpose(params["w_hh"], (0, 2, 1))    # (L, H, 4H)
    w = jnp.concatenate([w_ih_t, w_hh_t], axis=1)        # (L, 2H, 4H)
    b = (params["b_ih"] + params["b_hh"])[:, None, :]    # (L, 1, 4H)

    fc_w = jnp.zeros((H, O_pad), jnp.float32).at[:, :O].set(params["fc_w"].T)
    fc_b = jnp.zeros((1, O_pad), jnp.float32).at[:, :O].set(params["fc_b"][None, :])

    return {
        "embed": params["embed"].astype(jnp.float32),
        "w": w.astype(jnp.float32),
        "b": b.astype(jnp.float32),
        "fc_w": fc_w,
        "fc_b": fc_b,
    }


# -----------------------------------------------------------------------------
# Wrappers.
# -----------------------------------------------------------------------------
@functools.partial(jax.jit, static_argnums=(4,), donate_argnums=(2, 3))
def rnn_forward_seq(prep, token_ids, hidden, cell, output_size):
    """token_ids: (T, B) int32; hidden/cell: (L, B, H) f32 (donated, updated
    in place).  Returns ((T, B, output_size), (hidden, cell))."""
    T, B = token_ids.shape
    L, _, H = hidden.shape
    O_pad = prep["fc_w"].shape[1]

    smem = pl.BlockSpec(memory_space=pltpu.MemorySpace.SMEM)
    vmem = pl.BlockSpec(memory_space=pltpu.MemorySpace.VMEM)

    out_pad, h_new, c_new = pl.pallas_call(
        functools.partial(rnn_seq_kernel, num_layers=L, hidden_size=H,
                          batch=B, seq_len=T),
        out_shape=(
            jax.ShapeDtypeStruct((T, B, O_pad), jnp.float32),
            jax.ShapeDtypeStruct((L, B, H), jnp.float32),
            jax.ShapeDtypeStruct((L, B, H), jnp.float32),
        ),
        in_specs=[smem, vmem, vmem, vmem, vmem, vmem, vmem, vmem],
        out_specs=(vmem, vmem, vmem),
        scratch_shapes=[pltpu.VMEM((B, 2 * H), jnp.float32)],  # fused [x|h] LHS
        # hidden -> h_new, cell -> c_new written in place (no fresh HBM buffers).
        input_output_aliases={2: 1, 3: 2},
    )(token_ids.reshape(-1), prep["embed"], hidden, cell,
      prep["w"], prep["b"], prep["fc_w"], prep["fc_b"])

    # Slice the lane-padded FC output back, once per sequence (not per step).
    return out_pad[..., :output_size], (h_new, c_new)


def rnn_forward(prep, token_ids, hidden, cell, output_size):
    """Exact equivalent of the PyTorch module's forward(): one step, (B,) ids."""
    out, (h, c) = rnn_forward_seq(prep, token_ids[None, :], hidden, cell,
                                  output_size)
    return out[0], (h, c)


# -----------------------------------------------------------------------------
# Pure-JAX fp32 reference (PyTorch-layout weights) for correctness checking.
# -----------------------------------------------------------------------------
def ref_forward(params, tokens, h0, c0):
    H = h0.shape[-1]
    h, c = h0, c0
    outs = []
    for t in range(tokens.shape[0]):
        x = params["embed"][tokens[t]]
        new_h, new_c = [], []
        for l in range(h.shape[0]):
            gates = (x @ params["w_ih"][l].T + h[l] @ params["w_hh"][l].T
                     + params["b_ih"][l] + params["b_hh"][l])
            i = jax.nn.sigmoid(gates[:, 0 * H:1 * H])
            f = jax.nn.sigmoid(gates[:, 1 * H:2 * H])
            g = jnp.tanh(gates[:, 2 * H:3 * H])
            o = jax.nn.sigmoid(gates[:, 3 * H:4 * H])
            cc = f * c[l] + i * g
            hh = o * jnp.tanh(cc)
            new_h.append(hh)
            new_c.append(cc)
            x = hh
        h = jnp.stack(new_h)
        c = jnp.stack(new_c)
        outs.append(x @ params["fc_w"].T + params["fc_b"])
    return jnp.stack(outs), (h, c)


if __name__ == "__main__":
    input_size = 50      # vocab
    hidden_size = 32
    num_layers = 2
    output_size = 50
    batch_size = 2
    seq_len = 8          # whole sequence runs in one pallas_call

    key = jax.random.PRNGKey(0)
    pkey, xkey = jax.random.split(key)
    params = init_params(pkey, input_size, hidden_size, num_layers, output_size)
    prep = prepare_params(params)          # one-time re-layout, cached

    tokens = jax.random.randint(xkey, (seq_len, batch_size), 0, input_size,
                                dtype=jnp.int32)

    with jax.default_matmul_precision("highest"):
        ref_out, (ref_h, ref_c) = ref_forward(
            params, tokens,
            jnp.zeros((num_layers, batch_size, hidden_size), jnp.float32),
            jnp.zeros((num_layers, batch_size, hidden_size), jnp.float32))

    hidden = jnp.zeros((num_layers, batch_size, hidden_size), jnp.float32)
    cell = jnp.zeros((num_layers, batch_size, hidden_size), jnp.float32)
    out, (h_new, c_new) = rnn_forward_seq(prep, tokens, hidden, cell, output_size)
    jax.block_until_ready((out, h_new, c_new))

    assert out.shape == (seq_len, batch_size, output_size)
    assert h_new.shape == (num_layers, batch_size, hidden_size)
    assert c_new.shape == (num_layers, batch_size, hidden_size)
    assert jnp.allclose(out, ref_out, atol=2e-3, rtol=2e-3)
    assert jnp.allclose(h_new, ref_h, atol=2e-3, rtol=2e-3)
    assert jnp.allclose(c_new, ref_c, atol=2e-3, rtol=2e-3)

    # Single-step path == the PyTorch module's forward(x, hidden, cell).
    out1, (h1, c1) = rnn_forward(
        prep, tokens[0],
        jnp.zeros((num_layers, batch_size, hidden_size), jnp.float32),
        jnp.zeros((num_layers, batch_size, hidden_size), jnp.float32),
        output_size)
    jax.block_until_ready((out1, h1, c1))
    assert out1.shape == (batch_size, output_size)
    assert jnp.allclose(out1, ref_out[0], atol=2e-3, rtol=2e-3)

    print("KERNEL_OK")
</pallas_src>

<mosaic_0001>
module attributes {stable_mosaic.version = 11 : i64} {
  func.func @rnn_seq_kernel(%arg0: memref<16xi32, #tpu.memory_space<smem>>, %arg1: memref<50x32xf32, #tpu.memory_space<vmem>>, %arg2: memref<2x2x32xf32, #tpu.memory_space<vmem>>, %arg3: memref<2x2x32xf32, #tpu.memory_space<vmem>>, %arg4: memref<2x64x128xf32, #tpu.memory_space<vmem>>, %arg5: memref<2x1x128xf32, #tpu.memory_space<vmem>>, %arg6: memref<32x128xf32, #tpu.memory_space<vmem>>, %arg7: memref<1x128xf32, #tpu.memory_space<vmem>>, %arg8: memref<8x2x128xf32, #tpu.memory_space<vmem>>, %arg9: memref<2x2x32xf32, #tpu.memory_space<vmem>>, %arg10: memref<2x2x32xf32, #tpu.memory_space<vmem>>, %arg11: memref<2x64xf32, #tpu.memory_space<vmem>>) attributes {dimension_semantics = [], scalar_prefetch = 0 : i64, scratch_operands = 1 : i64, tpu.core_type = #tpu.core_type<tc>} {
    %c0 = arith.constant 0 : index
    %c0_0 = arith.constant 0 : index
    %c0_1 = arith.constant 0 : index
    %0 = vector.load %arg2[%c0, %c0_0, %c0_1] : memref<2x2x32xf32, #tpu.memory_space<vmem>>, vector<2x2x32xf32>
    %c0_2 = arith.constant 0 : index
    %c0_3 = arith.constant 0 : index
    %c0_4 = arith.constant 0 : index
    %1 = vector.load %arg9[%c0_2, %c0_3, %c0_4] : memref<2x2x32xf32, #tpu.memory_space<vmem>>, vector<2x2x32xf32>
    tpu.vector_store %arg9[%c0_2, %c0_3, %c0_4], %0 {strides = array<i32>} : memref<2x2x32xf32, #tpu.memory_space<vmem>>, vector<2x2x32xf32>,
    %c0_5 = arith.constant 0 : index
    %c0_6 = arith.constant 0 : index
    %c0_7 = arith.constant 0 : index
    %2 = vector.load %arg3[%c0_5, %c0_6, %c0_7] : memref<2x2x32xf32, #tpu.memory_space<vmem>>, vector<2x2x32xf32>
    %c0_8 = arith.constant 0 : index
    %c0_9 = arith.constant 0 : index
    %c0_10 = arith.constant 0 : index
    %3 = vector.load %arg10[%c0_8, %c0_9, %c0_10] : memref<2x2x32xf32, #tpu.memory_space<vmem>>, vector<2x2x32xf32>
    tpu.vector_store %arg10[%c0_8, %c0_9, %c0_10], %2 {strides = array<i32>} : memref<2x2x32xf32, #tpu.memory_space<vmem>>, vector<2x2x32xf32>,
    %c0_i32 = arith.constant 0 : i32
    %c2_i32 = arith.constant 2 : i32
    %4 = arith.muli %c0_i32, %c2_i32 : i32
    %c0_i32_11 = arith.constant 0 : i32
    %5 = arith.addi %4, %c0_i32_11 : i32
    %6 = arith.index_cast %5 : i32 to index
    %7 = memref.load %arg0[%6] : memref<16xi32, #tpu.memory_space<smem>>
    %8 = arith.index_cast %7 : i32 to index
    %c0_12 = arith.constant 0 : index
    %9 = vector.load %arg1[%8, %c0_12] : memref<50x32xf32, #tpu.memory_space<vmem>>, vector<1x32xf32>
    %c0_13 = arith.constant 0 : index
    %c0_14 = arith.constant 0 : index
    %10 = vector.load %arg11[%c0_13, %c0_14] : memref<2x64xf32, #tpu.memory_space<vmem>>, vector<1x32xf32>
    tpu.vector_store %arg11[%c0_13, %c0_14], %9 {strides = array<i32>} : memref<2x64xf32, #tpu.memory_space<vmem>>, vector<1x32xf32>,
    %c2_i32_15 = arith.constant 2 : i32
    %11 = arith.muli %c0_i32, %c2_i32_15 : i32
    %c1_i32 = arith.constant 1 : i32
    %12 = arith.addi %11, %c1_i32 : i32
    %13 = arith.index_cast %12 : i32 to index
    %14 = memref.load %arg0[%13] : memref<16xi32, #tpu.memory_space<smem>>
    %15 = arith.index_cast %14 : i32 to index
    %c0_16 = arith.constant 0 : index
    %16 = vector.load %arg1[%15, %c0_16] : memref<50x32xf32, #tpu.memory_space<vmem>>, vector<1x32xf32>
    %c1 = arith.constant 1 : index
    %c0_17 = arith.constant 0 : index
    %17 = vector.load %arg11[%c1, %c0_17] : memref<2x64xf32, #tpu.memory_space<vmem>>, vector<1x32xf32>
    tpu.vector_store %arg11[%c1, %c0_17], %16 {strides = array<i32>} : memref<2x64xf32, #tpu.memory_space<vmem>>, vector<1x32xf32>,
    %c0_18 = arith.constant 0 : index
    %c0_19 = arith.constant 0 : index
    %c0_20 = arith.constant 0 : index
    %18 = vector.load %arg9[%c0_18, %c0_19, %c0_20] : memref<2x2x32xf32, #tpu.memory_space<vmem>>, vector<1x2x32xf32>
    %19 = vector.shape_cast %18 : vector<1x2x32xf32> to vector<2x32xf32>
    %c0_21 = arith.constant 0 : index
    %c32 = arith.constant 32 : index
    %20 = vector.load %arg11[%c0_21, %c32] : memref<2x64xf32, #tpu.memory_space<vmem>>, vector<2x32xf32>
    tpu.vector_store %arg11[%c0_21, %c32], %19 {strides = array<i32>} : memref<2x64xf32, #tpu.memory_space<vmem>>, vector<2x32xf32>,
    %c0_22 = arith.constant 0 : index
    %c0_23 = arith.constant 0 : index
    %21 = vector.load %arg11[%c0_22, %c0_23] : memref<2x64xf32, #tpu.memory_space<vmem>>, vector<2x64xf32>
    %c0_24 = arith.constant 0 : index
    %c0_25 = arith.constant 0 : index
    %c0_26 = arith.constant 0 : index
    %22 = vector.load %arg4[%c0_24, %c0_25, %c0_26] : memref<2x64x128xf32, #tpu.memory_space<vmem>>, vector<1x64x128xf32>
    %23 = vector.shape_cast %22 : vector<1x64x128xf32> to vector<64x128xf32>
    %cst = arith.constant dense<0.000000e+00> : vector<2x128xf32>
    %24 = tpu.matmul %21, %23, %cst {dimension_numbers = #tpu.dot_dimension_numbers<[1], [0], [0], [1], [0, 0, 1, 1], [], []>} : vector<2x64xf32>, vector<64x128xf32>, vector<2x128xf32> -> vector<2x128xf32>
    %c0_27 = arith.constant 0 : index
    %c0_28 = arith.constant 0 : index
    %c0_29 = arith.constant 0 : index
    %25 = vector.load %arg5[%c0_27, %c0_28, %c0_29] : memref<2x1x128xf32, #tpu.memory_space<vmem>>, vector<1x1x128xf32>
    %26 = vector.shape_cast %25 : vector<1x1x128xf32> to vector<1x128xf32>
    %27 = vector.broadcast %26 : vector<1x128xf32> to vector<2x128xf32>
    %28 = arith.addf %24, %27 : vector<2x128xf32>
    %29 = arith.negf %28 : vector<2x128xf32>
    %30 = math.exp %29 : vector<2x128xf32>
    %cst_30 = arith.constant 1.000000e+00 : f32
    %31 = vector.broadcast %cst_30 : f32 to vector<2x128xf32>
    %32 = arith.addf %31, %30 : vector<2x128xf32>
    %33 = arith.divf %31, %32 : vector<2x128xf32>
    %34 = math.tanh %28 : vector<2x128xf32>
    %35 = vector.extract_strided_slice %33 {offsets = [0, 0], sizes = [2, 32], strides = [1, 1]} : vector<2x128xf32> to vector<2x32xf32>
    %36 = vector.extract_strided_slice %33 {offsets = [0, 32], sizes = [2, 32], strides = [1, 1]} : vector<2x128xf32> to vector<2x32xf32>
    %37 = vector.extract_strided_slice %34 {offsets = [0, 64], sizes = [2, 32], strides = [1, 1]} : vector<2x128xf32> to vector<2x32xf32>
    %38 = vector.extract_strided_slice %33 {offsets = [0, 96], sizes = [2, 32], strides = [1, 1]} : vector<2x128xf32> to vector<2x32xf32>
    %c0_31 = arith.constant 0 : index
    %c0_32 = arith.constant 0 : index
    %c0_33 = arith.constant 0 : index
    %39 = vector.load %arg10[%c0_31, %c0_32, %c0_33] : memref<2x2x32xf32, #tpu.memory_space<vmem>>, vector<1x2x32xf32>
    %40 = vector.shape_cast %39 : vector<1x2x32xf32> to vector<2x32xf32>
    %41 = arith.mulf %36, %40 : vector<2x32xf32>
    %42 = arith.mulf %35, %37 : vector<2x32xf32>
    %43 = arith.addf %41, %42 : vector<2x32xf32>
    %44 = math.tanh %43 : vector<2x32xf32>
    %45 = arith.mulf %38, %44 : vector<2x32xf32>
    %c0_34 = arith.constant 0 : index
    %c0_35 = arith.constant 0 : index
    %c0_36 = arith.constant 0 : index
    %46 = vector.load %arg9[%c0_34, %c0_35, %c0_36] : memref<2x2x32xf32, #tpu.memory_space<vmem>>, vector<1x2x32xf32>
    %47 = vector.shape_cast %46 : vector<1x2x32xf32> to vector<2x32xf32>
    %48 = vector.shape_cast %45 : vector<2x32xf32> to vector<1x2x32xf32>
    tpu.vector_store %arg9[%c0_34, %c0_35, %c0_36], %48 {strides = array<i32>} : memref<2x2x32xf32, #tpu.memory_space<vmem>>, vector<1x2x32xf32>,
    %c0_37 = arith.constant 0 : index
    %c0_38 = arith.constant 0 : index
    %c0_39 = arith.constant 0 : index
    %49 = vector.load %arg10[%c0_37, %c0_38, %c0_39] : memref<2x2x32xf32, #tpu.memory_space<vmem>>, vector<1x2x32xf32>
    %50 = vector.shape_cast %49 : vector<1x2x32xf32> to vector<2x32xf32>
    %51 = vector.shape_cast %43 : vector<2x32xf32> to vector<1x2x32xf32>
    tpu.vector_store %arg10[%c0_37, %c0_38, %c0_39], %51 {strides = array<i32>} : memref<2x2x32xf32, #tpu.memory_space<vmem>>, vector<1x2x32xf32>,
    %c0_40 = arith.constant 0 : index
    %c0_41 = arith.constant 0 : index
    %52 = vector.load %arg11[%c0_40, %c0_41] : memref<2x64xf32, #tpu.memory_space<vmem>>, vector<2x32xf32>
    tpu.vector_store %arg11[%c0_40, %c0_41], %45 {strides = array<i32>} : memref<2x64xf32, #tpu.memory_space<vmem>>, vector<2x32xf32>,
    %c1_42 = arith.constant 1 : index
    %c0_43 = arith.constant 0 : index
    %c0_44 = arith.constant 0 : index
    %53 = vector.load %arg9[%c1_42, %c0_43, %c0_44] : memref<2x2x32xf32, #tpu.memory_space<vmem>>, vector<1x2x32xf32>
    %54 = vector.shape_cast %53 : vector<1x2x32xf32> to vector<2x32xf32>
    %c0_45 = arith.constant 0 : index
    %c32_46 = arith.constant 32 : index
    %55 = vector.load %arg11[%c0_45, %c32_46] : memref<2x64xf32, #tpu.memory_space<vmem>>, vector<2x32xf32>
    tpu.vector_store %arg11[%c0_45, %c32_46], %54 {strides = array<i32>} : memref<2x64xf32, #tpu.memory_space<vmem>>, vector<2x32xf32>,
    %c0_47 = arith.constant 0 : index
    %c0_48 = arith.constant 0 : index
    %56 = vector.load %arg11[%c0_47, %c0_48] : memref<2x64xf32, #tpu.memory_space<vmem>>, vector<2x64xf32>
    %c1_49 = arith.constant 1 : index
    %c0_50 = arith.constant 0 : index
    %c0_51 = arith.constant 0 : index
    %57 = vector.load %arg4[%c1_49, %c0_50, %c0_51] : memref<2x64x128xf32, #tpu.memory_space<vmem>>, vector<1x64x128xf32>
    %58 = vector.shape_cast %57 : vector<1x64x128xf32> to vector<64x128xf32>
    %cst_52 = arith.constant dense<0.000000e+00> : vector<2x128xf32>
    %59 = tpu.matmul %56, %58, %cst_52 {dimension_numbers = #tpu.dot_dimension_numbers<[1], [0], [0], [1], [0, 0, 1, 1], [], []>} : vector<2x64xf32>, vector<64x128xf32>, vector<2x128xf32> -> vector<2x128xf32>
    %c1_53 = arith.constant 1 : index
    %c0_54 = arith.constant 0 : index
    %c0_55 = arith.constant 0 : index
    %60 = vector.load %arg5[%c1_53, %c0_54, %c0_55] : memref<2x1x128xf32, #tpu.memory_space<vmem>>, vector<1x1x128xf32>
    %61 = vector.shape_cast %60 : vector<1x1x128xf32> to vector<1x128xf32>
    %62 = vector.broadcast %61 : vector<1x128xf32> to vector<2x128xf32>
    %63 = arith.addf %59, %62 : vector<2x128xf32>
    %64 = arith.negf %63 : vector<2x128xf32>
    %65 = math.exp %64 : vector<2x128xf32>
    %cst_56 = arith.constant 1.000000e+00 : f32
    %66 = vector.broadcast %cst_56 : f32 to vector<2x128xf32>
    %67 = arith.addf %66, %65 : vector<2x128xf32>
    %68 = arith.divf %66, %67 : vector<2x128xf32>
    %69 = math.tanh %63 : vector<2x128xf32>
    %70 = vector.extract_strided_slice %68 {offsets = [0, 0], sizes = [2, 32], strides = [1, 1]} : vector<2x128xf32> to vector<2x32xf32>
    %71 = vector.extract_strided_slice %68 {offsets = [0, 32], sizes = [2, 32], strides = [1, 1]} : vector<2x128xf32> to vector<2x32xf32>
    %72 = vector.extract_strided_slice %69 {offsets = [0, 64], sizes = [2, 32], strides = [1, 1]} : vector<2x128xf32> to vector<2x32xf32>
    %73 = vector.extract_strided_slice %68 {offsets = [0, 96], sizes = [2, 32], strides = [1, 1]} : vector<2x128xf32> to vector<2x32xf32>
    %c1_57 = arith.constant 1 : index
    %c0_58 = arith.constant 0 : index
    %c0_59 = arith.constant 0 : index
    %74 = vector.load %arg10[%c1_57, %c0_58, %c0_59] : memref<2x2x32xf32, #tpu.memory_space<vmem>>, vector<1x2x32xf32>
    %75 = vector.shape_cast %74 : vector<1x2x32xf32> to vector<2x32xf32>
    %76 = arith.mulf %71, %75 : vector<2x32xf32>
    %77 = arith.mulf %70, %72 : vector<2x32xf32>
    %78 = arith.addf %76, %77 : vector<2x32xf32>
    %79 = math.tanh %78 : vector<2x32xf32>
    %80 = arith.mulf %73, %79 : vector<2x32xf32>
    %c1_60 = arith.constant 1 : index
    %c0_61 = arith.constant 0 : index
    %c0_62 = arith.constant 0 : index
    %81 = vector.load %arg9[%c1_60, %c0_61, %c0_62] : memref<2x2x32xf32, #tpu.memory_space<vmem>>, vector<1x2x32xf32>
    %82 = vector.shape_cast %81 : vector<1x2x32xf32> to vector<2x32xf32>
    %83 = vector.shape_cast %80 : vector<2x32xf32> to vector<1x2x32xf32>
    tpu.vector_store %arg9[%c1_60, %c0_61, %c0_62], %83 {strides = array<i32>} : memref<2x2x32xf32, #tpu.memory_space<vmem>>, vector<1x2x32xf32>,
    %c1_63 = arith.constant 1 : index
    %c0_64 = arith.constant 0 : index
    %c0_65 = arith.constant 0 : index
    %84 = vector.load %arg10[%c1_63, %c0_64, %c0_65] : memref<2x2x32xf32, #tpu.memory_space<vmem>>, vector<1x2x32xf32>
    %85 = vector.shape_cast %84 : vector<1x2x32xf32> to vector<2x32xf32>
    %86 = vector.shape_cast %78 : vector<2x32xf32> to vector<1x2x32xf32>
    tpu.vector_store %arg10[%c1_63, %c0_64, %c0_65], %86 {strides = array<i32>} : memref<2x2x32xf32, #tpu.memory_space<vmem>>, vector<1x2x32xf32>,
    %c0_66 = arith.constant 0 : index
    %c0_67 = arith.constant 0 : index
    %87 = vector.load %arg6[%c0_66, %c0_67] : memref<32x128xf32, #tpu.memory_space<vmem>>, vector<32x128xf32>
    %cst_68 = arith.constant dense<0.000000e+00> : vector<2x128xf32>
    %88 = tpu.matmul %80, %87, %cst_68 {dimension_numbers = #tpu.dot_dimension_numbers<[1], [0], [0], [1], [0, 0, 1, 1], [], []>} : vector<2x32xf32>, vector<32x128xf32>, vector<2x128xf32> -> vector<2x128xf32>
    %c0_69 = arith.constant 0 : index
    %c0_70 = arith.constant 0 : index
    %89 = vector.load %arg7[%c0_69, %c0_70] : memref<1x128xf32, #tpu.memory_space<vmem>>, vector<1x128xf32>
    %90 = vector.broadcast %89 : vector<1x128xf32> to vector<2x128xf32>
    %91 = arith.addf %88, %90 : vector<2x128xf32>
    %92 = arith.index_cast %c0_i32 : i32 to index
    %c0_71 = arith.constant 0 : index
    %c0_72 = arith.constant 0 : index
    %93 = vector.load %arg8[%92, %c0_71, %c0_72] : memref<8x2x128xf32, #tpu.memory_space<vmem>>, vector<1x2x128xf32>
    %94 = vector.shape_cast %93 : vector<1x2x128xf32> to vector<2x128xf32>
    %95 = vector.shape_cast %91 : vector<2x128xf32> to vector<1x2x128xf32>
    tpu.vector_store %arg8[%92, %c0_71, %c0_72], %95 {strides = array<i32>} : memref<8x2x128xf32, #tpu.memory_space<vmem>>, vector<1x2x128xf32>,
    %c1_i32_73 = arith.constant 1 : i32
    %c2_i32_74 = arith.constant 2 : i32
    %96 = arith.muli %c1_i32_73, %c2_i32_74 : i32
    %c0_i32_75 = arith.constant 0 : i32
    %97 = arith.addi %96, %c0_i32_75 : i32
    %98 = arith.index_cast %97 : i32 to index
    %99 = memref.load %arg0[%98] : memref<16xi32, #tpu.memory_space<smem>>
    %100 = arith.index_cast %99 : i32 to index
    %c0_76 = arith.constant 0 : index
    %101 = vector.load %arg1[%100, %c0_76] : memref<50x32xf32, #tpu.memory_space<vmem>>, vector<1x32xf32>
    %c0_77 = arith.constant 0 : index
    %c0_78 = arith.constant 0 : index
    %102 = vector.load %arg11[%c0_77, %c0_78] : memref<2x64xf32, #tpu.memory_space<vmem>>, vector<1x32xf32>
    tpu.vector_store %arg11[%c0_77, %c0_78], %101 {strides = array<i32>} : memref<2x64xf32, #tpu.memory_space<vmem>>, vector<1x32xf32>,
    %c2_i32_79 = arith.constant 2 : i32
    %103 = arith.muli %c1_i32_73, %c2_i32_79 : i32
    %c1_i32_80 = arith.constant 1 : i32
    %104 = arith.addi %103, %c1_i32_80 : i32
    %105 = arith.index_cast %104 : i32 to index
    %106 = memref.load %arg0[%105] : memref<16xi32, #tpu.memory_space<smem>>
    %107 = arith.index_cast %106 : i32 to index
    %c0_81 = arith.constant 0 : index
    %108 = vector.load %arg1[%107, %c0_81] : memref<50x32xf32, #tpu.memory_space<vmem>>, vector<1x32xf32>
    %c1_82 = arith.constant 1 : index
    %c0_83 = arith.constant 0 : index
    %109 = vector.load %arg11[%c1_82, %c0_83] : memref<2x64xf32, #tpu.memory_space<vmem>>, vector<1x32xf32>
    tpu.vector_store %arg11[%c1_82, %c0_83], %108 {strides = array<i32>} : memref<2x64xf32, #tpu.memory_space<vmem>>, vector<1x32xf32>,
    %c0_84 = arith.constant 0 : index
    %c0_85 = arith.constant 0 : index
    %c0_86 = arith.constant 0 : index
    %110 = vector.load %arg9[%c0_84, %c0_85, %c0_86] : memref<2x2x32xf32, #tpu.memory_space<vmem>>, vector<1x2x32xf32>
    %111 = vector.shape_cast %110 : vector<1x2x32xf32> to vector<2x32xf32>
    %c0_87 = arith.constant 0 : index
    %c32_88 = arith.constant 32 : index
    %112 = vector.load %arg11[%c0_87, %c32_88] : memref<2x64xf32, #tpu.memory_space<vmem>>, vector<2x32xf32>
    tpu.vector_store %arg11[%c0_87, %c32_88], %111 {strides = array<i32>} : memref<2x64xf32, #tpu.memory_space<vmem>>, vector<2x32xf32>,
    %c0_89 = arith.constant 0 : index
    %c0_90 = arith.constant 0 : index
    %113 = vector.load %arg11[%c0_89, %c0_90] : memref<2x64xf32, #tpu.memory_space<vmem>>, vector<2x64xf32>
    %c0_91 = arith.constant 0 : index
    %c0_92 = arith.constant 0 : index
    %c0_93 = arith.constant 0 : index
    %114 = vector.load %arg4[%c0_91, %c0_92, %c0_93] : memref<2x64x128xf32, #tpu.memory_space<vmem>>, vector<1x64x128xf32>
    %115 = vector.shape_cast %114 : vector<1x64x128xf32> to vector<64x128xf32>
    %cst_94 = arith.constant dense<0.000000e+00> : vector<2x128xf32>
    %116 = tpu.matmul %113, %115, %cst_94 {dimension_numbers = #tpu.dot_dimension_numbers<[1], [0], [0], [1], [0, 0, 1, 1], [], []>} : vector<2x64xf32>, vector<64x128xf32>, vector<2x128xf32> -> vector<2x128xf32>
    %c0_95 = arith.constant 0 : index
    %c0_96 = arith.constant 0 : index
    %c0_97 = arith.constant 0 : index
    %117 = vector.load %arg5[%c0_95, %c0_96, %c0_97] : memref<2x1x128xf32, #tpu.memory_space<vmem>>, vector<1x1x128xf32>
    %118 = vector.shape_cast %117 : vector<1x1x128xf32> to vector<1x128xf32>
    %119 = vector.broadcast %118 : vector<1x128xf32> to vector<2x128xf32>
    %120 = arith.addf %116, %119 : vector<2x128xf32>
    %121 = arith.negf %120 : vector<2x128xf32>
    %122 = math.exp %121 : vector<2x128xf32>
    %cst_98 = arith.constant 1.000000e+00 : f32
    %123 = vector.broadcast %cst_98 : f32 to vector<2x128xf32>
    %124 = arith.addf %123, %122 : vector<2x128xf32>
    %125 = arith.divf %123, %124 : vector<2x128xf32>
    %126 = math.tanh %120 : vector<2x128xf32>
    %127 = vector.extract_strided_slice %125 {offsets = [0, 0], sizes = [2, 32], strides = [1, 1]} : vector<2x128xf32> to vector<2x32xf32>
    %128 = vector.extract_strided_slice %125 {offsets = [0, 32], sizes = [2, 32], strides = [1, 1]} : vector<2x128xf32> to vector<2x32xf32>
    %129 = vector.extract_strided_slice %126 {offsets = [0, 64], sizes = [2, 32], strides = [1, 1]} : vector<2x128xf32> to vector<2x32xf32>
    %130 = vector.extract_strided_slice %125 {offsets = [0, 96], sizes = [2, 32], strides = [1, 1]} : vector<2x128xf32> to vector<2x32xf32>
    %c0_99 = arith.constant 0 : index
    %c0_100 = arith.constant 0 : index
    %c0_101 = arith.constant 0 : index
    %131 = vector.load %arg10[%c0_99, %c0_100, %c0_101] : memref<2x2x32xf32, #tpu.memory_space<vmem>>, vector<1x2x32xf32>
    %132 = vector.shape_cast %131 : vector<1x2x32xf32> to vector<2x32xf32>
    %133 = arith.mulf %128, %132 : vector<2x32xf32>
    %134 = arith.mulf %127, %129 : vector<2x32xf32>
    %135 = arith.addf %133, %134 : vector<2x32xf32>
    %136 = math.tanh %135 : vector<2x32xf32>
    %137 = arith.mulf %130, %136 : vector<2x32xf32>
    %c0_102 = arith.constant 0 : index
    %c0_103 = arith.constant 0 : index
    %c0_104 = arith.constant 0 : index
    %138 = vector.load %arg9[%c0_102, %c0_103, %c0_104] : memref<2x2x32xf32, #tpu.memory_space<vmem>>, vector<1x2x32xf32>
    %139 = vector.shape_cast %138 : vector<1x2x32xf32> to vector<2x32xf32>
    %140 = vector.shape_cast %137 : vector<2x32xf32> to vector<1x2x32xf32>
    tpu.vector_store %arg9[%c0_102, %c0_103, %c0_104], %140 {strides = array<i32>} : memref<2x2x32xf32, #tpu.memory_space<vmem>>, vector<1x2x32xf32>,
    %c0_105 = arith.constant 0 : index
    %c0_106 = arith.constant 0 : index
    %c0_107 = arith.constant 0 : index
    %141 = vector.load %arg10[%c0_105, %c0_106, %c0_107] : memref<2x2x32xf32, #tpu.memory_space<vmem>>, vector<1x2x32xf32>
    %142 = vector.shape_cast %141 : vector<1x2x32xf32> to vector<2x32xf32>
    %143 = vector.shape_cast %135 : vector<2x32xf32> to vector<1x2x32xf32>
    tpu.vector_store %arg10[%c0_105, %c0_106, %c0_107], %143 {strides = array<i32>} : memref<2x2x32xf32, #tpu.memory_space<vmem>>, vector<1x2x32xf32>,
    %c0_108 = arith.constant 0 : index
    %c0_109 = arith.constant 0 : index
    %144 = vector.load %arg11[%c0_108, %c0_109] : memref<2x64xf32, #tpu.memory_space<vmem>>, vector<2x32xf32>
    tpu.vector_store %arg11[%c0_108, %c0_109], %137 {strides = array<i32>} : memref<2x64xf32, #tpu.memory_space<vmem>>, vector<2x32xf32>,
    %c1_110 = arith.constant 1 : index
    %c0_111 = arith.constant 0 : index
    %c0_112 = arith.constant 0 : index
    %145 = vector.load %arg9[%c1_110, %c0_111, %c0_112] : memref<2x2x32xf32, #tpu.memory_space<vmem>>, vector<1x2x32xf32>
    %146 = vector.shape_cast %145 : vector<1x2x32xf32> to vector<2x32xf32>
    %c0_113 = arith.constant 0 : index
    %c32_114 = arith.constant 32 : index
    %147 = vector.load %arg11[%c0_113, %c32_114] : memref<2x64xf32, #tpu.memory_space<vmem>>, vector<2x32xf32>
    tpu.vector_store %arg11[%c0_113, %c32_114], %146 {strides = array<i32>} : memref<2x64xf32, #tpu.memory_space<vmem>>, vector<2x32xf32>,
    %c0_115 = arith.constant 0 : index
    %c0_116 = arith.constant 0 : index
    %148 = vector.load %arg11[%c0_115, %c0_116] : memref<2x64xf32, #tpu.memory_space<vmem>>, vector<2x64xf32>
    %c1_117 = arith.constant 1 : index
    %c0_118 = arith.constant 0 : index
    %c0_119 = arith.constant 0 : index
    %149 = vector.load %arg4[%c1_117, %c0_118, %c0_119] : memref<2x64x128xf32, #tpu.memory_space<vmem>>, vector<1x64x128xf32>
    %150 = vector.shape_cast %149 : vector<1x64x128xf32> to vector<64x128xf32>
    %cst_120 = arith.constant dense<0.000000e+00> : vector<2x128xf32>
    %151 = tpu.matmul %148, %150, %cst_120 {dimension_numbers = #tpu.dot_dimension_numbers<[1], [0], [0], [1], [0, 0, 1, 1], [], []>} : vector<2x64xf32>, vector<64x128xf32>, vector<2x128xf32> -> vector<2x128xf32>
    %c1_121 = arith.constant 1 : index
    %c0_122 = arith.constant 0 : index
    %c0_123 = arith.constant 0 : index
    %152 = vector.load %arg5[%c1_121, %c0_122, %c0_123] : memref<2x1x128xf32, #tpu.memory_space<vmem>>, vector<1x1x128xf32>
    %153 = vector.shape_cast %152 : vector<1x1x128xf32> to vector<1x128xf32>
    %154 = vector.broadcast %153 : vector<1x128xf32> to vector<2x128xf32>
    %155 = arith.addf %151, %154 : vector<2x128xf32>
    %156 = arith.negf %155 : vector<2x128xf32>
    %157 = math.exp %156 : vector<2x128xf32>
    %cst_124 = arith.constant 1.000000e+00 : f32
    %158 = vector.broadcast %cst_124 : f32 to vector<2x128xf32>
    %159 = arith.addf %158, %157 : vector<2x128xf32>
    %160 = arith.divf %158, %159 : vector<2x128xf32>
    %161 = math.tanh %155 : vector<2x128xf32>
    %162 = vector.extract_strided_slice %160 {offsets = [0, 0], sizes = [2, 32], strides = [1, 1]} : vector<2x128xf32> to vector<2x32xf32>
    %163 = vector.extract_strided_slice %160 {offsets = [0, 32], sizes = [2, 32], strides = [1, 1]} : vector<2x128xf32> to vector<2x32xf32>
    %164 = vector.extract_strided_slice %161 {offsets = [0, 64], sizes = [2, 32], strides = [1, 1]} : vector<2x128xf32> to vector<2x32xf32>
    %165 = vector.extract_strided_slice %160 {offsets = [0, 96], sizes = [2, 32], strides = [1, 1]} : vector<2x128xf32> to vector<2x32xf32>
    %c1_125 = arith.constant 1 : index
    %c0_126 = arith.constant 0 : index
    %c0_127 = arith.constant 0 : index
    %166 = vector.load %arg10[%c1_125, %c0_126, %c0_127] : memref<2x2x32xf32, #tpu.memory_space<vmem>>, vector<1x2x32xf32>
    %167 = vector.shape_cast %166 : vector<1x2x32xf32> to vector<2x32xf32>
    %168 = arith.mulf %163, %167 : vector<2x32xf32>
    %169 = arith.mulf %162, %164 : vector<2x32xf32>
    %170 = arith.addf %168, %169 : vector<2x32xf32>
    %171 = math.tanh %170 : vector<2x32xf32>
    %172 = arith.mulf %165, %171 : vector<2x32xf32>
    %c1_128 = arith.constant 1 : index
    %c0_129 = arith.constant 0 : index
    %c0_130 = arith.constant 0 : index
    %173 = vector.load %arg9[%c1_128, %c0_129, %c0_130] : memref<2x2x32xf32, #tpu.memory_space<vmem>>, vector<1x2x32xf32>
    %174 = vector.shape_cast %173 : vector<1x2x32xf32> to vector<2x32xf32>
    %175 = vector.shape_cast %172 : vector<2x32xf32> to vector<1x2x32xf32>
    tpu.vector_store %arg9[%c1_128, %c0_129, %c0_130], %175 {strides = array<i32>} : memref<2x2x32xf32, #tpu.memory_space<vmem>>, vector<1x2x32xf32>,
    %c1_131 = arith.constant 1 : index
    %c0_132 = arith.constant 0 : index
    %c0_133 = arith.constant 0 : index
    %176 = vector.load %arg10[%c1_131, %c0_132, %c0_133] : memref<2x2x32xf32, #tpu.memory_space<vmem>>, vector<1x2x32xf32>
    %177 = vector.shape_cast %176 : vector<1x2x32xf32> to vector<2x32xf32>
    %178 = vector.shape_cast %170 : vector<2x32xf32> to vector<1x2x32xf32>
    tpu.vector_store %arg10[%c1_131, %c0_132, %c0_133], %178 {strides = array<i32>} : memref<2x2x32xf32, #tpu.memory_space<vmem>>, vector<1x2x32xf32>,
    %c0_134 = arith.constant 0 : index
    %c0_135 = arith.constant 0 : index
    %179 = vector.load %arg6[%c0_134, %c0_135] : memref<32x128xf32, #tpu.memory_space<vmem>>, vector<32x128xf32>
    %cst_136 = arith.constant dense<0.000000e+00> : vector<2x128xf32>
    %180 = tpu.matmul %172, %179, %cst_136 {dimension_numbers = #tpu.dot_dimension_numbers<[1], [0], [0], [1], [0, 0, 1, 1], [], []>} : vector<2x32xf32>, vector<32x128xf32>, vector<2x128xf32> -> vector<2x128xf32>
    %c0_137 = arith.constant 0 : index
    %c0_138 = arith.constant 0 : index
    %181 = vector.load %arg7[%c0_137, %c0_138] : memref<1x128xf32, #tpu.memory_space<vmem>>, vector<1x128xf32>
    %182 = vector.broadcast %181 : vector<1x128xf32> to vector<2x128xf32>
    %183 = arith.addf %180, %182 : vector<2x128xf32>
    %184 = arith.index_cast %c1_i32_73 : i32 to index
    %c0_139 = arith.constant 0 : index
    %c0_140 = arith.constant 0 : index
    %185 = vector.load %arg8[%184, %c0_139, %c0_140] : memref<8x2x128xf32, #tpu.memory_space<vmem>>, vector<1x2x128xf32>
    %186 = vector.shape_cast %185 : vector<1x2x128xf32> to vector<2x128xf32>
    %187 = vector.shape_cast %183 : vector<2x128xf32> to vector<1x2x128xf32>
    tpu.vector_store %arg8[%184, %c0_139, %c0_140], %187 {strides = array<i32>} : memref<8x2x128xf32, #tpu.memory_space<vmem>>, vector<1x2x128xf32>,
    %c2_i32_141 = arith.constant 2 : i32
    %c2_i32_142 = arith.constant 2 : i32
    %188 = arith.muli %c2_i32_141, %c2_i32_142 : i32
    %c0_i32_143 = arith.constant 0 : i32
    %189 = arith.addi %188, %c0_i32_143 : i32
    %190 = arith.index_cast %189 : i32 to index
    %191 = memref.load %arg0[%190] : memref<16xi32, #tpu.memory_space<smem>>
    %192 = arith.index_cast %191 : i32 to index
    %c0_144 = arith.constant 0 : index
    %193 = vector.load %arg1[%192, %c0_144] : memref<50x32xf32, #tpu.memory_space<vmem>>, vector<1x32xf32>
    %c0_145 = arith.constant 0 : index
    %c0_146 = arith.constant 0 : index
    %194 = vector.load %arg11[%c0_145, %c0_146] : memref<2x64xf32, #tpu.memory_space<vmem>>, vector<1x32xf32>
    tpu.vector_store %arg11[%c0_145, %c0_146], %193 {strides = array<i32>} : memref<2x64xf32, #tpu.memory_space<vmem>>, vector<1x32xf32>,
    %c2_i32_147 = arith.constant 2 : i32
    %195 = arith.muli %c2_i32_141, %c2_i32_147 : i32
    %c1_i32_148 = arith.constant 1 : i32
    %196 = arith.addi %195, %c1_i32_148 : i32
    %197 = arith.index_cast %196 : i32 to index
    %198 = memref.load %arg0[%197] : memref<16xi32, #tpu.memory_space<smem>>
    %199 = arith.index_cast %198 : i32 to index
    %c0_149 = arith.constant 0 : index
    %200 = vector.load %arg1[%199, %c0_149] : memref<50x32xf32, #tpu.memory_space<vmem>>, vector<1x32xf32>
    %c1_150 = arith.constant 1 : index
    %c0_151 = arith.constant 0 : index
    %201 = vector.load %arg11[%c1_150, %c0_151] : memref<2x64xf32, #tpu.memory_space<vmem>>, vector<1x32xf32>
    tpu.vector_store %arg11[%c1_150, %c0_151], %200 {strides = array<i32>} : memref<2x64xf32, #tpu.memory_space<vmem>>, vector<1x32xf32>,
    %c0_152 = arith.constant 0 : index
    %c0_153 = arith.constant 0 : index
    %c0_154 = arith.constant 0 : index
    %202 = vector.load %arg9[%c0_152, %c0_153, %c0_154] : memref<2x2x32xf32, #tpu.memory_space<vmem>>, vector<1x2x32xf32>
    %203 = vector.shape_cast %202 : vector<1x2x32xf32> to vector<2x32xf32>
    %c0_155 = arith.constant 0 : index
    %c32_156 = arith.constant 32 : index
    %204 = vector.load %arg11[%c0_155, %c32_156] : memref<2x64xf32, #tpu.memory_space<vmem>>, vector<2x32xf32>
    tpu.vector_store %arg11[%c0_155, %c32_156], %203 {strides = array<i32>} : memref<2x64xf32, #tpu.memory_space<vmem>>, vector<2x32xf32>,
    %c0_157 = arith.constant 0 : index
    %c0_158 = arith.constant 0 : index
    %205 = vector.load %arg11[%c0_157, %c0_158] : memref<2x64xf32, #tpu.memory_space<vmem>>, vector<2x64xf32>
    %c0_159 = arith.constant 0 : index
    %c0_160 = arith.constant 0 : index
    %c0_161 = arith.constant 0 : index
    %206 = vector.load %arg4[%c0_159, %c0_160, %c0_161] : memref<2x64x128xf32, #tpu.memory_space<vmem>>, vector<1x64x128xf32>
    %207 = vector.shape_cast %206 : vector<1x64x128xf32> to vector<64x128xf32>
    %cst_162 = arith.constant dense<0.000000e+00> : vector<2x128xf32>
    %208 = tpu.matmul %205, %207, %cst_162 {dimension_numbers = #tpu.dot_dimension_numbers<[1], [0], [0], [1], [0, 0, 1, 1], [], []>} : vector<2x64xf32>, vector<64x128xf32>, vector<2x128xf32> -> vector<2x128xf32>
    %c0_163 = arith.constant 0 : index
    %c0_164 = arith.constant 0 : index
    %c0_165 = arith.constant 0 : index
    %209 = vector.load %arg5[%c0_163, %c0_164, %c0_165] : memref<2x1x128xf32, #tpu.memory_space<vmem>>, vector<1x1x128xf32>
    %210 = vector.shape_cast %209 : vector<1x1x128xf32> to vector<1x128xf32>
    %211 = vector.broadcast %210 : vector<1x128xf32> to vector<2x128xf32>
    %212 = arith.addf %208, %211 : vector<2x128xf32>
    %213 = arith.negf %212 : vector<2x128xf32>
    %214 = math.exp %213 : vector<2x128xf32>
    %cst_166 = arith.constant 1.000000e+00 : f32
    %215 = vector.broadcast %cst_166 : f32 to vector<2x128xf32>
    %216 = arith.addf %215, %214 : vector<2x128xf32>
    %217 = arith.divf %215, %216 : vector<2x128xf32>
    %218 = math.tanh %212 : vector<2x128xf32>
    %219 = vector.extract_strided_slice %217 {offsets = [0, 0], sizes = [2, 32], strides = [1, 1]} : vector<2x128xf32> to vector<2x32xf32>
    %220 = vector.extract_strided_slice %217 {offsets = [0, 32], sizes = [2, 32], strides = [1, 1]} : vector<2x128xf32> to vector<2x32xf32>
    %221 = vector.extract_strided_slice %218 {offsets = [0, 64], sizes = [2, 32], strides = [1, 1]} : vector<2x128xf32> to vector<2x32xf32>
    %222 = vector.extract_strided_slice %217 {offsets = [0, 96], sizes = [2, 32], strides = [1, 1]} : vector<2x128xf32> to vector<2x32xf32>
    %c0_167 = arith.constant 0 : index
    %c0_168 = arith.constant 0 : index
    %c0_169 = arith.constant 0 : index
    %223 = vector.load %arg10[%c0_167, %c0_168, %c0_169] : memref<2x2x32xf32, #tpu.memory_space<vmem>>, vector<1x2x32xf32>
    %224 = vector.shape_cast %223 : vector<1x2x32xf32> to vector<2x32xf32>
    %225 = arith.mulf %220, %224 : vector<2x32xf32>
    %226 = arith.mulf %219, %221 : vector<2x32xf32>
    %227 = arith.addf %225, %226 : vector<2x32xf32>
    %228 = math.tanh %227 : vector<2x32xf32>
    %229 = arith.mulf %222, %228 : vector<2x32xf32>
    %c0_170 = arith.constant 0 : index
    %c0_171 = arith.constant 0 : index
    %c0_172 = arith.constant 0 : index
    %230 = vector.load %arg9[%c0_170, %c0_171, %c0_172] : memref<2x2x32xf32, #tpu.memory_space<vmem>>, vector<1x2x32xf32>
    %231 = vector.shape_cast %230 : vector<1x2x32xf32> to vector<2x32xf32>
    %232 = vector.shape_cast %229 : vector<2x32xf32> to vector<1x2x32xf32>
    tpu.vector_store %arg9[%c0_170, %c0_171, %c0_172], %232 {strides = array<i32>} : memref<2x2x32xf32, #tpu.memory_space<vmem>>, vector<1x2x32xf32>,
    %c0_173 = arith.constant 0 : index
    %c0_174 = arith.constant 0 : index
    %c0_175 = arith.constant 0 : index
    %233 = vector.load %arg10[%c0_173, %c0_174, %c0_175] : memref<2x2x32xf32, #tpu.memory_space<vmem>>, vector<1x2x32xf32>
    %234 = vector.shape_cast %233 : vector<1x2x32xf32> to vector<2x32xf32>
    %235 = vector.shape_cast %227 : vector<2x32xf32> to vector<1x2x32xf32>
    tpu.vector_store %arg10[%c0_173, %c0_174, %c0_175], %235 {strides = array<i32>} : memref<2x2x32xf32, #tpu.memory_space<vmem>>, vector<1x2x32xf32>,
    %c0_176 = arith.constant 0 : index
    %c0_177 = arith.constant 0 : index
    %236 = vector.load %arg11[%c0_176, %c0_177] : memref<2x64xf32, #tpu.memory_space<vmem>>, vector<2x32xf32>
    tpu.vector_store %arg11[%c0_176, %c0_177], %229 {strides = array<i32>} : memref<2x64xf32, #tpu.memory_space<vmem>>, vector<2x32xf32>,
    %c1_178 = arith.constant 1 : index
    %c0_179 = arith.constant 0 : index
    %c0_180 = arith.constant 0 : index
    %237 = vector.load %arg9[%c1_178, %c0_179, %c0_180] : memref<2x2x32xf32, #tpu.memory_space<vmem>>, vector<1x2x32xf32>
    %238 = vector.shape_cast %237 : vector<1x2x32xf32> to vector<2x32xf32>
    %c0_181 = arith.constant 0 : index
    %c32_182 = arith.constant 32 : index
    %239 = vector.load %arg11[%c0_181, %c32_182] : memref<2x64xf32, #tpu.memory_space<vmem>>, vector<2x32xf32>
    tpu.vector_store %arg11[%c0_181, %c32_182], %238 {strides = array<i32>} : memref<2x64xf32, #tpu.memory_space<vmem>>, vector<2x32xf32>,
    %c0_183 = arith.constant 0 : index
    %c0_184 = arith.constant 0 : index
    %240 = vector.load %arg11[%c0_183, %c0_184] : memref<2x64xf32, #tpu.memory_space<vmem>>, vector<2x64xf32>
    %c1_185 = arith.constant 1 : index
    %c0_186 = arith.constant 0 : index
    %c0_187 = arith.constant 0 : index
    %241 = vector.load %arg4[%c1_185, %c0_186, %c0_187] : memref<2x64x128xf32, #tpu.memory_space<vmem>>, vector<1x64x128xf32>
    %242 = vector.shape_cast %241 : vector<1x64x128xf32> to vector<64x128xf32>
    %cst_188 = arith.constant dense<0.000000e+00> : vector<2x128xf32>
    %243 = tpu.matmul %240, %242, %cst_188 {dimension_numbers = #tpu.dot_dimension_numbers<[1], [0], [0], [1], [0, 0, 1, 1], [], []>} : vector<2x64xf32>, vector<64x128xf32>, vector<2x128xf32> -> vector<2x128xf32>
    %c1_189 = arith.constant 1 : index
    %c0_190 = arith.constant 0 : index
    %c0_191 = arith.constant 0 : index
    %244 = vector.load %arg5[%c1_189, %c0_190, %c0_191] : memref<2x1x128xf32, #tpu.memory_space<vmem>>, vector<1x1x128xf32>
    %245 = vector.shape_cast %244 : vector<1x1x128xf32> to vector<1x128xf32>
    %246 = vector.broadcast %245 : vector<1x128xf32> to vector<2x128xf32>
    %247 = arith.addf %243, %246 : vector<2x128xf32>
    %248 = arith.negf %247 : vector<2x128xf32>
    %249 = math.exp %248 : vector<2x128xf32>
    %cst_192 = arith.constant 1.000000e+00 : f32
    %250 = vector.broadcast %cst_192 : f32 to vector<2x128xf32>
    %251 = arith.addf %250, %249 : vector<2x128xf32>
    %252 = arith.divf %250, %251 : vector<2x128xf32>
    %253 = math.tanh %247 : vector<2x128xf32>
    %254 = vector.extract_strided_slice %252 {offsets = [0, 0], sizes = [2, 32], strides = [1, 1]} : vector<2x128xf32> to vector<2x32xf32>
    %255 = vector.extract_strided_slice %252 {offsets = [0, 32], sizes = [2, 32], strides = [1, 1]} : vector<2x128xf32> to vector<2x32xf32>
    %256 = vector.extract_strided_slice %253 {offsets = [0, 64], sizes = [2, 32], strides = [1, 1]} : vector<2x128xf32> to vector<2x32xf32>
    %257 = vector.extract_strided_slice %252 {offsets = [0, 96], sizes = [2, 32], strides = [1, 1]} : vector<2x128xf32> to vector<2x32xf32>
    %c1_193 = arith.constant 1 : index
    %c0_194 = arith.constant 0 : index
    %c0_195 = arith.constant 0 : index
    %258 = vector.load %arg10[%c1_193, %c0_194, %c0_195] : memref<2x2x32xf32, #tpu.memory_space<vmem>>, vector<1x2x32xf32>
    %259 = vector.shape_cast %258 : vector<1x2x32xf32> to vector<2x32xf32>
    %260 = arith.mulf %255, %259 : vector<2x32xf32>
    %261 = arith.mulf %254, %256 : vector<2x32xf32>
    %262 = arith.addf %260, %261 : vector<2x32xf32>
    %263 = math.tanh %262 : vector<2x32xf32>
    %264 = arith.mulf %257, %263 : vector<2x32xf32>
    %c1_196 = arith.constant 1 : index
    %c0_197 = arith.constant 0 : index
    %c0_198 = arith.constant 0 : index
    %265 = vector.load %arg9[%c1_196, %c0_197, %c0_198] : memref<2x2x32xf32, #tpu.memory_space<vmem>>, vector<1x2x32xf32>
    %266 = vector.shape_cast %265 : vector<1x2x32xf32> to vector<2x32xf32>
    %267 = vector.shape_cast %264 : vector<2x32xf32> to vector<1x2x32xf32>
    tpu.vector_store %arg9[%c1_196, %c0_197, %c0_198], %267 {strides = array<i32>} : memref<2x2x32xf32, #tpu.memory_space<vmem>>, vector<1x2x32xf32>,
    %c1_199 = arith.constant 1 : index
    %c0_200 = arith.constant 0 : index
    %c0_201 = arith.constant 0 : index
    %268 = vector.load %arg10[%c1_199, %c0_200, %c0_201] : memref<2x2x32xf32, #tpu.memory_space<vmem>>, vector<1x2x32xf32>
    %269 = vector.shape_cast %268 : vector<1x2x32xf32> to vector<2x32xf32>
    %270 = vector.shape_cast %262 : vector<2x32xf32> to vector<1x2x32xf32>
    tpu.vector_store %arg10[%c1_199, %c0_200, %c0_201], %270 {strides = array<i32>} : memref<2x2x32xf32, #tpu.memory_space<vmem>>, vector<1x2x32xf32>,
    %c0_202 = arith.constant 0 : index
    %c0_203 = arith.constant 0 : index
    %271 = vector.load %arg6[%c0_202, %c0_203] : memref<32x128xf32, #tpu.memory_space<vmem>>, vector<32x128xf32>
    %cst_204 = arith.constant dense<0.000000e+00> : vector<2x128xf32>
    %272 = tpu.matmul %264, %271, %cst_204 {dimension_numbers = #tpu.dot_dimension_numbers<[1], [0], [0], [1], [0, 0, 1, 1], [], []>} : vector<2x32xf32>, vector<32x128xf32>, vector<2x128xf32> -> vector<2x128xf32>
    %c0_205 = arith.constant 0 : index
    %c0_206 = arith.constant 0 : index
    %273 = vector.load %arg7[%c0_205, %c0_206] : memref<1x128xf32, #tpu.memory_space<vmem>>, vector<1x128xf32>
    %274 = vector.broadcast %273 : vector<1x128xf32> to vector<2x128xf32>
    %275 = arith.addf %272, %274 : vector<2x128xf32>
    %276 = arith.index_cast %c2_i32_141 : i32 to index
    %c0_207 = arith.constant 0 : index
    %c0_208 = arith.constant 0 : index
    %277 = vector.load %arg8[%276, %c0_207, %c0_208] : memref<8x2x128xf32, #tpu.memory_space<vmem>>, vector<1x2x128xf32>
    %278 = vector.shape_cast %277 : vector<1x2x128xf32> to vector<2x128xf32>
    %279 = vector.shape_cast %275 : vector<2x128xf32> to vector<1x2x128xf32>
    tpu.vector_store %arg8[%276, %c0_207, %c0_208], %279 {strides = array<i32>} : memref<8x2x128xf32, #tpu.memory_space<vmem>>, vector<1x2x128xf32>,
    %c3_i32 = arith.constant 3 : i32
    %c2_i32_209 = arith.constant 2 : i32
    %280 = arith.muli %c3_i32, %c2_i32_209 : i32
    %c0_i32_210 = arith.constant 0 : i32
    %281 = arith.addi %280, %c0_i32_210 : i32
    %282 = arith.index_cast %281 : i32 to index
    %283 = memref.load %arg0[%282] : memref<16xi32, #tpu.memory_space<smem>>
    %284 = arith.index_cast %283 : i32 to index
    %c0_211 = arith.constant 0 : index
    %285 = vector.load %arg1[%284, %c0_211] : memref<50x32xf32, #tpu.memory_space<vmem>>, vector<1x32xf32>
    %c0_212 = arith.constant 0 : index
    %c0_213 = arith.constant 0 : index
    %286 = vector.load %arg11[%c0_212, %c0_213] : memref<2x64xf32, #tpu.memory_space<vmem>>, vector<1x32xf32>
    tpu.vector_store %arg11[%c0_212, %c0_213], %285 {strides = array<i32>} : memref<2x64xf32, #tpu.memory_space<vmem>>, vector<1x32xf32>,
    %c2_i32_214 = arith.constant 2 : i32
    %287 = arith.muli %c3_i32, %c2_i32_214 : i32
    %c1_i32_215 = arith.constant 1 : i32
    %288 = arith.addi %287, %c1_i32_215 : i32
    %289 = arith.index_cast %288 : i32 to index
    %290 = memref.load %arg0[%289] : memref<16xi32, #tpu.memory_space<smem>>
    %291 = arith.index_cast %290 : i32 to index
    %c0_216 = arith.constant 0 : index
    %292 = vector.load %arg1[%291, %c0_216] : memref<50x32xf32, #tpu.memory_space<vmem>>, vector<1x32xf32>
    %c1_217 = arith.constant 1 : index
    %c0_218 = arith.constant 0 : index
    %293 = vector.load %arg11[%c1_217, %c0_218] : memref<2x64xf32, #tpu.memory_space<vmem>>, vector<1x32xf32>
    tpu.vector_store %arg11[%c1_217, %c0_218], %292 {strides = array<i32>} : memref<2x64xf32, #tpu.memory_space<vmem>>, vector<1x32xf32>,
    %c0_219 = arith.constant 0 : index
    %c0_220 = arith.constant 0 : index
    %c0_221 = arith.constant 0 : index
    %294 = vector.load %arg9[%c0_219, %c0_220, %c0_221] : memref<2x2x32xf32, #tpu.memory_space<vmem>>, vector<1x2x32xf32>
    %295 = vector.shape_cast %294 : vector<1x2x32xf32> to vector<2x32xf32>
    %c0_222 = arith.constant 0 : index
    %c32_223 = arith.constant 32 : index
    %296 = vector.load %arg11[%c0_222, %c32_223] : memref<2x64xf32, #tpu.memory_space<vmem>>, vector<2x32xf32>
    tpu.vector_store %arg11[%c0_222, %c32_223], %295 {strides = array<i32>} : memref<2x64xf32, #tpu.memory_space<vmem>>, vector<2x32xf32>,
    %c0_224 = arith.constant 0 : index
    %c0_225 = arith.constant 0 : index
    %297 = vector.load %arg11[%c0_224, %c0_225] : memref<2x64xf32, #tpu.memory_space<vmem>>, vector<2x64xf32>
    %c0_226 = arith.constant 0 : index
    %c0_227 = arith.constant 0 : index
    %c0_228 = arith.constant 0 : index
    %298 = vector.load %arg4[%c0_226, %c0_227, %c0_228] : memref<2x64x128xf32, #tpu.memory_space<vmem>>, vector<1x64x128xf32>
    %299 = vector.shape_cast %298 : vector<1x64x128xf32> to vector<64x128xf32>
    %cst_229 = arith.constant dense<0.000000e+00> : vector<2x128xf32>
    %300 = tpu.matmul %297, %299, %cst_229 {dimension_numbers = #tpu.dot_dimension_numbers<[1], [0], [0], [1], [0, 0, 1, 1], [], []>} : vector<2x64xf32>, vector<64x128xf32>, vector<2x128xf32> -> vector<2x128xf32>
    %c0_230 = arith.constant 0 : index
    %c0_231 = arith.constant 0 : index
    %c0_232 = arith.constant 0 : index
    %301 = vector.load %arg5[%c0_230, %c0_231, %c0_232] : memref<2x1x128xf32, #tpu.memory_space<vmem>>, vector<1x1x128xf32>
    %302 = vector.shape_cast %301 : vector<1x1x128xf32> to vector<1x128xf32>
    %303 = vector.broadcast %302 : vector<1x128xf32> to vector<2x128xf32>
    %304 = arith.addf %300, %303 : vector<2x128xf32>
    %305 = arith.negf %304 : vector<2x128xf32>
    %306 = math.exp %305 : vector<2x128xf32>
    %cst_233 = arith.constant 1.000000e+00 : f32
    %307 = vector.broadcast %cst_233 : f32 to vector<2x128xf32>
    %308 = arith.addf %307, %306 : vector<2x128xf32>
    %309 = arith.divf %307, %308 : vector<2x128xf32>
    %310 = math.tanh %304 : vector<2x128xf32>
    %311 = vector.extract_strided_slice %309 {offsets = [0, 0], sizes = [2, 32], strides = [1, 1]} : vector<2x128xf32> to vector<2x32xf32>
    %312 = vector.extract_strided_slice %309 {offsets = [0, 32], sizes = [2, 32], strides = [1, 1]} : vector<2x128xf32> to vector<2x32xf32>
    %313 = vector.extract_strided_slice %310 {offsets = [0, 64], sizes = [2, 32], strides = [1, 1]} : vector<2x128xf32> to vector<2x32xf32>
    %314 = vector.extract_strided_slice %309 {offsets = [0, 96], sizes = [2, 32], strides = [1, 1]} : vector<2x128xf32> to vector<2x32xf32>
    %c0_234 = arith.constant 0 : index
    %c0_235 = arith.constant 0 : index
    %c0_236 = arith.constant 0 : index
    %315 = vector.load %arg10[%c0_234, %c0_235, %c0_236] : memref<2x2x32xf32, #tpu.memory_space<vmem>>, vector<1x2x32xf32>
    %316 = vector.shape_cast %315 : vector<1x2x32xf32> to vector<2x32xf32>
    %317 = arith.mulf %312, %316 : vector<2x32xf32>
    %318 = arith.mulf %311, %313 : vector<2x32xf32>
    %319 = arith.addf %317, %318 : vector<2x32xf32>
    %320 = math.tanh %319 : vector<2x32xf32>
    %321 = arith.mulf %314, %320 : vector<2x32xf32>
    %c0_237 = arith.constant 0 : index
    %c0_238 = arith.constant 0 : index
    %c0_239 = arith.constant 0 : index
    %322 = vector.load %arg9[%c0_237, %c0_238, %c0_239] : memref<2x2x32xf32, #tpu.memory_space<vmem>>, vector<1x2x32xf32>
    %323 = vector.shape_cast %322 : vector<1x2x32xf32> to vector<2x32xf32>
    %324 = vector.shape_cast %321 : vector<2x32xf32> to vector<1x2x32xf32>
    tpu.vector_store %arg9[%c0_237, %c0_238, %c0_239], %324 {strides = array<i32>} : memref<2x2x32xf32, #tpu.memory_space<vmem>>, vector<1x2x32xf32>,
    %c0_240 = arith.constant 0 : index
    %c0_241 = arith.constant 0 : index
    %c0_242 = arith.constant 0 : index
    %325 = vector.load %arg10[%c0_240, %c0_241, %c0_242] : memref<2x2x32xf32, #tpu.memory_space<vmem>>, vector<1x2x32xf32>
    %326 = vector.shape_cast %325 : vector<1x2x32xf32> to vector<2x32xf32>
    %327 = vector.shape_cast %319 : vector<2x32xf32> to vector<1x2x32xf32>
    tpu.vector_store %arg10[%c0_240, %c0_241, %c0_242], %327 {strides = array<i32>} : memref<2x2x32xf32, #tpu.memory_space<vmem>>, vector<1x2x32xf32>,
    %c0_243 = arith.constant 0 : index
    %c0_244 = arith.constant 0 : index
    %328 = vector.load %arg11[%c0_243, %c0_244] : memref<2x64xf32, #tpu.memory_space<vmem>>, vector<2x32xf32>
    tpu.vector_store %arg11[%c0_243, %c0_244], %321 {strides = array<i32>} : memref<2x64xf32, #tpu.memory_space<vmem>>, vector<2x32xf32>,
    %c1_245 = arith.constant 1 : index
    %c0_246 = arith.constant 0 : index
    %c0_247 = arith.constant 0 : index
    %329 = vector.load %arg9[%c1_245, %c0_246, %c0_247] : memref<2x2x32xf32, #tpu.memory_space<vmem>>, vector<1x2x32xf32>
    %330 = vector.shape_cast %329 : vector<1x2x32xf32> to vector<2x32xf32>
    %c0_248 = arith.constant 0 : index
    %c32_249 = arith.constant 32 : index
    %331 = vector.load %arg11[%c0_248, %c32_249] : memref<2x64xf32, #tpu.memory_space<vmem>>, vector<2x32xf32>
    tpu.vector_store %arg11[%c0_248, %c32_249], %330 {strides = array<i32>} : memref<2x64xf32, #tpu.memory_space<vmem>>, vector<2x32xf32>,
    %c0_250 = arith.constant 0 : index
    %c0_251 = arith.constant 0 : index
    %332 = vector.load %arg11[%c0_250, %c0_251] : memref<2x64xf32, #tpu.memory_space<vmem>>, vector<2x64xf32>
    %c1_252 = arith.constant 1 : index
    %c0_253 = arith.constant 0 : index
    %c0_254 = arith.constant 0 : index
    %333 = vector.load %arg4[%c1_252, %c0_253, %c0_254] : memref<2x64x128xf32, #tpu.memory_space<vmem>>, vector<1x64x128xf32>
    %334 = vector.shape_cast %333 : vector<1x64x128xf32> to vector<64x128xf32>
    %cst_255 = arith.constant dense<0.000000e+00> : vector<2x128xf32>
    %335 = tpu.matmul %332, %334, %cst_255 {dimension_numbers = #tpu.dot_dimension_numbers<[1], [0], [0], [1], [0, 0, 1, 1], [], []>} : vector<2x64xf32>, vector<64x128xf32>, vector<2x128xf32> -> vector<2x128xf32>
    %c1_256 = arith.constant 1 : index
    %c0_257 = arith.constant 0 : index
    %c0_258 = arith.constant 0 : index
    %336 = vector.load %arg5[%c1_256, %c0_257, %c0_258] : memref<2x1x128xf32, #tpu.memory_space<vmem>>, vector<1x1x128xf32>
    %337 = vector.shape_cast %336 : vector<1x1x128xf32> to vector<1x128xf32>
    %338 = vector.broadcast %337 : vector<1x128xf32> to vector<2x128xf32>
    %339 = arith.addf %335, %338 : vector<2x128xf32>
    %340 = arith.negf %339 : vector<2x128xf32>
    %341 = math.exp %340 : vector<2x128xf32>
    %cst_259 = arith.constant 1.000000e+00 : f32
    %342 = vector.broadcast %cst_259 : f32 to vector<2x128xf32>
    %343 = arith.addf %342, %341 : vector<2x128xf32>
    %344 = arith.divf %342, %343 : vector<2x128xf32>
    %345 = math.tanh %339 : vector<2x128xf32>
    %346 = vector.extract_strided_slice %344 {offsets = [0, 0], sizes = [2, 32], strides = [1, 1]} : vector<2x128xf32> to vector<2x32xf32>
    %347 = vector.extract_strided_slice %344 {offsets = [0, 32], sizes = [2, 32], strides = [1, 1]} : vector<2x128xf32> to vector<2x32xf32>
    %348 = vector.extract_strided_slice %345 {offsets = [0, 64], sizes = [2, 32], strides = [1, 1]} : vector<2x128xf32> to vector<2x32xf32>
    %349 = vector.extract_strided_slice %344 {offsets = [0, 96], sizes = [2, 32], strides = [1, 1]} : vector<2x128xf32> to vector<2x32xf32>
    %c1_260 = arith.constant 1 : index
    %c0_261 = arith.constant 0 : index
    %c0_262 = arith.constant 0 : index
    %350 = vector.load %arg10[%c1_260, %c0_261, %c0_262] : memref<2x2x32xf32, #tpu.memory_space<vmem>>, vector<1x2x32xf32>
    %351 = vector.shape_cast %350 : vector<1x2x32xf32> to vector<2x32xf32>
    %352 = arith.mulf %347, %351 : vector<2x32xf32>
    %353 = arith.mulf %346, %348 : vector<2x32xf32>
    %354 = arith.addf %352, %353 : vector<2x32xf32>
    %355 = math.tanh %354 : vector<2x32xf32>
    %356 = arith.mulf %349, %355 : vector<2x32xf32>
    %c1_263 = arith.constant 1 : index
    %c0_264 = arith.constant 0 : index
    %c0_265 = arith.constant 0 : index
    %357 = vector.load %arg9[%c1_263, %c0_264, %c0_265] : memref<2x2x32xf32, #tpu.memory_space<vmem>>, vector<1x2x32xf32>
    %358 = vector.shape_cast %357 : vector<1x2x32xf32> to vector<2x32xf32>
    %359 = vector.shape_cast %356 : vector<2x32xf32> to vector<1x2x32xf32>
    tpu.vector_store %arg9[%c1_263, %c0_264, %c0_265], %359 {strides = array<i32>} : memref<2x2x32xf32, #tpu.memory_space<vmem>>, vector<1x2x32xf32>,
    %c1_266 = arith.constant 1 : index
    %c0_267 = arith.constant 0 : index
    %c0_268 = arith.constant 0 : index
    %360 = vector.load %arg10[%c1_266, %c0_267, %c0_268] : memref<2x2x32xf32, #tpu.memory_space<vmem>>, vector<1x2x32xf32>
    %361 = vector.shape_cast %360 : vector<1x2x32xf32> to vector<2x32xf32>
    %362 = vector.shape_cast %354 : vector<2x32xf32> to vector<1x2x32xf32>
    tpu.vector_store %arg10[%c1_266, %c0_267, %c0_268], %362 {strides = array<i32>} : memref<2x2x32xf32, #tpu.memory_space<vmem>>, vector<1x2x32xf32>,
    %c0_269 = arith.constant 0 : index
    %c0_270 = arith.constant 0 : index
    %363 = vector.load %arg6[%c0_269, %c0_270] : memref<32x128xf32, #tpu.memory_space<vmem>>, vector<32x128xf32>
    %cst_271 = arith.constant dense<0.000000e+00> : vector<2x128xf32>
    %364 = tpu.matmul %356, %363, %cst_271 {dimension_numbers = #tpu.dot_dimension_numbers<[1], [0], [0], [1], [0, 0, 1, 1], [], []>} : vector<2x32xf32>, vector<32x128xf32>, vector<2x128xf32> -> vector<2x128xf32>
    %c0_272 = arith.constant 0 : index
    %c0_273 = arith.constant 0 : index
    %365 = vector.load %arg7[%c0_272, %c0_273] : memref<1x128xf32, #tpu.memory_space<vmem>>, vector<1x128xf32>
    %366 = vector.broadcast %365 : vector<1x128xf32> to vector<2x128xf32>
    %367 = arith.addf %364, %366 : vector<2x128xf32>
    %368 = arith.index_cast %c3_i32 : i32 to index
    %c0_274 = arith.constant 0 : index
    %c0_275 = arith.constant 0 : index
    %369 = vector.load %arg8[%368, %c0_274, %c0_275] : memref<8x2x128xf32, #tpu.memory_space<vmem>>, vector<1x2x128xf32>
    %370 = vector.shape_cast %369 : vector<1x2x128xf32> to vector<2x128xf32>
    %371 = vector.shape_cast %367 : vector<2x128xf32> to vector<1x2x128xf32>
    tpu.vector_store %arg8[%368, %c0_274, %c0_275], %371 {strides = array<i32>} : memref<8x2x128xf32, #tpu.memory_space<vmem>>, vector<1x2x128xf32>,
    %c4_i32 = arith.constant 4 : i32
    %c2_i32_276 = arith.constant 2 : i32
    %372 = arith.muli %c4_i32, %c2_i32_276 : i32
    %c0_i32_277 = arith.constant 0 : i32
    %373 = arith.addi %372, %c0_i32_277 : i32
    %374 = arith.index_cast %373 : i32 to index
    %375 = memref.load %arg0[%374] : memref<16xi32, #tpu.memory_space<smem>>
    %376 = arith.index_cast %375 : i32 to index
    %c0_278 = arith.constant 0 : index
    %377 = vector.load %arg1[%376, %c0_278] : memref<50x32xf32, #tpu.memory_space<vmem>>, vector<1x32xf32>
    %c0_279 = arith.constant 0 : index
    %c0_280 = arith.constant 0 : index
    %378 = vector.load %arg11[%c0_279, %c0_280] : memref<2x64xf32, #tpu.memory_space<vmem>>, vector<1x32xf32>
    tpu.vector_store %arg11[%c0_279, %c0_280], %377 {strides = array<i32>} : memref<2x64xf32, #tpu.memory_space<vmem>>, vector<1x32xf32>,
    %c2_i32_281 = arith.constant 2 : i32
    %379 = arith.muli %c4_i32, %c2_i32_281 : i32
    %c1_i32_282 = arith.constant 1 : i32
    %380 = arith.addi %379, %c1_i32_282 : i32
    %381 = arith.index_cast %380 : i32 to index
    %382 = memref.load %arg0[%381] : memref<16xi32, #tpu.memory_space<smem>>
    %383 = arith.index_cast %382 : i32 to index
    %c0_283 = arith.constant 0 : index
    %384 = vector.load %arg1[%383, %c0_283] : memref<50x32xf32, #tpu.memory_space<vmem>>, vector<1x32xf32>
    %c1_284 = arith.constant 1 : index
    %c0_285 = arith.constant 0 : index
    %385 = vector.load %arg11[%c1_284, %c0_285] : memref<2x64xf32, #tpu.memory_space<vmem>>, vector<1x32xf32>
    tpu.vector_store %arg11[%c1_284, %c0_285], %384 {strides = array<i32>} : memref<2x64xf32, #tpu.memory_space<vmem>>, vector<1x32xf32>,
    %c0_286 = arith.constant 0 : index
    %c0_287 = arith.constant 0 : index
    %c0_288 = arith.constant 0 : index
    %386 = vector.load %arg9[%c0_286, %c0_287, %c0_288] : memref<2x2x32xf32, #tpu.memory_space<vmem>>, vector<1x2x32xf32>
    %387 = vector.shape_cast %386 : vector<1x2x32xf32> to vector<2x32xf32>
    %c0_289 = arith.constant 0 : index
    %c32_290 = arith.constant 32 : index
    %388 = vector.load %arg11[%c0_289, %c32_290] : memref<2x64xf32, #tpu.memory_space<vmem>>, vector<2x32xf32>
    tpu.vector_store %arg11[%c0_289, %c32_290], %387 {strides = array<i32>} : memref<2x64xf32, #tpu.memory_space<vmem>>, vector<2x32xf32>,
    %c0_291 = arith.constant 0 : index
    %c0_292 = arith.constant 0 : index
    %389 = vector.load %arg11[%c0_291, %c0_292] : memref<2x64xf32, #tpu.memory_space<vmem>>, vector<2x64xf32>
    %c0_293 = arith.constant 0 : index
    %c0_294 = arith.constant 0 : index
    %c0_295 = arith.constant 0 : index
    %390 = vector.load %arg4[%c0_293, %c0_294, %c0_295] : memref<2x64x128xf32, #tpu.memory_space<vmem>>, vector<1x64x128xf32>
    %391 = vector.shape_cast %390 : vector<1x64x128xf32> to vector<64x128xf32>
    %cst_296 = arith.constant dense<0.000000e+00> : vector<2x128xf32>
    %392 = tpu.matmul %389, %391, %cst_296 {dimension_numbers = #tpu.dot_dimension_numbers<[1], [0], [0], [1], [0, 0, 1, 1], [], []>} : vector<2x64xf32>, vector<64x128xf32>, vector<2x128xf32> -> vector<2x128xf32>
    %c0_297 = arith.constant 0 : index
    %c0_298 = arith.constant 0 : index
    %c0_299 = arith.constant 0 : index
    %393 = vector.load %arg5[%c0_297, %c0_298, %c0_299] : memref<2x1x128xf32, #tpu.memory_space<vmem>>, vector<1x1x128xf32>
    %394 = vector.shape_cast %393 : vector<1x1x128xf32> to vector<1x128xf32>
    %395 = vector.broadcast %394 : vector<1x128xf32> to vector<2x128xf32>
    %396 = arith.addf %392, %395 : vector<2x128xf32>
    %397 = arith.negf %396 : vector<2x128xf32>
    %398 = math.exp %397 : vector<2x128xf32>
    %cst_300 = arith.constant 1.000000e+00 : f32
    %399 = vector.broadcast %cst_300 : f32 to vector<2x128xf32>
    %400 = arith.addf %399, %398 : vector<2x128xf32>
    %401 = arith.divf %399, %400 : vector<2x128xf32>
    %402 = math.tanh %396 : vector<2x128xf32>
    %403 = vector.extract_strided_slice %401 {offsets = [0, 0], sizes = [2, 32], strides = [1, 1]} : vector<2x128xf32> to vector<2x32xf32>
    %404 = vector.extract_strided_slice %401 {offsets = [0, 32], sizes = [2, 32], strides = [1, 1]} : vector<2x128xf32> to vector<2x32xf32>
    %405 = vector.extract_strided_slice %402 {offsets = [0, 64], sizes = [2, 32], strides = [1, 1]} : vector<2x128xf32> to vector<2x32xf32>
    %406 = vector.extract_strided_slice %401 {offsets = [0, 96], sizes = [2, 32], strides = [1, 1]} : vector<2x128xf32> to vector<2x32xf32>
    %c0_301 = arith.constant 0 : index
    %c0_302 = arith.constant 0 : index
    %c0_303 = arith.constant 0 : index
    %407 = vector.load %arg10[%c0_301, %c0_302, %c0_303] : memref<2x2x32xf32, #tpu.memory_space<vmem>>, vector<1x2x32xf32>
    %408 = vector.shape_cast %407 : vector<1x2x32xf32> to vector<2x32xf32>
    %409 = arith.mulf %404, %408 : vector<2x32xf32>
    %410 = arith.mulf %403, %405 : vector<2x32xf32>
    %411 = arith.addf %409, %410 : vector<2x32xf32>
    %412 = math.tanh %411 : vector<2x32xf32>
    %413 = arith.mulf %406, %412 : vector<2x32xf32>
    %c0_304 = arith.constant 0 : index
    %c0_305 = arith.constant 0 : index
    %c0_306 = arith.constant 0 : index
    %414 = vector.load %arg9[%c0_304, %c0_305, %c0_306] : memref<2x2x32xf32, #tpu.memory_space<vmem>>, vector<1x2x32xf32>
    %415 = vector.shape_cast %414 : vector<1x2x32xf32> to vector<2x32xf32>
    %416 = vector.shape_cast %413 : vector<2x32xf32> to vector<1x2x32xf32>
    tpu.vector_store %arg9[%c0_304, %c0_305, %c0_306], %416 {strides = array<i32>} : memref<2x2x32xf32, #tpu.memory_space<vmem>>, vector<1x2x32xf32>,
    %c0_307 = arith.constant 0 : index
    %c0_308 = arith.constant 0 : index
    %c0_309 = arith.constant 0 : index
    %417 = vector.load %arg10[%c0_307, %c0_308, %c0_309] : memref<2x2x32xf32, #tpu.memory_space<vmem>>, vector<1x2x32xf32>
    %418 = vector.shape_cast %417 : vector<1x2x32xf32> to vector<2x32xf32>
    %419 = vector.shape_cast %411 : vector<2x32xf32> to vector<1x2x32xf32>
    tpu.vector_store %arg10[%c0_307, %c0_308, %c0_309], %419 {strides = array<i32>} : memref<2x2x32xf32, #tpu.memory_space<vmem>>, vector<1x2x32xf32>,
    %c0_310 = arith.constant 0 : index
    %c0_311 = arith.constant 0 : index
    %420 = vector.load %arg11[%c0_310, %c0_311] : memref<2x64xf32, #tpu.memory_space<vmem>>, vector<2x32xf32>
    tpu.vector_store %arg11[%c0_310, %c0_311], %413 {strides = array<i32>} : memref<2x64xf32, #tpu.memory_space<vmem>>, vector<2x32xf32>,
    %c1_312 = arith.constant 1 : index
    %c0_313 = arith.constant 0 : index
    %c0_314 = arith.constant 0 : index
    %421 = vector.load %arg9[%c1_312, %c0_313, %c0_314] : memref<2x2x32xf32, #tpu.memory_space<vmem>>, vector<1x2x32xf32>
    %422 = vector.shape_cast %421 : vector<1x2x32xf32> to vector<2x32xf32>
    %c0_315 = arith.constant 0 : index
    %c32_316 = arith.constant 32 : index
    %423 = vector.load %arg11[%c0_315, %c32_316] : memref<2x64xf32, #tpu.memory_space<vmem>>, vector<2x32xf32>
    tpu.vector_store %arg11[%c0_315, %c32_316], %422 {strides = array<i32>} : memref<2x64xf32, #tpu.memory_space<vmem>>, vector<2x32xf32>,
    %c0_317 = arith.constant 0 : index
    %c0_318 = arith.constant 0 : index
    %424 = vector.load %arg11[%c0_317, %c0_318] : memref<2x64xf32, #tpu.memory_space<vmem>>, vector<2x64xf32>
    %c1_319 = arith.constant 1 : index
    %c0_320 = arith.constant 0 : index
    %c0_321 = arith.constant 0 : index
    %425 = vector.load %arg4[%c1_319, %c0_320, %c0_321] : memref<2x64x128xf32, #tpu.memory_space<vmem>>, vector<1x64x128xf32>
    %426 = vector.shape_cast %425 : vector<1x64x128xf32> to vector<64x128xf32>
    %cst_322 = arith.constant dense<0.000000e+00> : vector<2x128xf32>
    %427 = tpu.matmul %424, %426, %cst_322 {dimension_numbers = #tpu.dot_dimension_numbers<[1], [0], [0], [1], [0, 0, 1, 1], [], []>} : vector<2x64xf32>, vector<64x128xf32>, vector<2x128xf32> -> vector<2x128xf32>
    %c1_323 = arith.constant 1 : index
    %c0_324 = arith.constant 0 : index
    %c0_325 = arith.constant 0 : index
    %428 = vector.load %arg5[%c1_323, %c0_324, %c0_325] : memref<2x1x128xf32, #tpu.memory_space<vmem>>, vector<1x1x128xf32>
    %429 = vector.shape_cast %428 : vector<1x1x128xf32> to vector<1x128xf32>
    %430 = vector.broadcast %429 : vector<1x128xf32> to vector<2x128xf32>
    %431 = arith.addf %427, %430 : vector<2x128xf32>
    %432 = arith.negf %431 : vector<2x128xf32>
    %433 = math.exp %432 : vector<2x128xf32>
    %cst_326 = arith.constant 1.000000e+00 : f32
    %434 = vector.broadcast %cst_326 : f32 to vector<2x128xf32>
    %435 = arith.addf %434, %433 : vector<2x128xf32>
    %436 = arith.divf %434, %435 : vector<2x128xf32>
    %437 = math.tanh %431 : vector<2x128xf32>
    %438 = vector.extract_strided_slice %436 {offsets = [0, 0], sizes = [2, 32], strides = [1, 1]} : vector<2x128xf32> to vector<2x32xf32>
    %439 = vector.extract_strided_slice %436 {offsets = [0, 32], sizes = [2, 32], strides = [1, 1]} : vector<2x128xf32> to vector<2x32xf32>
    %440 = vector.extract_strided_slice %437 {offsets = [0, 64], sizes = [2, 32], strides = [1, 1]} : vector<2x128xf32> to vector<2x32xf32>
    %441 = vector.extract_strided_slice %436 {offsets = [0, 96], sizes = [2, 32], strides = [1, 1]} : vector<2x128xf32> to vector<2x32xf32>
    %c1_327 = arith.constant 1 : index
    %c0_328 = arith.constant 0 : index
    %c0_329 = arith.constant 0 : index
    %442 = vector.load %arg10[%c1_327, %c0_328, %c0_329] : memref<2x2x32xf32, #tpu.memory_space<vmem>>, vector<1x2x32xf32>
    %443 = vector.shape_cast %442 : vector<1x2x32xf32> to vector<2x32xf32>
    %444 = arith.mulf %439, %443 : vector<2x32xf32>
    %445 = arith.mulf %438, %440 : vector<2x32xf32>
    %446 = arith.addf %444, %445 : vector<2x32xf32>
    %447 = math.tanh %446 : vector<2x32xf32>
    %448 = arith.mulf %441, %447 : vector<2x32xf32>
    %c1_330 = arith.constant 1 : index
    %c0_331 = arith.constant 0 : index
    %c0_332 = arith.constant 0 : index
    %449 = vector.load %arg9[%c1_330, %c0_331, %c0_332] : memref<2x2x32xf32, #tpu.memory_space<vmem>>, vector<1x2x32xf32>
    %450 = vector.shape_cast %449 : vector<1x2x32xf32> to vector<2x32xf32>
    %451 = vector.shape_cast %448 : vector<2x32xf32> to vector<1x2x32xf32>
    tpu.vector_store %arg9[%c1_330, %c0_331, %c0_332], %451 {strides = array<i32>} : memref<2x2x32xf32, #tpu.memory_space<vmem>>, vector<1x2x32xf32>,
    %c1_333 = arith.constant 1 : index
    %c0_334 = arith.constant 0 : index
    %c0_335 = arith.constant 0 : index
    %452 = vector.load %arg10[%c1_333, %c0_334, %c0_335] : memref<2x2x32xf32, #tpu.memory_space<vmem>>, vector<1x2x32xf32>
    %453 = vector.shape_cast %452 : vector<1x2x32xf32> to vector<2x32xf32>
    %454 = vector.shape_cast %446 : vector<2x32xf32> to vector<1x2x32xf32>
    tpu.vector_store %arg10[%c1_333, %c0_334, %c0_335], %454 {strides = array<i32>} : memref<2x2x32xf32, #tpu.memory_space<vmem>>, vector<1x2x32xf32>,
    %c0_336 = arith.constant 0 : index
    %c0_337 = arith.constant 0 : index
    %455 = vector.load %arg6[%c0_336, %c0_337] : memref<32x128xf32, #tpu.memory_space<vmem>>, vector<32x128xf32>
    %cst_338 = arith.constant dense<0.000000e+00> : vector<2x128xf32>
    %456 = tpu.matmul %448, %455, %cst_338 {dimension_numbers = #tpu.dot_dimension_numbers<[1], [0], [0], [1], [0, 0, 1, 1], [], []>} : vector<2x32xf32>, vector<32x128xf32>, vector<2x128xf32> -> vector<2x128xf32>
    %c0_339 = arith.constant 0 : index
    %c0_340 = arith.constant 0 : index
    %457 = vector.load %arg7[%c0_339, %c0_340] : memref<1x128xf32, #tpu.memory_space<vmem>>, vector<1x128xf32>
    %458 = vector.broadcast %457 : vector<1x128xf32> to vector<2x128xf32>
    %459 = arith.addf %456, %458 : vector<2x128xf32>
    %460 = arith.index_cast %c4_i32 : i32 to index
    %c0_341 = arith.constant 0 : index
    %c0_342 = arith.constant 0 : index
    %461 = vector.load %arg8[%460, %c0_341, %c0_342] : memref<8x2x128xf32, #tpu.memory_space<vmem>>, vector<1x2x128xf32>
    %462 = vector.shape_cast %461 : vector<1x2x128xf32> to vector<2x128xf32>
    %463 = vector.shape_cast %459 : vector<2x128xf32> to vector<1x2x128xf32>
    tpu.vector_store %arg8[%460, %c0_341, %c0_342], %463 {strides = array<i32>} : memref<8x2x128xf32, #tpu.memory_space<vmem>>, vector<1x2x128xf32>,
    %c5_i32 = arith.constant 5 : i32
    %c2_i32_343 = arith.constant 2 : i32
    %464 = arith.muli %c5_i32, %c2_i32_343 : i32
    %c0_i32_344 = arith.constant 0 : i32
    %465 = arith.addi %464, %c0_i32_344 : i32
    %466 = arith.index_cast %465 : i32 to index
    %467 = memref.load %arg0[%466] : memref<16xi32, #tpu.memory_space<smem>>
    %468 = arith.index_cast %467 : i32 to index
    %c0_345 = arith.constant 0 : index
    %469 = vector.load %arg1[%468, %c0_345] : memref<50x32xf32, #tpu.memory_space<vmem>>, vector<1x32xf32>
    %c0_346 = arith.constant 0 : index
    %c0_347 = arith.constant 0 : index
    %470 = vector.load %arg11[%c0_346, %c0_347] : memref<2x64xf32, #tpu.memory_space<vmem>>, vector<1x32xf32>
    tpu.vector_store %arg11[%c0_346, %c0_347], %469 {strides = array<i32>} : memref<2x64xf32, #tpu.memory_space<vmem>>, vector<1x32xf32>,
    %c2_i32_348 = arith.constant 2 : i32
    %471 = arith.muli %c5_i32, %c2_i32_348 : i32
    %c1_i32_349 = arith.constant 1 : i32
    %472 = arith.addi %471, %c1_i32_349 : i32
    %473 = arith.index_cast %472 : i32 to index
    %474 = memref.load %arg0[%473] : memref<16xi32, #tpu.memory_space<smem>>
    %475 = arith.index_cast %474 : i32 to index
    %c0_350 = arith.constant 0 : index
    %476 = vector.load %arg1[%475, %c0_350] : memref<50x32xf32, #tpu.memory_space<vmem>>, vector<1x32xf32>
    %c1_351 = arith.constant 1 : index
    %c0_352 = arith.constant 0 : index
    %477 = vector.load %arg11[%c1_351, %c0_352] : memref<2x64xf32, #tpu.memory_space<vmem>>, vector<1x32xf32>
    tpu.vector_store %arg11[%c1_351, %c0_352], %476 {strides = array<i32>} : memref<2x64xf32, #tpu.memory_space<vmem>>, vector<1x32xf32>,
    %c0_353 = arith.constant 0 : index
    %c0_354 = arith.constant 0 : index
    %c0_355 = arith.constant 0 : index
    %478 = vector.load %arg9[%c0_353, %c0_354, %c0_355] : memref<2x2x32xf32, #tpu.memory_space<vmem>>, vector<1x2x32xf32>
    %479 = vector.shape_cast %478 : vector<1x2x32xf32> to vector<2x32xf32>
    %c0_356 = arith.constant 0 : index
    %c32_357 = arith.constant 32 : index
    %480 = vector.load %arg11[%c0_356, %c32_357] : memref<2x64xf32, #tpu.memory_space<vmem>>, vector<2x32xf32>
    tpu.vector_store %arg11[%c0_356, %c32_357], %479 {strides = array<i32>} : memref<2x64xf32, #tpu.memory_space<vmem>>, vector<2x32xf32>,
    %c0_358 = arith.constant 0 : index
    %c0_359 = arith.constant 0 : index
    %481 = vector.load %arg11[%c0_358, %c0_359] : memref<2x64xf32, #tpu.memory_space<vmem>>, vector<2x64xf32>
    %c0_360 = arith.constant 0 : index
    %c0_361 = arith.constant 0 : index
    %c0_362 = arith.constant 0 : index
    %482 = vector.load %arg4[%c0_360, %c0_361, %c0_362] : memref<2x64x128xf32, #tpu.memory_space<vmem>>, vector<1x64x128xf32>
    %483 = vector.shape_cast %482 : vector<1x64x128xf32> to vector<64x128xf32>
    %cst_363 = arith.constant dense<0.000000e+00> : vector<2x128xf32>
    %484 = tpu.matmul %481, %483, %cst_363 {dimension_numbers = #tpu.dot_dimension_numbers<[1], [0], [0], [1], [0, 0, 1, 1], [], []>} : vector<2x64xf32>, vector<64x128xf32>, vector<2x128xf32> -> vector<2x128xf32>
    %c0_364 = arith.constant 0 : index
    %c0_365 = arith.constant 0 : index
    %c0_366 = arith.constant 0 : index
    %485 = vector.load %arg5[%c0_364, %c0_365, %c0_366] : memref<2x1x128xf32, #tpu.memory_space<vmem>>, vector<1x1x128xf32>
    %486 = vector.shape_cast %485 : vector<1x1x128xf32> to vector<1x128xf32>
    %487 = vector.broadcast %486 : vector<1x128xf32> to vector<2x128xf32>
    %488 = arith.addf %484, %487 : vector<2x128xf32>
    %489 = arith.negf %488 : vector<2x128xf32>
    %490 = math.exp %489 : vector<2x128xf32>
    %cst_367 = arith.constant 1.000000e+00 : f32
    %491 = vector.broadcast %cst_367 : f32 to vector<2x128xf32>
    %492 = arith.addf %491, %490 : vector<2x128xf32>
    %493 = arith.divf %491, %492 : vector<2x128xf32>
    %494 = math.tanh %488 : vector<2x128xf32>
    %495 = vector.extract_strided_slice %493 {offsets = [0, 0], sizes = [2, 32], strides = [1, 1]} : vector<2x128xf32> to vector<2x32xf32>
    %496 = vector.extract_strided_slice %493 {offsets = [0, 32], sizes = [2, 32], strides = [1, 1]} : vector<2x128xf32> to vector<2x32xf32>
    %497 = vector.extract_strided_slice %494 {offsets = [0, 64], sizes = [2, 32], strides = [1, 1]} : vector<2x128xf32> to vector<2x32xf32>
    %498 = vector.extract_strided_slice %493 {offsets = [0, 96], sizes = [2, 32], strides = [1, 1]} : vector<2x128xf32> to vector<2x32xf32>
    %c0_368 = arith.constant 0 : index
    %c0_369 = arith.constant 0 : index
    %c0_370 = arith.constant 0 : index
    %499 = vector.load %arg10[%c0_368, %c0_369, %c0_370] : memref<2x2x32xf32, #tpu.memory_space<vmem>>, vector<1x2x32xf32>
    %500 = vector.shape_cast %499 : vector<1x2x32xf32> to vector<2x32xf32>
    %501 = arith.mulf %496, %500 : vector<2x32xf32>
    %502 = arith.mulf %495, %497 : vector<2x32xf32>
    %503 = arith.addf %501, %502 : vector<2x32xf32>
    %504 = math.tanh %503 : vector<2x32xf32>
    %505 = arith.mulf %498, %504 : vector<2x32xf32>
    %c0_371 = arith.constant 0 : index
    %c0_372 = arith.constant 0 : index
    %c0_373 = arith.constant 0 : index
    %506 = vector.load %arg9[%c0_371, %c0_372, %c0_373] : memref<2x2x32xf32, #tpu.memory_space<vmem>>, vector<1x2x32xf32>
    %507 = vector.shape_cast %506 : vector<1x2x32xf32> to vector<2x32xf32>
    %508 = vector.shape_cast %505 : vector<2x32xf32> to vector<1x2x32xf32>
    tpu.vector_store %arg9[%c0_371, %c0_372, %c0_373], %508 {strides = array<i32>} : memref<2x2x32xf32, #tpu.memory_space<vmem>>, vector<1x2x32xf32>,
    %c0_374 = arith.constant 0 : index
    %c0_375 = arith.constant 0 : index
    %c0_376 = arith.constant 0 : index
    %509 = vector.load %arg10[%c0_374, %c0_375, %c0_376] : memref<2x2x32xf32, #tpu.memory_space<vmem>>, vector<1x2x32xf32>
    %510 = vector.shape_cast %509 : vector<1x2x32xf32> to vector<2x32xf32>
    %511 = vector.shape_cast %503 : vector<2x32xf32> to vector<1x2x32xf32>
    tpu.vector_store %arg10[%c0_374, %c0_375, %c0_376], %511 {strides = array<i32>} : memref<2x2x32xf32, #tpu.memory_space<vmem>>, vector<1x2x32xf32>,
    %c0_377 = arith.constant 0 : index
    %c0_378 = arith.constant 0 : index
    %512 = vector.load %arg11[%c0_377, %c0_378] : memref<2x64xf32, #tpu.memory_space<vmem>>, vector<2x32xf32>
    tpu.vector_store %arg11[%c0_377, %c0_378], %505 {strides = array<i32>} : memref<2x64xf32, #tpu.memory_space<vmem>>, vector<2x32xf32>,
    %c1_379 = arith.constant 1 : index
    %c0_380 = arith.constant 0 : index
    %c0_381 = arith.constant 0 : index
    %513 = vector.load %arg9[%c1_379, %c0_380, %c0_381] : memref<2x2x32xf32, #tpu.memory_space<vmem>>, vector<1x2x32xf32>
    %514 = vector.shape_cast %513 : vector<1x2x32xf32> to vector<2x32xf32>
    %c0_382 = arith.constant 0 : index
    %c32_383 = arith.constant 32 : index
    %515 = vector.load %arg11[%c0_382, %c32_383] : memref<2x64xf32, #tpu.memory_space<vmem>>, vector<2x32xf32>
    tpu.vector_store %arg11[%c0_382, %c32_383], %514 {strides = array<i32>} : memref<2x64xf32, #tpu.memory_space<vmem>>, vector<2x32xf32>,
    %c0_384 = arith.constant 0 : index
    %c0_385 = arith.constant 0 : index
    %516 = vector.load %arg11[%c0_384, %c0_385] : memref<2x64xf32, #tpu.memory_space<vmem>>, vector<2x64xf32>
    %c1_386 = arith.constant 1 : index
    %c0_387 = arith.constant 0 : index
    %c0_388 = arith.constant 0 : index
    %517 = vector.load %arg4[%c1_386, %c0_387, %c0_388] : memref<2x64x128xf32, #tpu.memory_space<vmem>>, vector<1x64x128xf32>
    %518 = vector.shape_cast %517 : vector<1x64x128xf32> to vector<64x128xf32>
    %cst_389 = arith.constant dense<0.000000e+00> : vector<2x128xf32>
    %519 = tpu.matmul %516, %518, %cst_389 {dimension_numbers = #tpu.dot_dimension_numbers<[1], [0], [0], [1], [0, 0, 1, 1], [], []>} : vector<2x64xf32>, vector<64x128xf32>, vector<2x128xf32> -> vector<2x128xf32>
    %c1_390 = arith.constant 1 : index
    %c0_391 = arith.constant 0 : index
    %c0_392 = arith.constant 0 : index
    %520 = vector.load %arg5[%c1_390, %c0_391, %c0_392] : memref<2x1x128xf32, #tpu.memory_space<vmem>>, vector<1x1x128xf32>
    %521 = vector.shape_cast %520 : vector<1x1x128xf32> to vector<1x128xf32>
    %522 = vector.broadcast %521 : vector<1x128xf32> to vector<2x128xf32>
    %523 = arith.addf %519, %522 : vector<2x128xf32>
    %524 = arith.negf %523 : vector<2x128xf32>
    %525 = math.exp %524 : vector<2x128xf32>
    %cst_393 = arith.constant 1.000000e+00 : f32
    %526 = vector.broadcast %cst_393 : f32 to vector<2x128xf32>
    %527 = arith.addf %526, %525 : vector<2x128xf32>
    %528 = arith.divf %526, %527 : vector<2x128xf32>
    %529 = math.tanh %523 : vector<2x128xf32>
    %530 = vector.extract_strided_slice %528 {offsets = [0, 0], sizes = [2, 32], strides = [1, 1]} : vector<2x128xf32> to vector<2x32xf32>
    %531 = vector.extract_strided_slice %528 {offsets = [0, 32], sizes = [2, 32], strides = [1, 1]} : vector<2x128xf32> to vector<2x32xf32>
    %532 = vector.extract_strided_slice %529 {offsets = [0, 64], sizes = [2, 32], strides = [1, 1]} : vector<2x128xf32> to vector<2x32xf32>
    %533 = vector.extract_strided_slice %528 {offsets = [0, 96], sizes = [2, 32], strides = [1, 1]} : vector<2x128xf32> to vector<2x32xf32>
    %c1_394 = arith.constant 1 : index
    %c0_395 = arith.constant 0 : index
    %c0_396 = arith.constant 0 : index
    %534 = vector.load %arg10[%c1_394, %c0_395, %c0_396] : memref<2x2x32xf32, #tpu.memory_space<vmem>>, vector<1x2x32xf32>
    %535 = vector.shape_cast %534 : vector<1x2x32xf32> to vector<2x32xf32>
    %536 = arith.mulf %531, %535 : vector<2x32xf32>
    %537 = arith.mulf %530, %532 : vector<2x32xf32>
    %538 = arith.addf %536, %537 : vector<2x32xf32>
    %539 = math.tanh %538 : vector<2x32xf32>
    %540 = arith.mulf %533, %539 : vector<2x32xf32>
    %c1_397 = arith.constant 1 : index
    %c0_398 = arith.constant 0 : index
    %c0_399 = arith.constant 0 : index
    %541 = vector.load %arg9[%c1_397, %c0_398, %c0_399] : memref<2x2x32xf32, #tpu.memory_space<vmem>>, vector<1x2x32xf32>
    %542 = vector.shape_cast %541 : vector<1x2x32xf32> to vector<2x32xf32>
    %543 = vector.shape_cast %540 : vector<2x32xf32> to vector<1x2x32xf32>
    tpu.vector_store %arg9[%c1_397, %c0_398, %c0_399], %543 {strides = array<i32>} : memref<2x2x32xf32, #tpu.memory_space<vmem>>, vector<1x2x32xf32>,
    %c1_400 = arith.constant 1 : index
    %c0_401 = arith.constant 0 : index
    %c0_402 = arith.constant 0 : index
    %544 = vector.load %arg10[%c1_400, %c0_401, %c0_402] : memref<2x2x32xf32, #tpu.memory_space<vmem>>, vector<1x2x32xf32>
    %545 = vector.shape_cast %544 : vector<1x2x32xf32> to vector<2x32xf32>
    %546 = vector.shape_cast %538 : vector<2x32xf32> to vector<1x2x32xf32>
    tpu.vector_store %arg10[%c1_400, %c0_401, %c0_402], %546 {strides = array<i32>} : memref<2x2x32xf32, #tpu.memory_space<vmem>>, vector<1x2x32xf32>,
    %c0_403 = arith.constant 0 : index
    %c0_404 = arith.constant 0 : index
    %547 = vector.load %arg6[%c0_403, %c0_404] : memref<32x128xf32, #tpu.memory_space<vmem>>, vector<32x128xf32>
    %cst_405 = arith.constant dense<0.000000e+00> : vector<2x128xf32>
    %548 = tpu.matmul %540, %547, %cst_405 {dimension_numbers = #tpu.dot_dimension_numbers<[1], [0], [0], [1], [0, 0, 1, 1], [], []>} : vector<2x32xf32>, vector<32x128xf32>, vector<2x128xf32> -> vector<2x128xf32>
    %c0_406 = arith.constant 0 : index
    %c0_407 = arith.constant 0 : index
    %549 = vector.load %arg7[%c0_406, %c0_407] : memref<1x128xf32, #tpu.memory_space<vmem>>, vector<1x128xf32>
    %550 = vector.broadcast %549 : vector<1x128xf32> to vector<2x128xf32>
    %551 = arith.addf %548, %550 : vector<2x128xf32>
    %552 = arith.index_cast %c5_i32 : i32 to index
    %c0_408 = arith.constant 0 : index
    %c0_409 = arith.constant 0 : index
    %553 = vector.load %arg8[%552, %c0_408, %c0_409] : memref<8x2x128xf32, #tpu.memory_space<vmem>>, vector<1x2x128xf32>
    %554 = vector.shape_cast %553 : vector<1x2x128xf32> to vector<2x128xf32>
    %555 = vector.shape_cast %551 : vector<2x128xf32> to vector<1x2x128xf32>
    tpu.vector_store %arg8[%552, %c0_408, %c0_409], %555 {strides = array<i32>} : memref<8x2x128xf32, #tpu.memory_space<vmem>>, vector<1x2x128xf32>,
    %c6_i32 = arith.constant 6 : i32
    %c2_i32_410 = arith.constant 2 : i32
    %556 = arith.muli %c6_i32, %c2_i32_410 : i32
    %c0_i32_411 = arith.constant 0 : i32
    %557 = arith.addi %556, %c0_i32_411 : i32
    %558 = arith.index_cast %557 : i32 to index
    %559 = memref.load %arg0[%558] : memref<16xi32, #tpu.memory_space<smem>>
    %560 = arith.index_cast %559 : i32 to index
    %c0_412 = arith.constant 0 : index
    %561 = vector.load %arg1[%560, %c0_412] : memref<50x32xf32, #tpu.memory_space<vmem>>, vector<1x32xf32>
    %c0_413 = arith.constant 0 : index
    %c0_414 = arith.constant 0 : index
    %562 = vector.load %arg11[%c0_413, %c0_414] : memref<2x64xf32, #tpu.memory_space<vmem>>, vector<1x32xf32>
    tpu.vector_store %arg11[%c0_413, %c0_414], %561 {strides = array<i32>} : memref<2x64xf32, #tpu.memory_space<vmem>>, vector<1x32xf32>,
    %c2_i32_415 = arith.constant 2 : i32
    %563 = arith.muli %c6_i32, %c2_i32_415 : i32
    %c1_i32_416 = arith.constant 1 : i32
    %564 = arith.addi %563, %c1_i32_416 : i32
    %565 = arith.index_cast %564 : i32 to index
    %566 = memref.load %arg0[%565] : memref<16xi32, #tpu.memory_space<smem>>
    %567 = arith.index_cast %566 : i32 to index
    %c0_417 = arith.constant 0 : index
    %568 = vector.load %arg1[%567, %c0_417] : memref<50x32xf32, #tpu.memory_space<vmem>>, vector<1x32xf32>
    %c1_418 = arith.constant 1 : index
    %c0_419 = arith.constant 0 : index
    %569 = vector.load %arg11[%c1_418, %c0_419] : memref<2x64xf32, #tpu.memory_space<vmem>>, vector<1x32xf32>
    tpu.vector_store %arg11[%c1_418, %c0_419], %568 {strides = array<i32>} : memref<2x64xf32, #tpu.memory_space<vmem>>, vector<1x32xf32>,
    %c0_420 = arith.constant 0 : index
    %c0_421 = arith.constant 0 : index
    %c0_422 = arith.constant 0 : index
    %570 = vector.load %arg9[%c0_420, %c0_421, %c0_422] : memref<2x2x32xf32, #tpu.memory_space<vmem>>, vector<1x2x32xf32>
    %571 = vector.shape_cast %570 : vector<1x2x32xf32> to vector<2x32xf32>
    %c0_423 = arith.constant 0 : index
    %c32_424 = arith.constant 32 : index
    %572 = vector.load %arg11[%c0_423, %c32_424] : memref<2x64xf32, #tpu.memory_space<vmem>>, vector<2x32xf32>
    tpu.vector_store %arg11[%c0_423, %c32_424], %571 {strides = array<i32>} : memref<2x64xf32, #tpu.memory_space<vmem>>, vector<2x32xf32>,
    %c0_425 = arith.constant 0 : index
    %c0_426 = arith.constant 0 : index
    %573 = vector.load %arg11[%c0_425, %c0_426] : memref<2x64xf32, #tpu.memory_space<vmem>>, vector<2x64xf32>
    %c0_427 = arith.constant 0 : index
    %c0_428 = arith.constant 0 : index
    %c0_429 = arith.constant 0 : index
    %574 = vector.load %arg4[%c0_427, %c0_428, %c0_429] : memref<2x64x128xf32, #tpu.memory_space<vmem>>, vector<1x64x128xf32>
    %575 = vector.shape_cast %574 : vector<1x64x128xf32> to vector<64x128xf32>
    %cst_430 = arith.constant dense<0.000000e+00> : vector<2x128xf32>
    %576 = tpu.matmul %573, %575, %cst_430 {dimension_numbers = #tpu.dot_dimension_numbers<[1], [0], [0], [1], [0, 0, 1, 1], [], []>} : vector<2x64xf32>, vector<64x128xf32>, vector<2x128xf32> -> vector<2x128xf32>
    %c0_431 = arith.constant 0 : index
    %c0_432 = arith.constant 0 : index
    %c0_433 = arith.constant 0 : index
    %577 = vector.load %arg5[%c0_431, %c0_432, %c0_433] : memref<2x1x128xf32, #tpu.memory_space<vmem>>, vector<1x1x128xf32>
    %578 = vector.shape_cast %577 : vector<1x1x128xf32> to vector<1x128xf32>
    %579 = vector.broadcast %578 : vector<1x128xf32> to vector<2x128xf32>
    %580 = arith.addf %576, %579 : vector<2x128xf32>
    %581 = arith.negf %580 : vector<2x128xf32>
    %582 = math.exp %581 : vector<2x128xf32>
    %cst_434 = arith.constant 1.000000e+00 : f32
    %583 = vector.broadcast %cst_434 : f32 to vector<2x128xf32>
    %584 = arith.addf %583, %582 : vector<2x128xf32>
    %585 = arith.divf %583, %584 : vector<2x128xf32>
    %586 = math.tanh %580 : vector<2x128xf32>
    %587 = vector.extract_strided_slice %585 {offsets = [0, 0], sizes = [2, 32], strides = [1, 1]} : vector<2x128xf32> to vector<2x32xf32>
    %588 = vector.extract_strided_slice %585 {offsets = [0, 32], sizes = [2, 32], strides = [1, 1]} : vector<2x128xf32> to vector<2x32xf32>
    %589 = vector.extract_strided_slice %586 {offsets = [0, 64], sizes = [2, 32], strides = [1, 1]} : vector<2x128xf32> to vector<2x32xf32>
    %590 = vector.extract_strided_slice %585 {offsets = [0, 96], sizes = [2, 32], strides = [1, 1]} : vector<2x128xf32> to vector<2x32xf32>
    %c0_435 = arith.constant 0 : index
    %c0_436 = arith.constant 0 : index
    %c0_437 = arith.constant 0 : index
    %591 = vector.load %arg10[%c0_435, %c0_436, %c0_437] : memref<2x2x32xf32, #tpu.memory_space<vmem>>, vector<1x2x32xf32>
    %592 = vector.shape_cast %591 : vector<1x2x32xf32> to vector<2x32xf32>
    %593 = arith.mulf %588, %592 : vector<2x32xf32>
    %594 = arith.mulf %587, %589 : vector<2x32xf32>
    %595 = arith.addf %593, %594 : vector<2x32xf32>
    %596 = math.tanh %595 : vector<2x32xf32>
    %597 = arith.mulf %590, %596 : vector<2x32xf32>
    %c0_438 = arith.constant 0 : index
    %c0_439 = arith.constant 0 : index
    %c0_440 = arith.constant 0 : index
    %598 = vector.load %arg9[%c0_438, %c0_439, %c0_440] : memref<2x2x32xf32, #tpu.memory_space<vmem>>, vector<1x2x32xf32>
    %599 = vector.shape_cast %598 : vector<1x2x32xf32> to vector<2x32xf32>
    %600 = vector.shape_cast %597 : vector<2x32xf32> to vector<1x2x32xf32>
    tpu.vector_store %arg9[%c0_438, %c0_439, %c0_440], %600 {strides = array<i32>} : memref<2x2x32xf32, #tpu.memory_space<vmem>>, vector<1x2x32xf32>,
    %c0_441 = arith.constant 0 : index
    %c0_442 = arith.constant 0 : index
    %c0_443 = arith.constant 0 : index
    %601 = vector.load %arg10[%c0_441, %c0_442, %c0_443] : memref<2x2x32xf32, #tpu.memory_space<vmem>>, vector<1x2x32xf32>
    %602 = vector.shape_cast %601 : vector<1x2x32xf32> to vector<2x32xf32>
    %603 = vector.shape_cast %595 : vector<2x32xf32> to vector<1x2x32xf32>
    tpu.vector_store %arg10[%c0_441, %c0_442, %c0_443], %603 {strides = array<i32>} : memref<2x2x32xf32, #tpu.memory_space<vmem>>, vector<1x2x32xf32>,
    %c0_444 = arith.constant 0 : index
    %c0_445 = arith.constant 0 : index
    %604 = vector.load %arg11[%c0_444, %c0_445] : memref<2x64xf32, #tpu.memory_space<vmem>>, vector<2x32xf32>
    tpu.vector_store %arg11[%c0_444, %c0_445], %597 {strides = array<i32>} : memref<2x64xf32, #tpu.memory_space<vmem>>, vector<2x32xf32>,
    %c1_446 = arith.constant 1 : index
    %c0_447 = arith.constant 0 : index
    %c0_448 = arith.constant 0 : index
    %605 = vector.load %arg9[%c1_446, %c0_447, %c0_448] : memref<2x2x32xf32, #tpu.memory_space<vmem>>, vector<1x2x32xf32>
    %606 = vector.shape_cast %605 : vector<1x2x32xf32> to vector<2x32xf32>
    %c0_449 = arith.constant 0 : index
    %c32_450 = arith.constant 32 : index
    %607 = vector.load %arg11[%c0_449, %c32_450] : memref<2x64xf32, #tpu.memory_space<vmem>>, vector<2x32xf32>
    tpu.vector_store %arg11[%c0_449, %c32_450], %606 {strides = array<i32>} : memref<2x64xf32, #tpu.memory_space<vmem>>, vector<2x32xf32>,
    %c0_451 = arith.constant 0 : index
    %c0_452 = arith.constant 0 : index
    %608 = vector.load %arg11[%c0_451, %c0_452] : memref<2x64xf32, #tpu.memory_space<vmem>>, vector<2x64xf32>
    %c1_453 = arith.constant 1 : index
    %c0_454 = arith.constant 0 : index
    %c0_455 = arith.constant 0 : index
    %609 = vector.load %arg4[%c1_453, %c0_454, %c0_455] : memref<2x64x128xf32, #tpu.memory_space<vmem>>, vector<1x64x128xf32>
    %610 = vector.shape_cast %609 : vector<1x64x128xf32> to vector<64x128xf32>
    %cst_456 = arith.constant dense<0.000000e+00> : vector<2x128xf32>
    %611 = tpu.matmul %608, %610, %cst_456 {dimension_numbers = #tpu.dot_dimension_numbers<[1], [0], [0], [1], [0, 0, 1, 1], [], []>} : vector<2x64xf32>, vector<64x128xf32>, vector<2x128xf32> -> vector<2x128xf32>
    %c1_457 = arith.constant 1 : index
    %c0_458 = arith.constant 0 : index
    %c0_459 = arith.constant 0 : index
    %612 = vector.load %arg5[%c1_457, %c0_458, %c0_459] : memref<2x1x128xf32, #tpu.memory_space<vmem>>, vector<1x1x128xf32>
    %613 = vector.shape_cast %612 : vector<1x1x128xf32> to vector<1x128xf32>
    %614 = vector.broadcast %613 : vector<1x128xf32> to vector<2x128xf32>
    %615 = arith.addf %611, %614 : vector<2x128xf32>
    %616 = arith.negf %615 : vector<2x128xf32>
    %617 = math.exp %616 : vector<2x128xf32>
    %cst_460 = arith.constant 1.000000e+00 : f32
    %618 = vector.broadcast %cst_460 : f32 to vector<2x128xf32>
    %619 = arith.addf %618, %617 : vector<2x128xf32>
    %620 = arith.divf %618, %619 : vector<2x128xf32>
    %621 = math.tanh %615 : vector<2x128xf32>
    %622 = vector.extract_strided_slice %620 {offsets = [0, 0], sizes = [2, 32], strides = [1, 1]} : vector<2x128xf32> to vector<2x32xf32>
    %623 = vector.extract_strided_slice %620 {offsets = [0, 32], sizes = [2, 32], strides = [1, 1]} : vector<2x128xf32> to vector<2x32xf32>
    %624 = vector.extract_strided_slice %621 {offsets = [0, 64], sizes = [2, 32], strides = [1, 1]} : vector<2x128xf32> to vector<2x32xf32>
    %625 = vector.extract_strided_slice %620 {offsets = [0, 96], sizes = [2, 32], strides = [1, 1]} : vector<2x128xf32> to vector<2x32xf32>
    %c1_461 = arith.constant 1 : index
    %c0_462 = arith.constant 0 : index
    %c0_463 = arith.constant 0 : index
    %626 = vector.load %arg10[%c1_461, %c0_462, %c0_463] : memref<2x2x32xf32, #tpu.memory_space<vmem>>, vector<1x2x32xf32>
    %627 = vector.shape_cast %626 : vector<1x2x32xf32> to vector<2x32xf32>
    %628 = arith.mulf %623, %627 : vector<2x32xf32>
    %629 = arith.mulf %622, %624 : vector<2x32xf32>
    %630 = arith.addf %628, %629 : vector<2x32xf32>
    %631 = math.tanh %630 : vector<2x32xf32>
    %632 = arith.mulf %625, %631 : vector<2x32xf32>
    %c1_464 = arith.constant 1 : index
    %c0_465 = arith.constant 0 : index
    %c0_466 = arith.constant 0 : index
    %633 = vector.load %arg9[%c1_464, %c0_465, %c0_466] : memref<2x2x32xf32, #tpu.memory_space<vmem>>, vector<1x2x32xf32>
    %634 = vector.shape_cast %633 : vector<1x2x32xf32> to vector<2x32xf32>
    %635 = vector.shape_cast %632 : vector<2x32xf32> to vector<1x2x32xf32>
    tpu.vector_store %arg9[%c1_464, %c0_465, %c0_466], %635 {strides = array<i32>} : memref<2x2x32xf32, #tpu.memory_space<vmem>>, vector<1x2x32xf32>,
    %c1_467 = arith.constant 1 : index
    %c0_468 = arith.constant 0 : index
    %c0_469 = arith.constant 0 : index
    %636 = vector.load %arg10[%c1_467, %c0_468, %c0_469] : memref<2x2x32xf32, #tpu.memory_space<vmem>>, vector<1x2x32xf32>
    %637 = vector.shape_cast %636 : vector<1x2x32xf32> to vector<2x32xf32>
    %638 = vector.shape_cast %630 : vector<2x32xf32> to vector<1x2x32xf32>
    tpu.vector_store %arg10[%c1_467, %c0_468, %c0_469], %638 {strides = array<i32>} : memref<2x2x32xf32, #tpu.memory_space<vmem>>, vector<1x2x32xf32>,
    %c0_470 = arith.constant 0 : index
    %c0_471 = arith.constant 0 : index
    %639 = vector.load %arg6[%c0_470, %c0_471] : memref<32x128xf32, #tpu.memory_space<vmem>>, vector<32x128xf32>
    %cst_472 = arith.constant dense<0.000000e+00> : vector<2x128xf32>
    %640 = tpu.matmul %632, %639, %cst_472 {dimension_numbers = #tpu.dot_dimension_numbers<[1], [0], [0], [1], [0, 0, 1, 1], [], []>} : vector<2x32xf32>, vector<32x128xf32>, vector<2x128xf32> -> vector<2x128xf32>
    %c0_473 = arith.constant 0 : index
    %c0_474 = arith.constant 0 : index
    %641 = vector.load %arg7[%c0_473, %c0_474] : memref<1x128xf32, #tpu.memory_space<vmem>>, vector<1x128xf32>
    %642 = vector.broadcast %641 : vector<1x128xf32> to vector<2x128xf32>
    %643 = arith.addf %640, %642 : vector<2x128xf32>
    %644 = arith.index_cast %c6_i32 : i32 to index
    %c0_475 = arith.constant 0 : index
    %c0_476 = arith.constant 0 : index
    %645 = vector.load %arg8[%644, %c0_475, %c0_476] : memref<8x2x128xf32, #tpu.memory_space<vmem>>, vector<1x2x128xf32>
    %646 = vector.shape_cast %645 : vector<1x2x128xf32> to vector<2x128xf32>
    %647 = vector.shape_cast %643 : vector<2x128xf32> to vector<1x2x128xf32>
    tpu.vector_store %arg8[%644, %c0_475, %c0_476], %647 {strides = array<i32>} : memref<8x2x128xf32, #tpu.memory_space<vmem>>, vector<1x2x128xf32>,
    %c7_i32 = arith.constant 7 : i32
    %c2_i32_477 = arith.constant 2 : i32
    %648 = arith.muli %c7_i32, %c2_i32_477 : i32
    %c0_i32_478 = arith.constant 0 : i32
    %649 = arith.addi %648, %c0_i32_478 : i32
    %650 = arith.index_cast %649 : i32 to index
    %651 = memref.load %arg0[%650] : memref<16xi32, #tpu.memory_space<smem>>
    %652 = arith.index_cast %651 : i32 to index
    %c0_479 = arith.constant 0 : index
    %653 = vector.load %arg1[%652, %c0_479] : memref<50x32xf32, #tpu.memory_space<vmem>>, vector<1x32xf32>
    %c0_480 = arith.constant 0 : index
    %c0_481 = arith.constant 0 : index
    %654 = vector.load %arg11[%c0_480, %c0_481] : memref<2x64xf32, #tpu.memory_space<vmem>>, vector<1x32xf32>
    tpu.vector_store %arg11[%c0_480, %c0_481], %653 {strides = array<i32>} : memref<2x64xf32, #tpu.memory_space<vmem>>, vector<1x32xf32>,
    %c2_i32_482 = arith.constant 2 : i32
    %655 = arith.muli %c7_i32, %c2_i32_482 : i32
    %c1_i32_483 = arith.constant 1 : i32
    %656 = arith.addi %655, %c1_i32_483 : i32
    %657 = arith.index_cast %656 : i32 to index
    %658 = memref.load %arg0[%657] : memref<16xi32, #tpu.memory_space<smem>>
    %659 = arith.index_cast %658 : i32 to index
    %c0_484 = arith.constant 0 : index
    %660 = vector.load %arg1[%659, %c0_484] : memref<50x32xf32, #tpu.memory_space<vmem>>, vector<1x32xf32>
    %c1_485 = arith.constant 1 : index
    %c0_486 = arith.constant 0 : index
    %661 = vector.load %arg11[%c1_485, %c0_486] : memref<2x64xf32, #tpu.memory_space<vmem>>, vector<1x32xf32>
    tpu.vector_store %arg11[%c1_485, %c0_486], %660 {strides = array<i32>} : memref<2x64xf32, #tpu.memory_space<vmem>>, vector<1x32xf32>,
    %c0_487 = arith.constant 0 : index
    %c0_488 = arith.constant 0 : index
    %c0_489 = arith.constant 0 : index
    %662 = vector.load %arg9[%c0_487, %c0_488, %c0_489] : memref<2x2x32xf32, #tpu.memory_space<vmem>>, vector<1x2x32xf32>
    %663 = vector.shape_cast %662 : vector<1x2x32xf32> to vector<2x32xf32>
    %c0_490 = arith.constant 0 : index
    %c32_491 = arith.constant 32 : index
    %664 = vector.load %arg11[%c0_490, %c32_491] : memref<2x64xf32, #tpu.memory_space<vmem>>, vector<2x32xf32>
    tpu.vector_store %arg11[%c0_490, %c32_491], %663 {strides = array<i32>} : memref<2x64xf32, #tpu.memory_space<vmem>>, vector<2x32xf32>,
    %c0_492 = arith.constant 0 : index
    %c0_493 = arith.constant 0 : index
    %665 = vector.load %arg11[%c0_492, %c0_493] : memref<2x64xf32, #tpu.memory_space<vmem>>, vector<2x64xf32>
    %c0_494 = arith.constant 0 : index
    %c0_495 = arith.constant 0 : index
    %c0_496 = arith.constant 0 : index
    %666 = vector.load %arg4[%c0_494, %c0_495, %c0_496] : memref<2x64x128xf32, #tpu.memory_space<vmem>>, vector<1x64x128xf32>
    %667 = vector.shape_cast %666 : vector<1x64x128xf32> to vector<64x128xf32>
    %cst_497 = arith.constant dense<0.000000e+00> : vector<2x128xf32>
    %668 = tpu.matmul %665, %667, %cst_497 {dimension_numbers = #tpu.dot_dimension_numbers<[1], [0], [0], [1], [0, 0, 1, 1], [], []>} : vector<2x64xf32>, vector<64x128xf32>, vector<2x128xf32> -> vector<2x128xf32>
    %c0_498 = arith.constant 0 : index
    %c0_499 = arith.constant 0 : index
    %c0_500 = arith.constant 0 : index
    %669 = vector.load %arg5[%c0_498, %c0_499, %c0_500] : memref<2x1x128xf32, #tpu.memory_space<vmem>>, vector<1x1x128xf32>
    %670 = vector.shape_cast %669 : vector<1x1x128xf32> to vector<1x128xf32>
    %671 = vector.broadcast %670 : vector<1x128xf32> to vector<2x128xf32>
    %672 = arith.addf %668, %671 : vector<2x128xf32>
    %673 = arith.negf %672 : vector<2x128xf32>
    %674 = math.exp %673 : vector<2x128xf32>
    %cst_501 = arith.constant 1.000000e+00 : f32
    %675 = vector.broadcast %cst_501 : f32 to vector<2x128xf32>
    %676 = arith.addf %675, %674 : vector<2x128xf32>
    %677 = arith.divf %675, %676 : vector<2x128xf32>
    %678 = math.tanh %672 : vector<2x128xf32>
    %679 = vector.extract_strided_slice %677 {offsets = [0, 0], sizes = [2, 32], strides = [1, 1]} : vector<2x128xf32> to vector<2x32xf32>
    %680 = vector.extract_strided_slice %677 {offsets = [0, 32], sizes = [2, 32], strides = [1, 1]} : vector<2x128xf32> to vector<2x32xf32>
    %681 = vector.extract_strided_slice %678 {offsets = [0, 64], sizes = [2, 32], strides = [1, 1]} : vector<2x128xf32> to vector<2x32xf32>
    %682 = vector.extract_strided_slice %677 {offsets = [0, 96], sizes = [2, 32], strides = [1, 1]} : vector<2x128xf32> to vector<2x32xf32>
    %c0_502 = arith.constant 0 : index
    %c0_503 = arith.constant 0 : index
    %c0_504 = arith.constant 0 : index
    %683 = vector.load %arg10[%c0_502, %c0_503, %c0_504] : memref<2x2x32xf32, #tpu.memory_space<vmem>>, vector<1x2x32xf32>
    %684 = vector.shape_cast %683 : vector<1x2x32xf32> to vector<2x32xf32>
    %685 = arith.mulf %680, %684 : vector<2x32xf32>
    %686 = arith.mulf %679, %681 : vector<2x32xf32>
    %687 = arith.addf %685, %686 : vector<2x32xf32>
    %688 = math.tanh %687 : vector<2x32xf32>
    %689 = arith.mulf %682, %688 : vector<2x32xf32>
    %c0_505 = arith.constant 0 : index
    %c0_506 = arith.constant 0 : index
    %c0_507 = arith.constant 0 : index
    %690 = vector.load %arg9[%c0_505, %c0_506, %c0_507] : memref<2x2x32xf32, #tpu.memory_space<vmem>>, vector<1x2x32xf32>
    %691 = vector.shape_cast %690 : vector<1x2x32xf32> to vector<2x32xf32>
    %692 = vector.shape_cast %689 : vector<2x32xf32> to vector<1x2x32xf32>
    tpu.vector_store %arg9[%c0_505, %c0_506, %c0_507], %692 {strides = array<i32>} : memref<2x2x32xf32, #tpu.memory_space<vmem>>, vector<1x2x32xf32>,
    %c0_508 = arith.constant 0 : index
    %c0_509 = arith.constant 0 : index
    %c0_510 = arith.constant 0 : index
    %693 = vector.load %arg10[%c0_508, %c0_509, %c0_510] : memref<2x2x32xf32, #tpu.memory_space<vmem>>, vector<1x2x32xf32>
    %694 = vector.shape_cast %693 : vector<1x2x32xf32> to vector<2x32xf32>
    %695 = vector.shape_cast %687 : vector<2x32xf32> to vector<1x2x32xf32>
    tpu.vector_store %arg10[%c0_508, %c0_509, %c0_510], %695 {strides = array<i32>} : memref<2x2x32xf32, #tpu.memory_space<vmem>>, vector<1x2x32xf32>,
    %c0_511 = arith.constant 0 : index
    %c0_512 = arith.constant 0 : index
    %696 = vector.load %arg11[%c0_511, %c0_512] : memref<2x64xf32, #tpu.memory_space<vmem>>, vector<2x32xf32>
    tpu.vector_store %arg11[%c0_511, %c0_512], %689 {strides = array<i32>} : memref<2x64xf32, #tpu.memory_space<vmem>>, vector<2x32xf32>,
    %c1_513 = arith.constant 1 : index
    %c0_514 = arith.constant 0 : index
    %c0_515 = arith.constant 0 : index
    %697 = vector.load %arg9[%c1_513, %c0_514, %c0_515] : memref<2x2x32xf32, #tpu.memory_space<vmem>>, vector<1x2x32xf32>
    %698 = vector.shape_cast %697 : vector<1x2x32xf32> to vector<2x32xf32>
    %c0_516 = arith.constant 0 : index
    %c32_517 = arith.constant 32 : index
    %699 = vector.load %arg11[%c0_516, %c32_517] : memref<2x64xf32, #tpu.memory_space<vmem>>, vector<2x32xf32>
    tpu.vector_store %arg11[%c0_516, %c32_517], %698 {strides = array<i32>} : memref<2x64xf32, #tpu.memory_space<vmem>>, vector<2x32xf32>,
    %c0_518 = arith.constant 0 : index
    %c0_519 = arith.constant 0 : index
    %700 = vector.load %arg11[%c0_518, %c0_519] : memref<2x64xf32, #tpu.memory_space<vmem>>, vector<2x64xf32>
    %c1_520 = arith.constant 1 : index
    %c0_521 = arith.constant 0 : index
    %c0_522 = arith.constant 0 : index
    %701 = vector.load %arg4[%c1_520, %c0_521, %c0_522] : memref<2x64x128xf32, #tpu.memory_space<vmem>>, vector<1x64x128xf32>
    %702 = vector.shape_cast %701 : vector<1x64x128xf32> to vector<64x128xf32>
    %cst_523 = arith.constant dense<0.000000e+00> : vector<2x128xf32>
    %703 = tpu.matmul %700, %702, %cst_523 {dimension_numbers = #tpu.dot_dimension_numbers<[1], [0], [0], [1], [0, 0, 1, 1], [], []>} : vector<2x64xf32>, vector<64x128xf32>, vector<2x128xf32> -> vector<2x128xf32>
    %c1_524 = arith.constant 1 : index
    %c0_525 = arith.constant 0 : index
    %c0_526 = arith.constant 0 : index
    %704 = vector.load %arg5[%c1_524, %c0_525, %c0_526] : memref<2x1x128xf32, #tpu.memory_space<vmem>>, vector<1x1x128xf32>
    %705 = vector.shape_cast %704 : vector<1x1x128xf32> to vector<1x128xf32>
    %706 = vector.broadcast %705 : vector<1x128xf32> to vector<2x128xf32>
    %707 = arith.addf %703, %706 : vector<2x128xf32>
    %708 = arith.negf %707 : vector<2x128xf32>
    %709 = math.exp %708 : vector<2x128xf32>
    %cst_527 = arith.constant 1.000000e+00 : f32
    %710 = vector.broadcast %cst_527 : f32 to vector<2x128xf32>
    %711 = arith.addf %710, %709 : vector<2x128xf32>
    %712 = arith.divf %710, %711 : vector<2x128xf32>
    %713 = math.tanh %707 : vector<2x128xf32>
    %714 = vector.extract_strided_slice %712 {offsets = [0, 0], sizes = [2, 32], strides = [1, 1]} : vector<2x128xf32> to vector<2x32xf32>
    %715 = vector.extract_strided_slice %712 {offsets = [0, 32], sizes = [2, 32], strides = [1, 1]} : vector<2x128xf32> to vector<2x32xf32>
    %716 = vector.extract_strided_slice %713 {offsets = [0, 64], sizes = [2, 32], strides = [1, 1]} : vector<2x128xf32> to vector<2x32xf32>
    %717 = vector.extract_strided_slice %712 {offsets = [0, 96], sizes = [2, 32], strides = [1, 1]} : vector<2x128xf32> to vector<2x32xf32>
    %c1_528 = arith.constant 1 : index
    %c0_529 = arith.constant 0 : index
    %c0_530 = arith.constant 0 : index
    %718 = vector.load %arg10[%c1_528, %c0_529, %c0_530] : memref<2x2x32xf32, #tpu.memory_space<vmem>>, vector<1x2x32xf32>
    %719 = vector.shape_cast %718 : vector<1x2x32xf32> to vector<2x32xf32>
    %720 = arith.mulf %715, %719 : vector<2x32xf32>
    %721 = arith.mulf %714, %716 : vector<2x32xf32>
    %722 = arith.addf %720, %721 : vector<2x32xf32>
    %723 = math.tanh %722 : vector<2x32xf32>
    %724 = arith.mulf %717, %723 : vector<2x32xf32>
    %c1_531 = arith.constant 1 : index
    %c0_532 = arith.constant 0 : index
    %c0_533 = arith.constant 0 : index
    %725 = vector.load %arg9[%c1_531, %c0_532, %c0_533] : memref<2x2x32xf32, #tpu.memory_space<vmem>>, vector<1x2x32xf32>
    %726 = vector.shape_cast %725 : vector<1x2x32xf32> to vector<2x32xf32>
    %727 = vector.shape_cast %724 : vector<2x32xf32> to vector<1x2x32xf32>
    tpu.vector_store %arg9[%c1_531, %c0_532, %c0_533], %727 {strides = array<i32>} : memref<2x2x32xf32, #tpu.memory_space<vmem>>, vector<1x2x32xf32>,
    %c1_534 = arith.constant 1 : index
    %c0_535 = arith.constant 0 : index
    %c0_536 = arith.constant 0 : index
    %728 = vector.load %arg10[%c1_534, %c0_535, %c0_536] : memref<2x2x32xf32, #tpu.memory_space<vmem>>, vector<1x2x32xf32>
    %729 = vector.shape_cast %728 : vector<1x2x32xf32> to vector<2x32xf32>
    %730 = vector.shape_cast %722 : vector<2x32xf32> to vector<1x2x32xf32>
    tpu.vector_store %arg10[%c1_534, %c0_535, %c0_536], %730 {strides = array<i32>} : memref<2x2x32xf32, #tpu.memory_space<vmem>>, vector<1x2x32xf32>,
    %c0_537 = arith.constant 0 : index
    %c0_538 = arith.constant 0 : index
    %731 = vector.load %arg6[%c0_537, %c0_538] : memref<32x128xf32, #tpu.memory_space<vmem>>, vector<32x128xf32>
    %cst_539 = arith.constant dense<0.000000e+00> : vector<2x128xf32>
    %732 = tpu.matmul %724, %731, %cst_539 {dimension_numbers = #tpu.dot_dimension_numbers<[1], [0], [0], [1], [0, 0, 1, 1], [], []>} : vector<2x32xf32>, vector<32x128xf32>, vector<2x128xf32> -> vector<2x128xf32>
    %c0_540 = arith.constant 0 : index
    %c0_541 = arith.constant 0 : index
    %733 = vector.load %arg7[%c0_540, %c0_541] : memref<1x128xf32, #tpu.memory_space<vmem>>, vector<1x128xf32>
    %734 = vector.broadcast %733 : vector<1x128xf32> to vector<2x128xf32>
    %735 = arith.addf %732, %734 : vector<2x128xf32>
    %736 = arith.index_cast %c7_i32 : i32 to index
    %c0_542 = arith.constant 0 : index
    %c0_543 = arith.constant 0 : index
    %737 = vector.load %arg8[%736, %c0_542, %c0_543] : memref<8x2x128xf32, #tpu.memory_space<vmem>>, vector<1x2x128xf32>
    %738 = vector.shape_cast %737 : vector<1x2x128xf32> to vector<2x128xf32>
    %739 = vector.shape_cast %735 : vector<2x128xf32> to vector<1x2x128xf32>
    tpu.vector_store %arg8[%736, %c0_542, %c0_543], %739 {strides = array<i32>} : memref<8x2x128xf32, #tpu.memory_space<vmem>>, vector<1x2x128xf32>,
    %c8_i32 = arith.constant 8 : i32
    return
  }
}

</mosaic_0001>

<bundles_post_ra>
// kernel: rnn_forward_seq.1
= control target key start
LH: loop header
LB: loop body
LE: loop exit
PB: predicated region body
PF: predicated region fallthrough
CT: control target
= control target key end

     0   :  { %16 = vsyncpa [#allocation6], 0  ;;  %s3128_s0 = inlined_call_operand.vmem [shape: s32[16], index: 0, kind: input, shape index: {}]   ;;  %s3129_s1 = inlined_call_operand.vmem [shape: f32[50,32], index: 1, kind: input, shape index: {}]   ;;  %s3130_s2 = inlined_call_operand.vmem [shape: f32[2,2,32], index: 2, kind: input, shape index: {}, may-alias: {2,9}]   ;;  %s3131_s3 = inlined_call_operand.vmem [shape: f32[2,2,32], index: 3, kind: input, shape index: {}, may-alias: {3,10}]   ;;  %s3132_s4 = inlined_call_operand.hbm [shape: f32[2,64,128], index: 4, kind: input, shape index: {}]   ;;  %s3133_s5 = inlined_call_operand.vmem [shape: f32[2,1,128], index: 5, kind: input, shape index: {}]   ;;  %s3134_s6 = inlined_call_operand.vmem [shape: f32[32,128], index: 6, kind: input, shape index: {}]   ;;  %s3135_s7 = inlined_call_operand.vmem [shape: f32[1,128], index: 7, kind: input, shape index: {}]   ;;  %s3136_s8 = inlined_call_operand.hbm [shape: f32[8,2,128], index: 8, kind: output, shape index: {0}]   ;;  %s3137_s9 = inlined_call_operand.vmem [shape: f32[2,2,32], index: 9, kind: output, shape index: {1}, may-alias: {2,9}]   ;;  %s3138_s10 = inlined_call_operand.vmem [shape: f32[2,2,32], index: 10, kind: output, shape index: {2}, may-alias: {3,10}]  }
   0x1   :  { %17 = vsyncpa [#allocation4], 0 }
   0x2   :  { %18 = vsyncpa [#allocation5], 0  ;;  %s24_s15 = sshll.u32 %s3128_s0, 4  ;;  %s38_s18 = sshll.u32 %s3132_s4, 4  ;;  %s25_s15 = int_to_ptr.vmem [resolvable:$true] %s24_s15  ;;  %s39_s18 = int_to_ptr.hbm [resolvable:$true] %s38_s18 }
   0x3   :  { %s2276_s19 = smov [#allocation3]   ;;  %s2277_s20 = smov [#allocation7]  }
   0x4   :  { %27 = dma.vmem_to_smem %s25_s15, 16, %s2276_s19, [#allocation6]  }
   0x5   :  { %s40_s21 = sshll.u32 %s2277_s20, 4  ;;  %s2278_s22 = smov 128   ;;  %s41_s21 = int_to_ptr.vmem [resolvable:$true] %s40_s21 }
   0x6   :  { %s2279_s23 = smov 8  }
   0x7   :  { %46 = dma.hbm_to_vmem [thread:$0]  %s39_s18, 2048, %s41_s21, [#allocation4], %s2278_s22, %s2278_s22, %s2279_s23  }
   0x8   :  { %2270 = dma.done.wait [#allocation6], 16  }
   0x9   :  { %2271 = vsyncadd [#allocation6], 4294967280 }
   0xa   :  { %2272 = dma.done.wait [#allocation4], 2048  }
   0xb   :  { %2273 = vsyncadd [#allocation4], 4294965248 }
   0xc   :  { %61 = sfence }
   0xd   :  { %v62_v0 = vld [vmem:[%s3130_s2] sm:$0x3]  ;;  %vm64_vm0 = vcmask 254976   ;;  %v2351_v2 = vld [vmem:[#allocation7 + $0x30] sm:$0xff]  ;;  %v2358_v3 = vld [vmem:[#allocation7 + $0x28] sm:$0xff]  ;;  %s71_s26 = sld [smem:[#allocation3]] }
   0xe   :  { %v2349_v1 = vld [vmem:[#allocation7 + $0x38] sm:$0xff]  ;;  %65 = vst.msk [vmem:[%s3137_s9] sm:$0x3] %vm64_vm0, %v62_v0  ;;  %v2361_v4 = vld [vmem:[#allocation7 + $0x20] sm:$0xff]  ;;  %vm74_vm1 = vcmask 253952   ;;  %s1954_s27 = sld [smem:[#allocation3 + $0x1]] }
   0xf   :  { %112 = vmatpush.msra.mxu0 %v2349_v1  ;;  %345 = vmatpush.msra.mxu3 %v2349_v1  ;;  %s2280_s16 = smov 32   ;;  %v2381_v8 = vld [vmem:[#allocation7 + $0x18] sm:$0xff]  ;;  %v2385_v9 = vld [vmem:[#allocation7 + $0x10] sm:$0xff]  ;;  %v2389_v10 = vld [vmem:[#allocation7 + $0x8] sm:$0xff]  ;;  %vm85_vm2 = vcmask 517376   ;;  %vm100_vm3 = vcmask 523264  }
  0x10   :  { %v2393_v11 = vld [vmem:[#allocation7] sm:$0xff]  ;;  %v67_v12 = vld [vmem:[%s3131_s3] sm:$0x3]  ;;  %s2281_s24 = smov 64   ;;  %v2430_v43 = vld [vmem:[#allocation7 + $0x70] sm:$0xff]  ;;  %s1966_s17 = sld [smem:[#allocation3 + $0x3]] }
  0x11   :  { %113 = vmatpush.msra.mxu0 %v2351_v2  ;;  %346 = vmatpush.msra.mxu3 %v2351_v2  ;;  %69 = vst.msk [vmem:[%s3138_s10] sm:$0x3] %vm64_vm0, %v67_v12  ;;  %v2058_v16 = vld [vmem:[%s3133_s5] ss:$0 sm:$0xff]  ;;  %v2433_v44 = vld [vmem:[#allocation7 + $0x68] sm:$0xff]  ;;  %v2442_v49 = vld [vmem:[#allocation7 + $0x60] sm:$0xff] }
  0x12   :  { %v2428_v42 = vld [vmem:[#allocation7 + $0x78] sm:$0xff]  ;;  %v2448_v51 = vld [vmem:[#allocation7 + $0x50] sm:$0xff]  ;;  %v2451_v52 = vld [vmem:[#allocation7 + $0x48] sm:$0xff]  ;;  %s1990_s18 = sld [smem:[#allocation3 + $0x7]] }
  0x13   :  { %114 = vmatpush.msra.mxu0 %v2358_v3  ;;  %347 = vmatpush.msra.mxu3 %v2358_v3  ;;  %s72_s30 = scalar_lea.vmem %s3129_s1, %s71_s26  ;;  %v2445_v50 = vld [vmem:[#allocation7 + $0x58] sm:$0xff]  ;;  %v2454_v53 = vld [vmem:[#allocation7 + $0x40] sm:$0xff]  ;;  %s1977_s26 = sld [smem:[#allocation3 + $0x4]] }
  0x14   :  { %v73_v6 = vld [vmem:[%s72_s30] sm:$0x1]  ;;  %s77_s15 = scalar_lea.vmem %s3129_s1, %s1954_s27  ;;  %210 = vmatpush.msra.mxu1 %v2428_v42  ;;  %v2059_v0 = vld [vmem:[%s3133_s5 + $0x1] ss:$0 sm:$0xff]  ;;  %s1978_s27 = sld [smem:[#allocation3 + $0x5]] }
  0x15   :  { %115 = vmatpush.msra.mxu0 %v2361_v4  ;;  %348 = vmatpush.msra.mxu3 %v2361_v4  ;;  %v80_v5 = vld [vmem:[%s3137_s9] sm:$0x3]  ;;  %75 = vst.msk [vmem:[#allocation2] sm:$0x1] %vm74_vm1, %v73_v6  ;;  %v63_v23 = vld [vmem:[%s3130_s2 + $0x2] sm:$0x3] }
  0x16   :  { %82 = vrot.lane.b32.xlu0 %v80_v5, %s2280_s16  ;;  %v78_v7 = vld [vmem:[%s77_s15] sm:$0x1]  ;;  %66 = vst.msk [vmem:[%s3137_s9 + $0x2] sm:$0x3] %vm64_vm0, %v63_v23  ;;  %s2282_s2 = smov 96   ;;  %211 = vmatpush.msra.mxu1 %v2430_v43  ;;  %s312_s4 = scalar_lea.vmem %s3129_s1, %s1966_s17 }
  0x17   :  { %79 = vst.msk [vmem:[#allocation2 + $0x1] sm:$0x1] %vm74_vm1, %v78_v7  ;;  %116 = vmatpush.msra.mxu0 %v2381_v8  ;;  %349 = vmatpush.msra.mxu3 %v2381_v8  ;;  %v313_v58 = vld [vmem:[%s312_s4] sm:$0x1]  ;;  %s2001_s25 = sld [smem:[#allocation3 + $0x8]] }
  0x18   :  { %v144_v13 = vld [vmem:[%s3138_s10] sm:$0x3]  ;;  %212 = vmatpush.msra.mxu1 %v2433_v44  ;;  %s2013_s12 = sld [smem:[#allocation3 + $0xa]] }
  0x19   :  { %117 = vmatpush.msra.mxu0 %v2385_v9  ;;  %350 = vmatpush.msra.mxu3 %v2385_v9  ;;  %s537_s14 = scalar_lea.vmem %s3129_s1, %s1977_s26  ;;  %s2002_s26 = sld [smem:[#allocation3 + $0x9]] }
  0x1a   :  { %146 = vrot.lane.b32.xlu1 %v144_v13, %s2280_s16  ;;  %213 = vmatpush.msra.mxu1 %v2442_v49  ;;  %s541_s17 = scalar_lea.vmem %s3129_s1, %s1978_s27  ;;  %s770_s27 = scalar_lea.vmem %s3129_s1, %s1990_s18 }
  0x1b   :  { %118 = vmatpush.msra.mxu0 %v2389_v10  ;;  %351 = vmatpush.msra.mxu3 %v2389_v10  ;;  %s2025_s15 = sld [smem:[#allocation3 + $0xc]] }
  0x1c   :  { %214 = vmatpush.msra.mxu1 %v2445_v50  ;;  %s2038_s18 = sld [smem:[#allocation3 + $0xf]] }
  0x1d   :  { %119 = vmatpush.msra.mxu0 %v2393_v11  ;;  %352 = vmatpush.msra.mxu3 %v2393_v11  ;;  %v1957_v25 = vld [vmem:[%s3137_s9 + $0x2] sm:$0x3]  ;;  %s995_s13 = scalar_lea.vmem %s3129_s1, %s2001_s25 }
  0x1e   :  { %215 = vmatpush.msra.mxu1 %v2448_v51  ;;  %s1224_s20 = scalar_lea.vmem %s3129_s1, %s2013_s12 }
  0x20   :  { %216 = vmatpush.msra.mxu1 %v2451_v52 }
  0x21   :  { %s1453_s19 = scalar_lea.vmem %s3129_s1, %s2025_s15 }
  0x22   :  { %217 = vmatpush.msra.mxu1 %v2454_v53 }
  0x24   :  { %574 = vmatpush.msrb.mxu1 %v2349_v1 }
  0x26   :  { %575 = vmatpush.msrb.mxu1 %v2351_v2 }
  0x28   :  { %576 = vmatpush.msrb.mxu1 %v2358_v3 }
  0x2a   :  { %577 = vmatpush.msrb.mxu1 %v2361_v4 }
  0x2c   :  { %578 = vmatpush.msrb.mxu1 %v2381_v8 }
  0x2e   :  { %579 = vmatpush.msrb.mxu1 %v2385_v9 }
  0x30   :  { %580 = vmatpush.msrb.mxu1 %v2389_v10 }
  0x32   :  { %581 = vmatpush.msrb.mxu1 %v2393_v11 }
  0x88   :  { %v83_v14 = vpop.permute.xlu0 %82 }
  0x89   :  { %86 = vst.msk [vmem:[#allocation2] sm:$0x3] %vm85_vm2, %v83_v14 }
  0x8c   :  { %v147_v37 = vpop.permute.xlu1 %146 }
  0x90   :  { %v87_v15 = vld [vmem:[#allocation2] sm:$0x3] }
  0x91   :  { %1955 = vmatmul.msk.f32.vlgmr.msra.gmra.mxu0 %vm100_vm3, %v87_v15 }
 0x10e   :  { %v121_v17 = vpop.f32.mrf.mxu0 }
 0x10f   :  { %v122_v18 = vadd.f32 %v2058_v16, %v121_v17 }
 0x111   :  { %2082 = vtanh.f32 %v122_v18  ;;  %v1956_v20 = vmul.f32 -1.442695, %v122_v18 }
 0x113   :  { %2084 = vpow2.f32 %v1956_v20 }
 0x117   :  { %v2083_v19 = vpop.eup %2082 }
 0x118   :  { %151 = vrot.lane.b32.xlu0 %v2083_v19, %s2281_s24 }
 0x119   :  { %v2085_v21 = vpop.eup %2084 }
 0x11a   :  { %v127_v22 = vadd.f32 1.0, %v2085_v21 }
 0x11c   :  { %2086 = vrcp.f32 %v127_v22  ;;  %v139_v30 = vand.u32 2147483648, %v127_v22  ;;  %vm133_vm5 = vweird.f32 %v127_v22  ;;  %v137_v31 = vand.u32 2147483647, %v127_v22 }
 0x11e   :  { %v140_v33 = vor.u32 1.1754944e-38, %v139_v30  ;;  %vm138_vm7 = vcmp.eq.f32.partialorder %v137_v31, 8.507059e+37 }
 0x120   :  { %180 = vrot.lane.b32.xlu0 %v1957_v25, %s2280_s16 }
 0x122   :  { %v2087_v24 = vpop.eup %2086 }
 0x123   :  { %v129_v26 = vmul.f32 %v2087_v24, %v127_v22  ;;  %vm134_vm4 = vweird.f32 %v2087_v24 }
 0x124   :  { %vm135_vm6 = vmor %vm133_vm5, %vm134_vm4  ;;  %vm283_vm4 = vcmask 261120  }
 0x125   :  { %v130_v27 = vsub.f32 1.0, %v129_v26 }
 0x127   :  { %v131_v28 = vmul.f32 %v2087_v24, %v130_v27  ;;  %v2060_v27 = vld [vmem:[%s3133_s5] ss:$0 sm:$0xff] }
 0x129   :  { %v132_v29 = vadd.f32 %v2087_v24, %v131_v28 }
 0x12b   :  { %v136_v32 = vsel %vm135_vm6, %v2087_v24, %v132_v29 }
 0x12c   :  { %v141_v34 = vsel %vm138_vm7, %v140_v33, %v136_v32 }
 0x12d   :  { %v149_v38 = vmul.f32 %v147_v37, %v141_v34 }
 0x18a   :  { %v152_v35 = vpop.permute.xlu0 %151 }
 0x18b   :  { %v154_v36 = vmul.f32 %v152_v35, %v141_v34 }
 0x18d   :  { %156 = vrot.lane.b32.xlu1 %v154_v36, %s2280_s16 }
 0x192   :  { %v181_v47 = vpop.permute.xlu0 %180 }
 0x1ff   :  { %v157_v39 = vpop.permute.xlu1 %156 }
 0x200   :  { %v159_v40 = vadd.f32 %v157_v39, %v149_v38 }
 0x202   :  { %2088 = vtanh.f32 %v159_v40  ;;  %172 = vrot.lane.b32.xlu0 %v159_v40, %s2282_s2 }
 0x208   :  { %v2089_v41 = vpop.eup %2088 }
 0x209   :  { %162 = vrot.lane.b32.xlu2 %v2089_v41, %s2281_s24 }
 0x263   :  { %v163_v45 = vpop.permute.xlu2 %162 }
 0x264   :  { %v165_v46 = vmul.f32 %v163_v45, %v141_v34 }
 0x266   :  { %167 = vrot.lane.b32.xlu2 %v165_v46, %s2280_s16 }
 0x274   :  { %v173_v48 = vpop.permute.xlu0 %172 }
 0x275   :  { %175 = vst.msk [vmem:[%s3138_s10] sm:$0x3] %vm64_vm0, %v173_v48 }
 0x27c   :  { %v68_v54 = vld [vmem:[%s3131_s3 + $0x2] sm:$0x3]  ;;  %s1965_s3 = sld [smem:[#allocation3 + $0x2]]  ;;  %v377_v61 = vld [vmem:[%s3138_s10] sm:$0x3] }
 0x27d   :  { %70 = vst.msk [vmem:[%s3138_s10 + $0x2] sm:$0x3] %vm64_vm0, %v68_v54 }
 0x282   :  { %s308_s22 = scalar_lea.vmem %s3129_s1, %s1965_s3  ;;  %s999_s3 = scalar_lea.vmem %s3129_s1, %s2002_s26 }
 0x283   :  { %v309_v56 = vld [vmem:[%s308_s22] sm:$0x1]  ;;  %s1686_s26 = scalar_lea.vmem %s3129_s1, %s2038_s18  ;;  %s1916_s18 = sshll.u32 %s3136_s8, 4  ;;  %s1917_s18 = int_to_ptr.hbm [resolvable:$true] %s1916_s18 }
 0x284   :  { %v1961_v60 = vld [vmem:[%s3138_s10 + $0x2] sm:$0x3] }
 0x2c0   :  { %v168_v55 = vpop.permute.xlu2 %167 }
 0x2c1   :  { %170 = vst.msk [vmem:[%s3137_s9] sm:$0x3] %vm64_vm0, %v168_v55 }
 0x2c2   :  { %176 = vst.msk [vmem:[#allocation2] sm:$0x3] %vm64_vm0, %v168_v55 }
 0x2c3   :  { %183 = vst.msk [vmem:[#allocation2] sm:$0x3] %vm85_vm2, %v181_v47 }
 0x2c8   :  { %v315_v57 = vld [vmem:[%s3137_s9] sm:$0x3] }
 0x2c9   :  { %317 = vrot.lane.b32.xlu1 %v315_v57, %s2280_s16 }
 0x2ca   :  { %v184_v59 = vld [vmem:[#allocation2] sm:$0x3] }
 0x2cb   :  { %310 = vst.msk [vmem:[#allocation2] sm:$0x1] %vm74_vm1, %v309_v56  ;;  %1959 = vmatmul.msk.f32.vlgmr.msra.gmra.mxu1 %vm100_vm3, %v184_v59 }
 0x2cc   :  { %314 = vst.msk [vmem:[#allocation2 + $0x1] sm:$0x1] %vm74_vm1, %v313_v58 }
 0x2d1   :  { %245 = vrot.lane.b32.xlu1 %v1961_v60, %s2280_s16 }
 0x2d9   :  { %379 = vrot.lane.b32.xlu1 %v377_v61, %s2280_s16  ;;  %v278_v61 = vld [vmem:[%s3134_s6 + $0x18] sm:$0xff] }
 0x2da   :  { %298 = vmatpush.msra.mxu2 %v278_v61  ;;  %526 = vmatpush.msrb.mxu3 %v278_v61 }
 0x2db   :  { %755 = vmatpush.msrb.mxu0 %v278_v61  ;;  %984 = vmatpush.msra.mxu1 %v278_v61 }
 0x33b   :  { %v318_v62 = vpop.permute.xlu1 %317 }
 0x33c   :  { %320 = vst.msk [vmem:[#allocation2] sm:$0x3] %vm85_vm2, %v318_v62  ;;  %v277_v62 = vld [vmem:[%s3134_s6 + $0x10] sm:$0xff] }
 0x33d   :  { %299 = vmatpush.msra.mxu2 %v277_v62  ;;  %527 = vmatpush.msrb.mxu3 %v277_v62 }
 0x33e   :  { %756 = vmatpush.msrb.mxu0 %v277_v62  ;;  %985 = vmatpush.msra.mxu1 %v277_v62 }
 0x343   :  { %v321_v63 = vld [vmem:[#allocation2] sm:$0x3]  ;;  %v246_v31 = vpop.permute.xlu1 %245 }
 0x344   :  { %1967 = vmatmul.msk.f32.vlgmr.msra.gmra.mxu3 %vm100_vm3, %v321_v63  ;;  %v276_v63 = vld [vmem:[%s3134_s6 + $0x8] sm:$0xff] }
 0x345   :  { %300 = vmatpush.msra.mxu2 %v276_v63  ;;  %528 = vmatpush.msrb.mxu3 %v276_v63 }
 0x346   :  { %757 = vmatpush.msrb.mxu0 %v276_v63  ;;  %986 = vmatpush.msra.mxu1 %v276_v63 }
 0x348   :  { %v219_v5 = vpop.f32.mrf.mxu1 }
 0x349   :  { %v220_v6 = vadd.f32 %v2059_v0, %v219_v5  ;;  %v275_v0 = vld [vmem:[%s3134_s6] sm:$0xff] }
 0x34a   :  { %301 = vmatpush.msra.mxu2 %v275_v0  ;;  %529 = vmatpush.msrb.mxu3 %v275_v0 }
 0x34b   :  { %2090 = vtanh.f32 %v220_v6  ;;  %v1960_v12 = vmul.f32 -1.442695, %v220_v6  ;;  %758 = vmatpush.msrb.mxu0 %v275_v0  ;;  %987 = vmatpush.msra.mxu1 %v275_v0  ;;  %v542_v6 = vld [vmem:[%s541_s17] sm:$0x1]  ;;  %s1989_s17 = sld [smem:[#allocation3 + $0x6]] }
 0x34c   :  { %440 = vmatpush.msrb.mxu2 %v2428_v42  ;;  %669 = vmatpush.msra.mxu3 %v2428_v42 }
 0x34d   :  { %2092 = vpow2.f32 %v1960_v12  ;;  %898 = vmatpush.msra.mxu0 %v2428_v42  ;;  %v380_v42 = vpop.permute.xlu1 %379 }
 0x34e   :  { %441 = vmatpush.msrb.mxu2 %v2430_v43  ;;  %670 = vmatpush.msra.mxu3 %v2430_v43 }
 0x34f   :  { %899 = vmatpush.msra.mxu0 %v2430_v43 }
 0x350   :  { %442 = vmatpush.msrb.mxu2 %v2433_v44  ;;  %671 = vmatpush.msra.mxu3 %v2433_v44 }
 0x351   :  { %v2091_v7 = vpop.eup %2090  ;;  %900 = vmatpush.msra.mxu0 %v2433_v44  ;;  %s766_s4 = scalar_lea.vmem %s3129_s1, %s1989_s17  ;;  %s2037_s17 = sld [smem:[#allocation3 + $0xe]] }
 0x352   :  { %250 = vrot.lane.b32.xlu2 %v2091_v7, %s2281_s24  ;;  %443 = vmatpush.msrb.mxu2 %v2442_v49 }
 0x353   :  { %v2093_v13 = vpop.eup %2092  ;;  %672 = vmatpush.msra.mxu3 %v2442_v49  ;;  %901 = vmatpush.msra.mxu0 %v2442_v49 }
 0x354   :  { %v225_v14 = vadd.f32 1.0, %v2093_v13  ;;  %444 = vmatpush.msrb.mxu2 %v2445_v50 }
 0x355   :  { %673 = vmatpush.msra.mxu3 %v2445_v50  ;;  %902 = vmatpush.msra.mxu0 %v2445_v50 }
 0x356   :  { %2094 = vrcp.f32 %v225_v14  ;;  %vm231_vm8 = vweird.f32 %v225_v14  ;;  %v237_v20 = vand.u32 2147483648, %v225_v14  ;;  %v235_v21 = vand.u32 2147483647, %v225_v14  ;;  %445 = vmatpush.msrb.mxu2 %v2448_v51 }
 0x357   :  { %674 = vmatpush.msra.mxu3 %v2448_v51  ;;  %903 = vmatpush.msra.mxu0 %v2448_v51 }
 0x358   :  { %v238_v23 = vor.u32 1.1754944e-38, %v237_v20  ;;  %vm236_vm11 = vcmp.eq.f32.partialorder %v235_v21, 8.507059e+37  ;;  %446 = vmatpush.msrb.mxu2 %v2451_v52 }
 0x359   :  { %675 = vmatpush.msra.mxu3 %v2451_v52  ;;  %904 = vmatpush.msra.mxu0 %v2451_v52 }
 0x35a   :  { %447 = vmatpush.msrb.mxu2 %v2454_v53 }
 0x35b   :  { %676 = vmatpush.msra.mxu3 %v2454_v53  ;;  %905 = vmatpush.msra.mxu0 %v2454_v53 }
 0x35c   :  { %v2095_v15 = vpop.eup %2094 }
 0x35d   :  { %v227_v16 = vmul.f32 %v2095_v15, %v225_v14  ;;  %vm232_vm9 = vweird.f32 %v2095_v15 }
 0x35e   :  { %vm233_vm10 = vmor %vm231_vm8, %vm232_vm9 }
 0x35f   :  { %v228_v17 = vsub.f32 1.0, %v227_v16 }
 0x361   :  { %v229_v18 = vmul.f32 %v2095_v15, %v228_v17  ;;  %v2062_v17 = vld [vmem:[%s3133_s5 + $0x1] ss:$0 sm:$0xff] }
 0x363   :  { %v230_v19 = vadd.f32 %v2095_v15, %v229_v18 }
 0x365   :  { %v234_v22 = vsel %vm233_vm10, %v2095_v15, %v230_v19 }
 0x366   :  { %v239_v25 = vsel %vm236_vm11, %v238_v23, %v234_v22  ;;  %v2063_v22 = vld [vmem:[%s3133_s5] ss:$0 sm:$0xff] }
 0x367   :  { %v248_v32 = vmul.f32 %v246_v31, %v239_v25 }
 0x3ac   :  { %v251_v24 = vpop.permute.xlu2 %250 }
 0x3ad   :  { %v253_v26 = vmul.f32 %v251_v24, %v239_v25 }
 0x3af   :  { %255 = vrot.lane.b32.xlu2 %v253_v26, %s2280_s16 }
 0x3c7   :  { %v354_v28 = vpop.f32.mrf.mxu3 }
 0x3c8   :  { %v355_v29 = vadd.f32 %v2060_v27, %v354_v28 }
 0x3ca   :  { %2096 = vtanh.f32 %v355_v29  ;;  %v1968_v36 = vmul.f32 -1.442695, %v355_v29 }
 0x3d0   :  { %v2097_v30 = vpop.eup %2096 }
 0x3d1   :  { %384 = vrot.lane.b32.xlu0 %v2097_v30, %s2281_s24 }
 0x409   :  { %v256_v33 = vpop.permute.xlu2 %255 }
 0x40a   :  { %v2510_v34 = vadd.f32 %v256_v33, %v248_v32 }
 0x40c   :  { %2098 = vtanh.f32 %v2510_v34 }
 0x40d   :  { %2100 = vpow2.f32 %v1968_v36 }
 0x412   :  { %v2099_v35 = vpop.eup %2098 }
 0x413   :  { %261 = vrot.lane.b32.xlu0 %v2099_v35, %s2281_s24  ;;  %v2101_v37 = vpop.eup %2100 }
 0x414   :  { %v360_v38 = vadd.f32 1.0, %v2101_v37 }
 0x416   :  { %2102 = vrcp.f32 %v360_v38  ;;  %v372_v47 = vand.u32 2147483648, %v360_v38  ;;  %vm366_vm13 = vweird.f32 %v360_v38  ;;  %v370_v48 = vand.u32 2147483647, %v360_v38 }
 0x418   :  { %v373_v55 = vor.u32 1.1754944e-38, %v372_v47  ;;  %vm371_vm15 = vcmp.eq.f32.partialorder %v370_v48, 8.507059e+37 }
 0x41c   :  { %v2103_v39 = vpop.eup %2102 }
 0x41d   :  { %v362_v40 = vmul.f32 %v2103_v39, %v360_v38  ;;  %vm367_vm12 = vweird.f32 %v2103_v39 }
 0x41e   :  { %vm368_vm14 = vmor %vm366_vm13, %vm367_vm12 }
 0x41f   :  { %v363_v41 = vsub.f32 1.0, %v362_v40 }
 0x421   :  { %v364_v45 = vmul.f32 %v2103_v39, %v363_v41 }
 0x423   :  { %v365_v46 = vadd.f32 %v2103_v39, %v364_v45 }
 0x425   :  { %v369_v54 = vsel %vm368_vm14, %v2103_v39, %v365_v46 }
 0x426   :  { %v2514_v57 = vsel %vm371_vm15, %v373_v55, %v369_v54 }
 0x427   :  { %v382_v43 = vmul.f32 %v380_v42, %v2514_v57 }
 0x443   :  { %v385_v56 = vpop.permute.xlu0 %384 }
 0x444   :  { %v387_v58 = vmul.f32 %v385_v56, %v2514_v57 }
 0x446   :  { %389 = vrot.lane.b32.xlu2 %v387_v58, %s2280_s16 }
 0x485   :  { %v262_v59 = vpop.permute.xlu0 %261 }
 0x486   :  { %v264_v60 = vmul.f32 %v262_v59, %v239_v25 }
 0x488   :  { %266 = vrot.lane.b32.xlu1 %v264_v60, %s2280_s16 }
 0x4a0   :  { %v390_v44 = vpop.permute.xlu2 %389 }
 0x4a1   :  { %v392_v49 = vadd.f32 %v390_v44, %v382_v43 }
 0x4a3   :  { %2104 = vtanh.f32 %v392_v49 }
 0x4a9   :  { %v2105_v50 = vpop.eup %2104 }
 0x4aa   :  { %395 = vrot.lane.b32.xlu2 %v2105_v50, %s2281_s24 }
 0x4fa   :  { %v267_v5 = vpop.permute.xlu1 %266 }
 0x4fb   :  { %1962 = vst.msk [vmem:[%s3137_s9 + $0x2] sm:$0x3] %vm64_vm0, %v267_v5  ;;  %1964 = vmatmul.msk.f32.vlgmr.msra.gmra.mxu2 %vm283_vm4, %v267_v5 }
 0x4fc   :  { %803 = vmatpush.msra.mxu2 %v2349_v1 }
 0x4fe   :  { %804 = vmatpush.msra.mxu2 %v2351_v2 }
 0x500   :  { %805 = vmatpush.msra.mxu2 %v2358_v3  ;;  %v2061_v3 = vld [vmem:[%s3135_s7] ss:$0 sm:$0xff] }
 0x502   :  { %v1969_v51 = vld [vmem:[%s3137_s9 + $0x2] sm:$0x3]  ;;  %806 = vmatpush.msra.mxu2 %v2361_v4 }
 0x503   :  { %412 = vrot.lane.b32.xlu1 %v1969_v51, %s2280_s16 }
 0x504   :  { %v396_v52 = vpop.permute.xlu2 %395  ;;  %807 = vmatpush.msra.mxu2 %v2381_v8 }
 0x505   :  { %v398_v53 = vmul.f32 %v396_v52, %v2514_v57 }
 0x506   :  { %808 = vmatpush.msra.mxu2 %v2385_v9  ;;  %v538_v9 = vld [vmem:[%s537_s14] sm:$0x1]  ;;  %s2283_s14 = smov [#allocation8]  }
 0x507   :  { %400 = vrot.lane.b32.xlu0 %v398_v53, %s2280_s16  ;;  %s1914_s15 = sshll.u32 %s2283_s14, 4  ;;  %s1915_s15 = int_to_ptr.vmem [resolvable:$true] %s1914_s15 }
 0x508   :  { %809 = vmatpush.msra.mxu2 %v2389_v10 }
 0x50a   :  { %810 = vmatpush.msra.mxu2 %v2393_v11 }
 0x50f   :  { %271 = vrot.lane.b32.xlu0 %v2510_v34, %s2282_s2 }
 0x575   :  { %v413_v2 = vpop.permute.xlu1 %412 }
 0x579   :  { %v401_v1 = vpop.permute.xlu0 %400 }
 0x57a   :  { %403 = vst.msk [vmem:[%s3137_s9] sm:$0x3] %vm64_vm0, %v401_v1 }
 0x57b   :  { %409 = vst.msk [vmem:[#allocation2] sm:$0x3] %vm64_vm0, %v401_v1 }
 0x57c   :  { %415 = vst.msk [vmem:[#allocation2] sm:$0x3] %vm85_vm2, %v413_v2 }
 0x57e   :  { %v303_v4 = vpop.f32.mrf.mxu2 }
 0x57f   :  { %v304_v8 = vadd.f32 %v2061_v3, %v303_v4 }
 0x581   :  { %306 = vst [vmem:[#allocation8] sm:$0x3] %v304_v8  ;;  %v272_v10 = vpop.permute.xlu0 %271  ;;  %v544_v11 = vld [vmem:[%s3137_s9] sm:$0x3] }
 0x582   :  { %1963 = vst.msk [vmem:[%s3138_s10 + $0x2] sm:$0x3] %vm64_vm0, %v272_v10  ;;  %546 = vrot.lane.b32.xlu2 %v544_v11, %s2280_s16 }
 0x583   :  { %v416_v7 = vld [vmem:[#allocation2] sm:$0x3] }
 0x584   :  { %539 = vst.msk [vmem:[#allocation2] sm:$0x1] %vm74_vm1, %v538_v9  ;;  %1971 = vmatmul.msk.f32.vlgmr.msrb.gmra.mxu2 %vm100_vm3, %v416_v7  ;;  %v767_v7 = vld [vmem:[%s766_s4] sm:$0x1] }
 0x585   :  { %543 = vst.msk [vmem:[#allocation2 + $0x1] sm:$0x1] %vm74_vm1, %v542_v6 }
 0x589   :  { %v1973_v12 = vld [vmem:[%s3138_s10 + $0x2] sm:$0x3] }
 0x58a   :  { %405 = vrot.lane.b32.xlu2 %v392_v49, %s2282_s2  ;;  %474 = vrot.lane.b32.xlu0 %v1973_v12, %s2280_s16  ;;  %v2064_v12 = vld [vmem:[%s3135_s7] ss:$0 sm:$0xff] }
 0x5dc   :  { %v547_v13 = vpop.permute.xlu2 %546 }
 0x5dd   :  { %549 = vst.msk [vmem:[#allocation2] sm:$0x3] %vm85_vm2, %v547_v13  ;;  %v771_v13 = vld [vmem:[%s770_s27] sm:$0x1] }
 0x5e4   :  { %v550_v14 = vld [vmem:[#allocation2] sm:$0x3]  ;;  %v406_v15 = vpop.permute.xlu2 %405 }
 0x5e5   :  { %408 = vst.msk [vmem:[%s3138_s10] sm:$0x3] %vm64_vm0, %v406_v15  ;;  %1979 = vmatmul.msk.f32.vlgmr.msrb.gmra.mxu1 %vm100_vm3, %v550_v14 }
 0x5ec   :  { %v606_v16 = vld [vmem:[%s3138_s10] sm:$0x3] }
 0x5ed   :  { %608 = vrot.lane.b32.xlu0 %v606_v16, %s2280_s16 }
 0x5fc   :  { %v475_v60 = vpop.permute.xlu0 %474 }
 0x607   :  { %v449_v18 = vpop.f32.mrf.mxu2 }
 0x608   :  { %v450_v19 = vadd.f32 %v2062_v17, %v449_v18 }
 0x60a   :  { %2106 = vtanh.f32 %v450_v19  ;;  %v1972_v21 = vmul.f32 -1.442695, %v450_v19 }
 0x60c   :  { %2108 = vpow2.f32 %v1972_v21 }
 0x610   :  { %v2107_v20 = vpop.eup %2106 }
 0x611   :  { %479 = vrot.lane.b32.xlu1 %v2107_v20, %s2281_s24 }
 0x612   :  { %v2109_v23 = vpop.eup %2108 }
 0x613   :  { %v455_v25 = vadd.f32 1.0, %v2109_v23 }
 0x615   :  { %v467_v33 = vand.u32 2147483648, %v455_v25  ;;  %vm461_vm6 = vweird.f32 %v455_v25  ;;  %v465_v34 = vand.u32 2147483647, %v455_v25 }
 0x617   :  { %v468_v36 = vor.u32 1.1754944e-38, %v467_v33  ;;  %vm466_vm8 = vcmp.eq.f32.partialorder %v465_v34, 8.507059e+37 }
 0x65f   :  { %v609_v5 = vpop.permute.xlu0 %608 }
 0x662   :  { %v583_v24 = vpop.f32.mrf.mxu1 }
 0x663   :  { %v584_v26 = vadd.f32 %v2063_v22, %v583_v24  ;;  %v2065_v22 = vld [vmem:[%s3133_s5 + $0x1] ss:$0 sm:$0xff] }
 0x665   :  { %2110 = vtanh.f32 %v584_v26  ;;  %v1980_v40 = vmul.f32 -1.442695, %v584_v26 }
 0x666   :  { %2112 = vrcp.f32 %v455_v25 }
 0x667   :  { %2114 = vpow2.f32 %v1980_v40 }
 0x66b   :  { %v2111_v27 = vpop.eup %2110 }
 0x66c   :  { %613 = vrot.lane.b32.xlu1 %v2111_v27, %s2281_s24  ;;  %v2113_v28 = vpop.eup %2112 }
 0x66d   :  { %v457_v29 = vmul.f32 %v2113_v28, %v455_v25  ;;  %vm462_vm5 = vweird.f32 %v2113_v28  ;;  %v2115_v41 = vpop.eup %2114 }
 0x66e   :  { %vm463_vm7 = vmor %vm461_vm6, %vm462_vm5  ;;  %v589_v45 = vadd.f32 1.0, %v2115_v41 }
 0x66f   :  { %v458_v30 = vsub.f32 1.0, %v457_v29 }
 0x670   :  { %2116 = vrcp.f32 %v589_v45  ;;  %v601_v56 = vand.u32 2147483648, %v589_v45  ;;  %vm595_vm10 = vweird.f32 %v589_v45  ;;  %v599_v57 = vand.u32 2147483647, %v589_v45 }
 0x671   :  { %v459_v31 = vmul.f32 %v2113_v28, %v458_v30 }
 0x672   :  { %v602_v59 = vor.u32 1.1754944e-38, %v601_v56  ;;  %vm600_vm12 = vcmp.eq.f32.partialorder %v599_v57, 8.507059e+37 }
 0x673   :  { %v460_v32 = vadd.f32 %v2113_v28, %v459_v31 }
 0x675   :  { %v464_v35 = vsel %vm463_vm7, %v2113_v28, %v460_v32  ;;  %v2066_v32 = vld [vmem:[%s3133_s5] ss:$0 sm:$0xff] }
 0x676   :  { %v469_v38 = vsel %vm466_vm8, %v468_v36, %v464_v35  ;;  %v2117_v46 = vpop.eup %2116 }
 0x677   :  { %v591_v47 = vmul.f32 %v2117_v46, %v589_v45  ;;  %vm596_vm9 = vweird.f32 %v2117_v46  ;;  %v477_v0 = vmul.f32 %v475_v60, %v469_v38 }
 0x678   :  { %vm597_vm11 = vmor %vm595_vm10, %vm596_vm9 }
 0x679   :  { %v592_v48 = vsub.f32 1.0, %v591_v47 }
 0x67b   :  { %v593_v54 = vmul.f32 %v2117_v46, %v592_v48 }
 0x67d   :  { %v594_v55 = vadd.f32 %v2117_v46, %v593_v54 }
 0x67f   :  { %v598_v58 = vsel %vm597_vm11, %v2117_v46, %v594_v55 }
 0x680   :  { %v603_v61 = vsel %vm600_vm12, %v602_v59, %v598_v58 }
 0x681   :  { %v611_v51 = vmul.f32 %v609_v5, %v603_v61 }
 0x683   :  { %v480_v37 = vpop.permute.xlu1 %479 }
 0x684   :  { %v482_v39 = vmul.f32 %v480_v37, %v469_v38 }
 0x686   :  { %484 = vrot.lane.b32.xlu2 %v482_v39, %s2280_s16 }
 0x6de   :  { %v614_v62 = vpop.permute.xlu1 %613 }
 0x6df   :  { %v616_v63 = vmul.f32 %v614_v62, %v603_v61 }
 0x6e0   :  { %v485_v42 = vpop.permute.xlu2 %484 }
 0x6e1   :  { %v487_v43 = vadd.f32 %v485_v42, %v477_v0  ;;  %618 = vrot.lane.b32.xlu1 %v616_v63, %s2280_s16 }
 0x6e3   :  { %2118 = vtanh.f32 %v487_v43 }
 0x6e9   :  { %v2119_v44 = vpop.eup %2118 }
 0x6ea   :  { %490 = vrot.lane.b32.xlu2 %v2119_v44, %s2281_s24 }
 0x744   :  { %v491_v49 = vpop.permute.xlu2 %490 }
 0x745   :  { %v493_v50 = vmul.f32 %v491_v49, %v469_v38 }
 0x747   :  { %495 = vrot.lane.b32.xlu1 %v493_v50, %s2280_s16 }
 0x753   :  { %v619_v52 = vpop.permute.xlu1 %618 }
 0x754   :  { %v621_v53 = vadd.f32 %v619_v52, %v611_v51 }
 0x756   :  { %2120 = vtanh.f32 %v621_v53 }
 0x75c   :  { %v2121_v1 = vpop.eup %2120 }
 0x75d   :  { %624 = vrot.lane.b32.xlu0 %v2121_v1, %s2281_s24 }
 0x7b9   :  { %v496_v2 = vpop.permute.xlu1 %495 }
 0x7ba   :  { %1974 = vst.msk [vmem:[%s3137_s9 + $0x2] sm:$0x3] %vm64_vm0, %v496_v2  ;;  %1976 = vmatmul.msk.f32.vlgmr.msrb.gmra.mxu3 %vm283_vm4, %v496_v2 }
 0x7c1   :  { %v1981_v3 = vld [vmem:[%s3137_s9 + $0x2] sm:$0x3] }
 0x7c2   :  { %641 = vrot.lane.b32.xlu0 %v1981_v3, %s2280_s16 }
 0x7cf   :  { %v625_v4 = vpop.permute.xlu0 %624 }
 0x7d0   :  { %v627_v8 = vmul.f32 %v625_v4, %v603_v61 }
 0x7d2   :  { %629 = vrot.lane.b32.xlu2 %v627_v8, %s2280_s16 }
 0x7da   :  { %500 = vrot.lane.b32.xlu2 %v487_v43, %s2282_s2 }
 0x82c   :  { %v630_v9 = vpop.permute.xlu2 %629 }
 0x82d   :  { %632 = vst.msk [vmem:[%s3137_s9] sm:$0x3] %vm64_vm0, %v630_v9 }
 0x82e   :  { %638 = vst.msk [vmem:[#allocation2] sm:$0x3] %vm64_vm0, %v630_v9 }
 0x834   :  { %v642_v10 = vpop.permute.xlu0 %641  ;;  %v501_v11 = vpop.permute.xlu2 %500  ;;  %v773_v6 = vld [vmem:[%s3137_s9] sm:$0x3] }
 0x835   :  { %644 = vst.msk [vmem:[#allocation2] sm:$0x3] %vm85_vm2, %v642_v10  ;;  %775 = vrot.lane.b32.xlu1 %v773_v6, %s2280_s16 }
 0x836   :  { %1975 = vst.msk [vmem:[%s3138_s10 + $0x2] sm:$0x3] %vm64_vm0, %v501_v11 }
 0x83c   :  { %v645_v14 = vld [vmem:[#allocation2] sm:$0x3] }
 0x83d   :  { %768 = vst.msk [vmem:[#allocation2] sm:$0x1] %vm74_vm1, %v767_v7  ;;  %v531_v15 = vpop.f32.mrf.mxu3  ;;  %1983 = vmatmul.msk.f32.vlgmr.msra.gmra.mxu3 %vm100_vm3, %v645_v14  ;;  %634 = vrot.lane.b32.xlu1 %v621_v53, %s2282_s2  ;;  %v1985_v16 = vld [vmem:[%s3138_s10 + $0x2] sm:$0x3]  ;;  %v2715_v14 = vld [vmem:[#allocation7 + $0x30] sm:$0xff] }
 0x83e   :  { %772 = vst.msk [vmem:[#allocation2 + $0x1] sm:$0x1] %vm74_vm1, %v771_v13  ;;  %v532_v17 = vadd.f32 %v2064_v12, %v531_v15  ;;  %703 = vrot.lane.b32.xlu2 %v1985_v16, %s2280_s16  ;;  %v2713_v13 = vld [vmem:[#allocation7 + $0x38] sm:$0xff] }
 0x83f   :  { %1032 = vmatpush.msrb.mxu3 %v2713_v13 }
 0x840   :  { %535 = vst [vmem:[#allocation8 + $0x2] sm:$0x3] %v532_v17 }
 0x841   :  { %1033 = vmatpush.msrb.mxu3 %v2715_v14 }
 0x898   :  { %v704_v42 = vpop.permute.xlu2 %703 }
 0x8a7   :  { %v776_v18 = vpop.permute.xlu1 %775 }
 0x8a8   :  { %778 = vst.msk [vmem:[#allocation2] sm:$0x3] %vm85_vm2, %v776_v18  ;;  %v2722_v18 = vld [vmem:[#allocation7 + $0x28] sm:$0xff] }
 0x8a9   :  { %1034 = vmatpush.msrb.mxu3 %v2722_v18 }
 0x8af   :  { %v779_v19 = vld [vmem:[#allocation2] sm:$0x3]  ;;  %v635_v20 = vpop.permute.xlu1 %634 }
 0x8b0   :  { %637 = vst.msk [vmem:[%s3138_s10] sm:$0x3] %vm64_vm0, %v635_v20  ;;  %1991 = vmatmul.msk.f32.vlgmr.msra.gmra.mxu2 %vm100_vm3, %v779_v19  ;;  %v2731_v19 = vld [vmem:[#allocation7 + $0x20] sm:$0xff]  ;;  %v996_v20 = vld [vmem:[%s995_s13] sm:$0x1]  ;;  %s2014_s13 = sld [smem:[#allocation3 + $0xb]] }
 0x8b1   :  { %1035 = vmatpush.msrb.mxu3 %v2731_v19 }
 0x8b6   :  { %s1228_s23 = scalar_lea.vmem %s3129_s1, %s2014_s13 }
 0x8b7   :  { %v835_v21 = vld [vmem:[%s3138_s10] sm:$0x3] }
 0x8b8   :  { %837 = vrot.lane.b32.xlu2 %v835_v21, %s2280_s16  ;;  %v1000_v21 = vld [vmem:[%s999_s3] sm:$0x1]  ;;  %s2026_s3 = sld [smem:[#allocation3 + $0xd]] }
 0x8be   :  { %s1457_s22 = scalar_lea.vmem %s3129_s1, %s2026_s3 }
 0x8c0   :  { %v678_v23 = vpop.f32.mrf.mxu3 }
 0x8c1   :  { %v679_v24 = vadd.f32 %v2065_v22, %v678_v23 }
 0x8c3   :  { %2122 = vtanh.f32 %v679_v24  ;;  %v1984_v26 = vmul.f32 -1.442695, %v679_v24  ;;  %v2067_v24 = vld [vmem:[%s3135_s7] ss:$0 sm:$0xff] }
 0x8c5   :  { %2124 = vpow2.f32 %v1984_v26 }
 0x8c9   :  { %v2123_v25 = vpop.eup %2122 }
 0x8ca   :  { %708 = vrot.lane.b32.xlu0 %v2123_v25, %s2281_s24 }
 0x8cb   :  { %v2125_v27 = vpop.eup %2124 }
 0x8cc   :  { %v684_v28 = vadd.f32 1.0, %v2125_v27  ;;  %v2755_v27 = vld [vmem:[#allocation7 + $0x18] sm:$0xff] }
 0x8cd   :  { %1036 = vmatpush.msrb.mxu3 %v2755_v27 }
 0x8ce   :  { %2126 = vrcp.f32 %v684_v28  ;;  %v696_v37 = vand.u32 2147483648, %v684_v28  ;;  %vm690_vm14 = vweird.f32 %v684_v28  ;;  %v694_v38 = vand.u32 2147483647, %v684_v28 }
 0x8d0   :  { %v697_v40 = vor.u32 1.1754944e-38, %v696_v37  ;;  %vm695_vm5 = vcmp.eq.f32.partialorder %v694_v38, 8.507059e+37 }
 0x8d4   :  { %v2127_v29 = vpop.eup %2126 }
 0x8d5   :  { %v686_v30 = vmul.f32 %v2127_v29, %v684_v28  ;;  %vm691_vm13 = vweird.f32 %v2127_v29  ;;  %v2759_v28 = vld [vmem:[#allocation7 + $0x10] sm:$0xff] }
 0x8d6   :  { %vm692_vm15 = vmor %vm690_vm14, %vm691_vm13  ;;  %1037 = vmatpush.msrb.mxu3 %v2759_v28 }
 0x8d7   :  { %v687_v31 = vsub.f32 1.0, %v686_v30  ;;  %v2767_v30 = vld [vmem:[#allocation7] sm:$0xff] }
 0x8d9   :  { %v688_v33 = vmul.f32 %v2127_v29, %v687_v31 }
 0x8db   :  { %v689_v36 = vadd.f32 %v2127_v29, %v688_v33 }
 0x8dd   :  { %v693_v39 = vsel %vm692_vm15, %v2127_v29, %v689_v36  ;;  %v2763_v29 = vld [vmem:[#allocation7 + $0x8] sm:$0xff] }
 0x8de   :  { %v698_v46 = vsel %vm695_vm5, %v697_v40, %v693_v39  ;;  %1038 = vmatpush.msrb.mxu3 %v2763_v29 }
 0x8df   :  { %v706_v50 = vmul.f32 %v704_v42, %v698_v46 }
 0x8e0   :  { %1039 = vmatpush.msrb.mxu3 %v2767_v30 }
 0x912   :  { %v838_v53 = vpop.permute.xlu2 %837 }
 0x933   :  { %v812_v34 = vpop.f32.mrf.mxu2 }
 0x934   :  { %v813_v35 = vadd.f32 %v2066_v32, %v812_v34 }
 0x936   :  { %2128 = vtanh.f32 %v813_v35  ;;  %v1992_v48 = vmul.f32 -1.442695, %v813_v35  ;;  %v2068_v35 = vld [vmem:[%s3133_s5 + $0x1] ss:$0 sm:$0xff] }
 0x938   :  { %2130 = vpow2.f32 %v1992_v48 }
 0x93c   :  { %v2129_v41 = vpop.eup %2128  ;;  %v709_v45 = vpop.permute.xlu0 %708 }
 0x93d   :  { %v711_v47 = vmul.f32 %v709_v45, %v698_v46  ;;  %842 = vrot.lane.b32.xlu0 %v2129_v41, %s2281_s24 }
 0x93e   :  { %v2131_v54 = vpop.eup %2130 }
 0x93f   :  { %713 = vrot.lane.b32.xlu1 %v711_v47, %s2280_s16  ;;  %v818_v55 = vadd.f32 1.0, %v2131_v54 }
 0x941   :  { %2132 = vrcp.f32 %v818_v55  ;;  %v830_v61 = vand.u32 2147483648, %v818_v55  ;;  %vm824_vm7 = vweird.f32 %v818_v55  ;;  %v828_v62 = vand.u32 2147483647, %v818_v55 }
 0x943   :  { %v831_v0 = vor.u32 1.1754944e-38, %v830_v61  ;;  %vm829_vm9 = vcmp.eq.f32.partialorder %v828_v62, 8.507059e+37  ;;  %v2069_v62 = vld [vmem:[%s3133_s5] ss:$0 sm:$0xff] }
 0x947   :  { %v2133_v56 = vpop.eup %2132 }
 0x948   :  { %v820_v57 = vmul.f32 %v2133_v56, %v818_v55  ;;  %vm825_vm6 = vweird.f32 %v2133_v56 }
 0x949   :  { %vm826_vm8 = vmor %vm824_vm7, %vm825_vm6 }
 0x94a   :  { %v821_v58 = vsub.f32 1.0, %v820_v57 }
 0x94c   :  { %v822_v59 = vmul.f32 %v2133_v56, %v821_v58 }
 0x94e   :  { %v823_v60 = vadd.f32 %v2133_v56, %v822_v59 }
 0x950   :  { %v827_v63 = vsel %vm826_vm8, %v2133_v56, %v823_v60 }
 0x951   :  { %v832_v44 = vsel %vm829_vm9, %v831_v0, %v827_v63 }
 0x952   :  { %v840_v1 = vmul.f32 %v838_v53, %v832_v44 }
 0x9af   :  { %v843_v43 = vpop.permute.xlu0 %842 }
 0x9b0   :  { %v845_v49 = vmul.f32 %v843_v43, %v832_v44 }
 0x9b1   :  { %v714_v5 = vpop.permute.xlu1 %713 }
 0x9b2   :  { %v716_v51 = vadd.f32 %v714_v5, %v706_v50  ;;  %847 = vrot.lane.b32.xlu0 %v845_v49, %s2280_s16 }
 0x9b4   :  { %2134 = vtanh.f32 %v716_v51 }
 0x9ba   :  { %v2135_v52 = vpop.eup %2134 }
 0x9bb   :  { %719 = vrot.lane.b32.xlu1 %v2135_v52, %s2281_s24 }
 0xa24   :  { %v848_v2 = vpop.permute.xlu0 %847 }
 0xa25   :  { %v850_v3 = vadd.f32 %v848_v2, %v840_v1 }
 0xa27   :  { %2136 = vtanh.f32 %v850_v3 }
 0xa2d   :  { %v2137_v4 = vpop.eup %2136  ;;  %v720_v8 = vpop.permute.xlu1 %719 }
 0xa2e   :  { %v722_v9 = vmul.f32 %v720_v8, %v698_v46  ;;  %853 = vrot.lane.b32.xlu2 %v2137_v4, %s2281_s24 }
 0xa30   :  { %724 = vrot.lane.b32.xlu0 %v722_v9, %s2280_s16 }
 0xa88   :  { %v854_v10 = vpop.permute.xlu2 %853 }
 0xa89   :  { %v856_v11 = vmul.f32 %v854_v10, %v832_v44 }
 0xa8b   :  { %858 = vrot.lane.b32.xlu1 %v856_v11, %s2280_s16 }
 0xa93   :  { %729 = vrot.lane.b32.xlu1 %v716_v51, %s2282_s2 }
 0xaa2   :  { %v725_v6 = vpop.permute.xlu0 %724 }
 0xaa3   :  { %1986 = vst.msk [vmem:[%s3137_s9 + $0x2] sm:$0x3] %vm64_vm0, %v725_v6  ;;  %1988 = vmatmul.msk.f32.vlgmr.msrb.gmra.mxu0 %vm283_vm4, %v725_v6 }
 0xaa4   :  { %1261 = vmatpush.msrb.mxu0 %v2713_v13 }
 0xaa6   :  { %1262 = vmatpush.msrb.mxu0 %v2715_v14 }
 0xaa8   :  { %1263 = vmatpush.msrb.mxu0 %v2722_v18 }
 0xaaa   :  { %v1993_v7 = vld [vmem:[%s3137_s9 + $0x2] sm:$0x3]  ;;  %1264 = vmatpush.msrb.mxu0 %v2731_v19 }
 0xaab   :  { %870 = vrot.lane.b32.xlu2 %v1993_v7, %s2280_s16 }
 0xaac   :  { %1265 = vmatpush.msrb.mxu0 %v2755_v27 }
 0xaae   :  { %1266 = vmatpush.msrb.mxu0 %v2759_v28 }
 0xab0   :  { %1267 = vmatpush.msrb.mxu0 %v2763_v29 }
 0xab2   :  { %1268 = vmatpush.msrb.mxu0 %v2767_v30 }
 0xafd   :  { %v859_v12 = vpop.permute.xlu1 %858 }
 0xafe   :  { %861 = vst.msk [vmem:[%s3137_s9] sm:$0x3] %vm64_vm0, %v859_v12 }
 0xaff   :  { %867 = vst.msk [vmem:[#allocation2] sm:$0x3] %vm64_vm0, %v859_v12 }
 0xb05   :  { %v871_v15 = vpop.permute.xlu2 %870  ;;  %v730_v16 = vpop.permute.xlu1 %729  ;;  %v1002_v17 = vld [vmem:[%s3137_s9] sm:$0x3] }
 0xb06   :  { %873 = vst.msk [vmem:[#allocation2] sm:$0x3] %vm85_vm2, %v871_v15  ;;  %1004 = vrot.lane.b32.xlu0 %v1002_v17, %s2280_s16 }
 0xb07   :  { %1987 = vst.msk [vmem:[%s3138_s10 + $0x2] sm:$0x3] %vm64_vm0, %v730_v16 }
 0xb0d   :  { %v874_v22 = vld [vmem:[#allocation2] sm:$0x3] }
 0xb0e   :  { %997 = vst.msk [vmem:[#allocation2] sm:$0x1] %vm74_vm1, %v996_v20  ;;  %1995 = vmatmul.msk.f32.vlgmr.msra.gmra.mxu0 %vm100_vm3, %v874_v22  ;;  %863 = vrot.lane.b32.xlu0 %v850_v3, %s2282_s2  ;;  %v1997_v23 = vld [vmem:[%s3138_s10 + $0x2] sm:$0x3] }
 0xb0f   :  { %1001 = vst.msk [vmem:[#allocation2 + $0x1] sm:$0x1] %vm74_vm1, %v1000_v21  ;;  %932 = vrot.lane.b32.xlu1 %v1997_v23, %s2280_s16 }
 0xb20   :  { %v760_v25 = vpop.f32.mrf.mxu0 }
 0xb21   :  { %v761_v26 = vadd.f32 %v2067_v24, %v760_v25  ;;  %v2794_v25 = vld [vmem:[#allocation7 + $0x78] sm:$0xff] }
 0xb22   :  { %1127 = vmatpush.msrb.mxu1 %v2794_v25 }
 0xb23   :  { %764 = vst [vmem:[#allocation8 + $0x4] sm:$0x3] %v761_v26  ;;  %v2796_v26 = vld [vmem:[#allocation7 + $0x70] sm:$0xff] }
 0xb24   :  { %1128 = vmatpush.msrb.mxu1 %v2796_v26 }
 0xb78   :  { %v1005_v31 = vpop.permute.xlu0 %1004 }
 0xb79   :  { %1007 = vst.msk [vmem:[#allocation2] sm:$0x3] %vm85_vm2, %v1005_v31  ;;  %v2799_v31 = vld [vmem:[#allocation7 + $0x68] sm:$0xff] }
 0xb7a   :  { %1129 = vmatpush.msrb.mxu1 %v2799_v31 }
 0xb80   :  { %v1008_v32 = vld [vmem:[#allocation2] sm:$0x3]  ;;  %v864_v33 = vpop.permute.xlu0 %863 }
 0xb81   :  { %866 = vst.msk [vmem:[%s3138_s10] sm:$0x3] %vm64_vm0, %v864_v33  ;;  %2003 = vmatmul.msk.f32.vlgmr.msrb.gmra.mxu3 %vm100_vm3, %v1008_v32  ;;  %v933_v43 = vpop.permute.xlu1 %932 }
 0xb88   :  { %v1064_v34 = vld [vmem:[%s3138_s10] sm:$0x3] }
 0xb89   :  { %1066 = vrot.lane.b32.xlu1 %v1064_v34, %s2280_s16 }
 0xb8b   :  { %v907_v36 = vpop.f32.mrf.mxu0 }
 0xb8c   :  { %v908_v37 = vadd.f32 %v2068_v35, %v907_v36  ;;  %v2814_v36 = vld [vmem:[#allocation7 + $0x60] sm:$0xff] }
 0xb8d   :  { %1130 = vmatpush.msrb.mxu1 %v2814_v36 }
 0xb8e   :  { %2138 = vtanh.f32 %v908_v37  ;;  %v1996_v39 = vmul.f32 -1.442695, %v908_v37  ;;  %v2817_v37 = vld [vmem:[#allocation7 + $0x58] sm:$0xff] }
 0xb8f   :  { %1131 = vmatpush.msrb.mxu1 %v2817_v37 }
 0xb90   :  { %2140 = vpow2.f32 %v1996_v39  ;;  %v2823_v39 = vld [vmem:[#allocation7 + $0x48] sm:$0xff] }
 0xb94   :  { %v2139_v38 = vpop.eup %2138 }
 0xb95   :  { %937 = vrot.lane.b32.xlu2 %v2139_v38, %s2281_s24  ;;  %v2820_v38 = vld [vmem:[#allocation7 + $0x50] sm:$0xff] }
 0xb96   :  { %v2141_v40 = vpop.eup %2140  ;;  %1132 = vmatpush.msrb.mxu1 %v2820_v38 }
 0xb97   :  { %v913_v41 = vadd.f32 1.0, %v2141_v40  ;;  %v2826_v40 = vld [vmem:[#allocation7 + $0x40] sm:$0xff] }
 0xb98   :  { %1133 = vmatpush.msrb.mxu1 %v2823_v39 }
 0xb99   :  { %2142 = vrcp.f32 %v913_v41  ;;  %v925_v55 = vand.u32 2147483648, %v913_v41  ;;  %vm919_vm11 = vweird.f32 %v913_v41  ;;  %v923_v56 = vand.u32 2147483647, %v913_v41 }
 0xb9a   :  { %1134 = vmatpush.msrb.mxu1 %v2826_v40 }
 0xb9b   :  { %v926_v58 = vor.u32 1.1754944e-38, %v925_v55  ;;  %vm924_vm13 = vcmp.eq.f32.partialorder %v923_v56, 8.507059e+37  ;;  %v1225_v56 = vld [vmem:[%s1224_s20] sm:$0x1] }
 0xb9f   :  { %v2143_v45 = vpop.eup %2142 }
 0xba0   :  { %v915_v46 = vmul.f32 %v2143_v45, %v913_v41  ;;  %vm920_vm10 = vweird.f32 %v2143_v45 }
 0xba1   :  { %vm921_vm12 = vmor %vm919_vm11, %vm920_vm10 }
 0xba2   :  { %v916_v47 = vsub.f32 1.0, %v915_v46  ;;  %v2070_v46 = vld [vmem:[%s3135_s7] ss:$0 sm:$0xff] }
 0xba4   :  { %v917_v48 = vmul.f32 %v2143_v45, %v916_v47 }
 0xba6   :  { %v918_v54 = vadd.f32 %v2143_v45, %v917_v48 }
 0xba8   :  { %v922_v57 = vsel %vm921_vm12, %v2143_v45, %v918_v54 }
 0xba9   :  { %v927_v60 = vsel %vm924_vm13, %v926_v58, %v922_v57  ;;  %v1229_v57 = vld [vmem:[%s1228_s23] sm:$0x1] }
 0xbaa   :  { %v935_v44 = vmul.f32 %v933_v43, %v927_v60 }
 0xbef   :  { %v938_v59 = vpop.permute.xlu2 %937 }
 0xbf0   :  { %v940_v61 = vmul.f32 %v938_v59, %v927_v60 }
 0xbf2   :  { %942 = vrot.lane.b32.xlu2 %v940_v61, %s2280_s16 }
 0xbfb   :  { %v1067_v20 = vpop.permute.xlu1 %1066 }
 0xc04   :  { %v1041_v63 = vpop.f32.mrf.mxu3 }
 0xc05   :  { %v1042_v0 = vadd.f32 %v2069_v62, %v1041_v63 }
 0xc07   :  { %2144 = vtanh.f32 %v1042_v0  ;;  %v2004_v5 = vmul.f32 -1.442695, %v1042_v0  ;;  %v2071_v0 = vld [vmem:[%s3133_s5 + $0x1] ss:$0 sm:$0xff] }
 0xc0d   :  { %v2145_v42 = vpop.eup %2144 }
 0xc0e   :  { %1071 = vrot.lane.b32.xlu0 %v2145_v42, %s2281_s24 }
 0xc4c   :  { %v943_v49 = vpop.permute.xlu2 %942 }
 0xc4d   :  { %v945_v50 = vadd.f32 %v943_v49, %v935_v44 }
 0xc4f   :  { %2146 = vtanh.f32 %v945_v50 }
 0xc50   :  { %2148 = vpow2.f32 %v2004_v5 }
 0xc55   :  { %v2147_v51 = vpop.eup %2146 }
 0xc56   :  { %948 = vrot.lane.b32.xlu0 %v2147_v51, %s2281_s24  ;;  %v2149_v52 = vpop.eup %2148  ;;  %v2072_v51 = vld [vmem:[%s3133_s5] ss:$0 sm:$0xff] }
 0xc57   :  { %v1047_v53 = vadd.f32 1.0, %v2149_v52 }
 0xc59   :  { %2150 = vrcp.f32 %v1047_v53  ;;  %v1059_v9 = vand.u32 2147483648, %v1047_v53  ;;  %vm1053_vm15 = vweird.f32 %v1047_v53  ;;  %v1057_v10 = vand.u32 2147483647, %v1047_v53 }
 0xc5b   :  { %v1060_v6 = vor.u32 1.1754944e-38, %v1059_v9  ;;  %vm1058_vm6 = vcmp.eq.f32.partialorder %v1057_v10, 8.507059e+37 }
 0xc5f   :  { %v2151_v1 = vpop.eup %2150 }
 0xc60   :  { %v1049_v2 = vmul.f32 %v2151_v1, %v1047_v53  ;;  %vm1054_vm14 = vweird.f32 %v2151_v1 }
 0xc61   :  { %vm1055_vm5 = vmor %vm1053_vm15, %vm1054_vm14 }
 0xc62   :  { %v1050_v3 = vsub.f32 1.0, %v1049_v2 }
 0xc64   :  { %v1051_v4 = vmul.f32 %v2151_v1, %v1050_v3 }
 0xc66   :  { %v1052_v8 = vadd.f32 %v2151_v1, %v1051_v4 }
 0xc68   :  { %v1056_v11 = vsel %vm1055_vm5, %v2151_v1, %v1052_v8 }
 0xc69   :  { %v1061_v12 = vsel %vm1058_vm6, %v1060_v6, %v1056_v11 }
 0xc6a   :  { %v1069_v21 = vmul.f32 %v1067_v20, %v1061_v12 }
 0xc80   :  { %v1072_v7 = vpop.permute.xlu0 %1071 }
 0xc81   :  { %v1074_v15 = vmul.f32 %v1072_v7, %v1061_v12 }
 0xc83   :  { %1076 = vrot.lane.b32.xlu2 %v1074_v15, %s2280_s16 }
 0xcc8   :  { %v949_v16 = vpop.permute.xlu0 %948 }
 0xcc9   :  { %v951_v17 = vmul.f32 %v949_v16, %v927_v60 }
 0xccb   :  { %953 = vrot.lane.b32.xlu1 %v951_v17, %s2280_s16 }
 0xcdd   :  { %v1077_v22 = vpop.permute.xlu2 %1076 }
 0xcde   :  { %v1079_v23 = vadd.f32 %v1077_v22, %v1069_v21 }
 0xce0   :  { %2152 = vtanh.f32 %v1079_v23 }
 0xce6   :  { %v2153_v24 = vpop.eup %2152 }
 0xce7   :  { %1082 = vrot.lane.b32.xlu2 %v2153_v24, %s2281_s24 }
 0xd3d   :  { %v954_v32 = vpop.permute.xlu1 %953 }
 0xd3e   :  { %1998 = vst.msk [vmem:[%s3137_s9 + $0x2] sm:$0x3] %vm64_vm0, %v954_v32  ;;  %2000 = vmatmul.msk.f32.vlgmr.msra.gmra.mxu1 %vm283_vm4, %v954_v32 }
 0xd3f   :  { %1490 = vmatpush.msra.mxu1 %v2713_v13 }
 0xd41   :  { %v1083_v33 = vpop.permute.xlu2 %1082  ;;  %1491 = vmatpush.msra.mxu1 %v2715_v14 }
 0xd42   :  { %v1085_v34 = vmul.f32 %v1083_v33, %v1061_v12 }
 0xd43   :  { %1492 = vmatpush.msra.mxu1 %v2722_v18 }
 0xd44   :  { %1087 = vrot.lane.b32.xlu0 %v1085_v34, %s2280_s16 }
 0xd45   :  { %v2005_v35 = vld [vmem:[%s3137_s9 + $0x2] sm:$0x3]  ;;  %1493 = vmatpush.msra.mxu1 %v2731_v19 }
 0xd46   :  { %1099 = vrot.lane.b32.xlu1 %v2005_v35, %s2280_s16 }
 0xd47   :  { %1494 = vmatpush.msra.mxu1 %v2755_v27 }
 0xd49   :  { %1495 = vmatpush.msra.mxu1 %v2759_v28 }
 0xd4b   :  { %1496 = vmatpush.msra.mxu1 %v2763_v29 }
 0xd4c   :  { %958 = vrot.lane.b32.xlu0 %v945_v50, %s2282_s2 }
 0xd4d   :  { %1497 = vmatpush.msra.mxu1 %v2767_v30 }
 0xdb6   :  { %v1088_v41 = vpop.permute.xlu0 %1087 }
 0xdb7   :  { %1090 = vst.msk [vmem:[%s3137_s9] sm:$0x3] %vm64_vm0, %v1088_v41 }
 0xdb8   :  { %1096 = vst.msk [vmem:[#allocation2] sm:$0x3] %vm64_vm0, %v1088_v41  ;;  %v1100_v45 = vpop.permute.xlu1 %1099 }
 0xdb9   :  { %1102 = vst.msk [vmem:[#allocation2] sm:$0x3] %vm85_vm2, %v1100_v45 }
 0xdbb   :  { %v989_v47 = vpop.f32.mrf.mxu1 }
 0xdbc   :  { %v990_v48 = vadd.f32 %v2070_v46, %v989_v47 }
 0xdbe   :  { %993 = vst [vmem:[#allocation8 + $0x6] sm:$0x3] %v990_v48  ;;  %v959_v54 = vpop.permute.xlu0 %958  ;;  %v1231_v55 = vld [vmem:[%s3137_s9] sm:$0x3] }
 0xdbf   :  { %1999 = vst.msk [vmem:[%s3138_s10 + $0x2] sm:$0x3] %vm64_vm0, %v959_v54  ;;  %1233 = vrot.lane.b32.xlu2 %v1231_v55, %s2280_s16 }
 0xdc0   :  { %v1103_v58 = vld [vmem:[#allocation2] sm:$0x3] }
 0xdc1   :  { %2007 = vmatmul.msk.f32.vlgmr.msrb.gmra.mxu1 %vm100_vm3, %v1103_v58  ;;  %1226 = vst.msk [vmem:[#allocation2] sm:$0x1] %vm74_vm1, %v1225_v56 }
 0xdc2   :  { %1230 = vst.msk [vmem:[#allocation2 + $0x1] sm:$0x1] %vm74_vm1, %v1229_v57 }
 0xdc6   :  { %v2009_v59 = vld [vmem:[%s3138_s10 + $0x2] sm:$0x3] }
 0xdc7   :  { %1092 = vrot.lane.b32.xlu2 %v1079_v23, %s2282_s2  ;;  %1161 = vrot.lane.b32.xlu0 %v2009_v59, %s2280_s16 }
 0xe19   :  { %v1234_v60 = vpop.permute.xlu2 %1233 }
 0xe1a   :  { %1236 = vst.msk [vmem:[#allocation2] sm:$0x3] %vm85_vm2, %v1234_v60 }
 0xe21   :  { %v1093_v61 = vpop.permute.xlu2 %1092  ;;  %v1237_v62 = vld [vmem:[#allocation2] sm:$0x3] }
 0xe22   :  { %1095 = vst.msk [vmem:[%s3138_s10] sm:$0x3] %vm64_vm0, %v1093_v61  ;;  %2015 = vmatmul.msk.f32.vlgmr.msrb.gmra.mxu0 %vm100_vm3, %v1237_v62 }
 0xe29   :  { %v1293_v63 = vld [vmem:[%s3138_s10] sm:$0x3] }
 0xe2a   :  { %1295 = vrot.lane.b32.xlu0 %v1293_v63, %s2280_s16 }
 0xe39   :  { %v1162_v54 = vpop.permute.xlu0 %1161 }
 0xe3e   :  { %v1136_v42 = vpop.f32.mrf.mxu1 }
 0xe3f   :  { %v1137_v43 = vadd.f32 %v2071_v0, %v1136_v42 }
 0xe41   :  { %2154 = vtanh.f32 %v1137_v43  ;;  %v2008_v49 = vmul.f32 -1.442695, %v1137_v43  ;;  %v1194_v43 = vld [vmem:[%s3134_s6 + $0x18] sm:$0xff] }
 0xe42   :  { %1213 = vmatpush.msrb.mxu2 %v1194_v43  ;;  %1442 = vmatpush.msra.mxu3 %v1194_v43 }
 0xe43   :  { %2156 = vpow2.f32 %v2008_v49  ;;  %v1192_v49 = vld [vmem:[%s3134_s6 + $0x8] sm:$0xff]  ;;  %1671 = vmatpush.msra.mxu0 %v1194_v43  ;;  %1900 = vmatpush.msrb.mxu1 %v1194_v43 }
 0xe47   :  { %v2155_v44 = vpop.eup %2154 }
 0xe48   :  { %1166 = vrot.lane.b32.xlu1 %v2155_v44, %s2281_s24  ;;  %v1193_v44 = vld [vmem:[%s3134_s6 + $0x10] sm:$0xff] }
 0xe49   :  { %v2157_v50 = vpop.eup %2156  ;;  %1214 = vmatpush.msrb.mxu2 %v1193_v44  ;;  %1443 = vmatpush.msra.mxu3 %v1193_v44 }
 0xe4a   :  { %v1142_v5 = vadd.f32 1.0, %v2157_v50  ;;  %v1191_v50 = vld [vmem:[%s3134_s6] sm:$0xff]  ;;  %1672 = vmatpush.msra.mxu0 %v1193_v44  ;;  %1901 = vmatpush.msrb.mxu1 %v1193_v44  ;;  %s1682_s6 = scalar_lea.vmem %s3129_s1, %s2037_s17 }
 0xe4b   :  { %1215 = vmatpush.msrb.mxu2 %v1192_v49  ;;  %1444 = vmatpush.msra.mxu3 %v1192_v49 }
 0xe4c   :  { %2158 = vrcp.f32 %v1142_v5  ;;  %v1154_v10 = vand.u32 2147483648, %v1142_v5  ;;  %vm1148_vm8 = vweird.f32 %v1142_v5  ;;  %v1152_v11 = vand.u32 2147483647, %v1142_v5  ;;  %1673 = vmatpush.msra.mxu0 %v1192_v49  ;;  %1902 = vmatpush.msrb.mxu1 %v1192_v49 }
 0xe4d   :  { %1216 = vmatpush.msrb.mxu2 %v1191_v50  ;;  %1445 = vmatpush.msra.mxu3 %v1191_v50 }
 0xe4e   :  { %v1155_v7 = vor.u32 1.1754944e-38, %v1154_v10  ;;  %vm1153_vm10 = vcmp.eq.f32.partialorder %v1152_v11, 8.507059e+37  ;;  %1674 = vmatpush.msra.mxu0 %v1191_v50  ;;  %1903 = vmatpush.msrb.mxu1 %v1191_v50 }
 0xe4f   :  { %1356 = vmatpush.msra.mxu2 %v2794_v25  ;;  %1585 = vmatpush.msrb.mxu3 %v2794_v25 }
 0xe50   :  { %1814 = vmatpush.msrb.mxu0 %v2794_v25 }
 0xe51   :  { %1357 = vmatpush.msra.mxu2 %v2796_v26  ;;  %1586 = vmatpush.msrb.mxu3 %v2796_v26 }
 0xe52   :  { %v2159_v1 = vpop.eup %2158  ;;  %1815 = vmatpush.msrb.mxu0 %v2796_v26 }
 0xe53   :  { %v1144_v2 = vmul.f32 %v2159_v1, %v1142_v5  ;;  %vm1149_vm7 = vweird.f32 %v2159_v1  ;;  %1358 = vmatpush.msra.mxu2 %v2799_v31  ;;  %1587 = vmatpush.msrb.mxu3 %v2799_v31 }
 0xe54   :  { %vm1150_vm9 = vmor %vm1148_vm8, %vm1149_vm7  ;;  %1816 = vmatpush.msrb.mxu0 %v2799_v31 }
 0xe55   :  { %v1145_v4 = vsub.f32 1.0, %v1144_v2  ;;  %1359 = vmatpush.msra.mxu2 %v2814_v36  ;;  %1588 = vmatpush.msrb.mxu3 %v2814_v36 }
 0xe56   :  { %1817 = vmatpush.msrb.mxu0 %v2814_v36 }
 0xe57   :  { %v1146_v8 = vmul.f32 %v2159_v1, %v1145_v4  ;;  %1360 = vmatpush.msra.mxu2 %v2817_v37  ;;  %1589 = vmatpush.msrb.mxu3 %v2817_v37  ;;  %v2075_v4 = vld [vmem:[%s3133_s5] ss:$0 sm:$0xff] }
 0xe58   :  { %1818 = vmatpush.msrb.mxu0 %v2817_v37 }
 0xe59   :  { %v1147_v9 = vadd.f32 %v2159_v1, %v1146_v8  ;;  %1361 = vmatpush.msra.mxu2 %v2820_v38  ;;  %1590 = vmatpush.msrb.mxu3 %v2820_v38 }
 0xe5a   :  { %1819 = vmatpush.msrb.mxu0 %v2820_v38 }
 0xe5b   :  { %v1151_v6 = vsel %vm1150_vm9, %v2159_v1, %v1147_v9  ;;  %1362 = vmatpush.msra.mxu2 %v2823_v39  ;;  %1591 = vmatpush.msrb.mxu3 %v2823_v39 }
 0xe5c   :  { %v1156_v15 = vsel %vm1153_vm10, %v1155_v7, %v1151_v6  ;;  %1820 = vmatpush.msrb.mxu0 %v2823_v39 }
 0xe5d   :  { %v1164_v55 = vmul.f32 %v1162_v54, %v1156_v15  ;;  %1363 = vmatpush.msra.mxu2 %v2826_v40  ;;  %1592 = vmatpush.msrb.mxu3 %v2826_v40 }
 0xe5e   :  { %1821 = vmatpush.msrb.mxu0 %v2826_v40 }
 0xe9c   :  { %v1296_v59 = vpop.permute.xlu0 %1295 }
 0xe9f   :  { %v1270_v52 = vpop.f32.mrf.mxu0 }
 0xea0   :  { %v1271_v53 = vadd.f32 %v2072_v51, %v1270_v52 }
 0xea2   :  { %2160 = vtanh.f32 %v1271_v53  ;;  %v2016_v17 = vmul.f32 -1.442695, %v1271_v53  ;;  %v2074_v53 = vld [vmem:[%s3133_s5 + $0x1] ss:$0 sm:$0xff] }
 0xea4   :  { %2162 = vpow2.f32 %v2016_v17 }
 0xea8   :  { %v2161_v3 = vpop.eup %2160 }
 0xea9   :  { %1300 = vrot.lane.b32.xlu2 %v2161_v3, %s2281_s24 }
 0xeaa   :  { %v2163_v20 = vpop.eup %2162 }
 0xeab   :  { %v1276_v21 = vadd.f32 1.0, %v2163_v20 }
 0xead   :  { %2164 = vrcp.f32 %v1276_v21  ;;  %v1288_v34 = vand.u32 2147483648, %v1276_v21  ;;  %vm1282_vm12 = vweird.f32 %v1276_v21  ;;  %v1286_v35 = vand.u32 2147483647, %v1276_v21 }
 0xeaf   :  { %v1289_v45 = vor.u32 1.1754944e-38, %v1288_v34  ;;  %vm1287_vm14 = vcmp.eq.f32.partialorder %v1286_v35, 8.507059e+37 }
 0xeb3   :  { %v2165_v22 = vpop.eup %2164 }
 0xeb4   :  { %v1278_v23 = vmul.f32 %v2165_v22, %v1276_v21  ;;  %vm1283_vm11 = vweird.f32 %v2165_v22 }
 0xeb5   :  { %vm1284_vm13 = vmor %vm1282_vm12, %vm1283_vm11 }
 0xeb6   :  { %v1279_v24 = vsub.f32 1.0, %v1278_v23 }
 0xeb8   :  { %v1280_v32 = vmul.f32 %v2165_v22, %v1279_v24 }
 0xeba   :  { %v1167_v12 = vpop.permute.xlu1 %1166  ;;  %v1281_v33 = vadd.f32 %v2165_v22, %v1280_v32 }
 0xebb   :  { %v1169_v16 = vmul.f32 %v1167_v12, %v1156_v15 }
 0xebc   :  { %v1285_v41 = vsel %vm1284_vm13, %v2165_v22, %v1281_v33 }
 0xebd   :  { %1171 = vrot.lane.b32.xlu1 %v1169_v16, %s2280_s16  ;;  %v1290_v46 = vsel %vm1287_vm14, %v1289_v45, %v1285_v41 }
 0xebe   :  { %v1298_v60 = vmul.f32 %v1296_v59, %v1290_v46 }
 0xf03   :  { %v1301_v47 = vpop.permute.xlu2 %1300 }
 0xf04   :  { %v1303_v48 = vmul.f32 %v1301_v47, %v1290_v46 }
 0xf06   :  { %1305 = vrot.lane.b32.xlu1 %v1303_v48, %s2280_s16 }
 0xf2f   :  { %v1172_v56 = vpop.permute.xlu1 %1171 }
 0xf30   :  { %v1174_v57 = vadd.f32 %v1172_v56, %v1164_v55 }
 0xf32   :  { %2166 = vtanh.f32 %v1174_v57 }
 0xf38   :  { %v2167_v58 = vpop.eup %2166 }
 0xf39   :  { %1177 = vrot.lane.b32.xlu2 %v2167_v58, %s2281_s24 }
 0xf78   :  { %v1306_v61 = vpop.permute.xlu1 %1305 }
 0xf79   :  { %v2889_v62 = vadd.f32 %v1306_v61, %v1298_v60 }
 0xf7b   :  { %2168 = vtanh.f32 %v2889_v62 }
 0xf81   :  { %v2169_v63 = vpop.eup %2168 }
 0xf82   :  { %1311 = vrot.lane.b32.xlu1 %v2169_v63, %s2281_s24 }
 0xf93   :  { %v1178_v0 = vpop.permute.xlu2 %1177 }
 0xf94   :  { %v1180_v42 = vmul.f32 %v1178_v0, %v1156_v15 }
 0xf96   :  { %1182 = vrot.lane.b32.xlu0 %v1180_v42, %s2280_s16 }
 0xff4   :  { %v1312_v25 = vpop.permute.xlu1 %1311 }
 0xff5   :  { %v1314_v26 = vmul.f32 %v1312_v25, %v1290_v46 }
 0xff7   :  { %1316 = vrot.lane.b32.xlu2 %v1314_v26, %s2280_s16 }
 0xfff   :  { %1187 = vrot.lane.b32.xlu2 %v1174_v57, %s2282_s2 }
0x1008   :  { %v1183_v31 = vpop.permute.xlu0 %1182 }
0x1009   :  { %2010 = vst.msk [vmem:[%s3137_s9 + $0x2] sm:$0x3] %vm64_vm0, %v1183_v31  ;;  %2012 = vmatmul.msk.f32.vlgmr.msrb.gmra.mxu2 %vm283_vm4, %v1183_v31 }
0x100a   :  { %1719 = vmatpush.msrb.mxu2 %v2713_v13 }
0x100c   :  { %1720 = vmatpush.msrb.mxu2 %v2715_v14 }
0x100e   :  { %1721 = vmatpush.msrb.mxu2 %v2722_v18 }
0x1010   :  { %v2017_v36 = vld [vmem:[%s3137_s9 + $0x2] sm:$0x3]  ;;  %1722 = vmatpush.msrb.mxu2 %v2731_v19 }
0x1011   :  { %1328 = vrot.lane.b32.xlu0 %v2017_v36, %s2280_s16 }
0x1012   :  { %1723 = vmatpush.msrb.mxu2 %v2755_v27 }
0x1014   :  { %1724 = vmatpush.msrb.mxu2 %v2759_v28  ;;  %v2073_v28 = vld [vmem:[%s3135_s7] ss:$0 sm:$0xff] }
0x1016   :  { %1725 = vmatpush.msrb.mxu2 %v2763_v29  ;;  %v1454_v29 = vld [vmem:[%s1453_s19] sm:$0x1] }
0x1018   :  { %1726 = vmatpush.msrb.mxu2 %v2767_v30  ;;  %v1458_v30 = vld [vmem:[%s1457_s22] sm:$0x1] }
0x1051   :  { %v1317_v13 = vpop.permute.xlu2 %1316 }
0x1052   :  { %1319 = vst.msk [vmem:[%s3137_s9] sm:$0x3] %vm64_vm0, %v1317_v13 }
0x1053   :  { %1325 = vst.msk [vmem:[#allocation2] sm:$0x3] %vm64_vm0, %v1317_v13 }
0x1059   :  { %v1188_v14 = vpop.permute.xlu2 %1187  ;;  %v1460_v18 = vld [vmem:[%s3137_s9] sm:$0x3] }
0x105a   :  { %2011 = vst.msk [vmem:[%s3138_s10 + $0x2] sm:$0x3] %vm64_vm0, %v1188_v14  ;;  %1462 = vrot.lane.b32.xlu1 %v1460_v18, %s2280_s16 }
0x1061   :  { %v2021_v19 = vld [vmem:[%s3138_s10 + $0x2] sm:$0x3] }
0x1062   :  { %1321 = vrot.lane.b32.xlu1 %v2889_v62, %s2282_s2  ;;  %1390 = vrot.lane.b32.xlu2 %v2021_v19, %s2280_s16 }
0x1083   :  { %v1329_v27 = vpop.permute.xlu0 %1328 }
0x1084   :  { %1331 = vst.msk [vmem:[#allocation2] sm:$0x3] %vm85_vm2, %v1329_v27 }
0x108b   :  { %v1332_v37 = vld [vmem:[#allocation2] sm:$0x3] }
0x108c   :  { %v1218_v38 = vpop.f32.mrf.mxu2  ;;  %2019 = vmatmul.msk.f32.vlgmr.msra.gmra.mxu2 %vm100_vm3, %v1332_v37  ;;  %1455 = vst.msk [vmem:[#allocation2] sm:$0x1] %vm74_vm1, %v1454_v29 }
0x108d   :  { %v1219_v39 = vadd.f32 %v2073_v28, %v1218_v38  ;;  %1459 = vst.msk [vmem:[#allocation2 + $0x1] sm:$0x1] %vm74_vm1, %v1458_v30  ;;  %v1683_v38 = vld [vmem:[%s1682_s6] sm:$0x1] }
0x108f   :  { %1222 = vst [vmem:[#allocation8 + $0x8] sm:$0x3] %v1219_v39  ;;  %v1687_v39 = vld [vmem:[%s1686_s26] sm:$0x1] }
0x10bc   :  { %v1391_v63 = vpop.permute.xlu2 %1390 }
0x10cc   :  { %v1463_v40 = vpop.permute.xlu1 %1462 }
0x10cd   :  { %1465 = vst.msk [vmem:[#allocation2] sm:$0x3] %vm85_vm2, %v1463_v40 }
0x10d4   :  { %v1322_v5 = vpop.permute.xlu1 %1321  ;;  %v1466_v51 = vld [vmem:[#allocation2] sm:$0x3] }
0x10d5   :  { %1324 = vst.msk [vmem:[%s3138_s10] sm:$0x3] %vm64_vm0, %v1322_v5  ;;  %2027 = vmatmul.msk.f32.vlgmr.msra.gmra.mxu1 %vm100_vm3, %v1466_v51  ;;  %v2076_v51 = vld [vmem:[%s3135_s7] ss:$0 sm:$0xff] }
0x10dc   :  { %v1522_v52 = vld [vmem:[%s3138_s10] sm:$0x3] }
0x10dd   :  { %1524 = vrot.lane.b32.xlu2 %v1522_v52, %s2280_s16 }
0x110f   :  { %v1365_v1 = vpop.f32.mrf.mxu2 }
0x1110   :  { %v1366_v2 = vadd.f32 %v2074_v53, %v1365_v1 }
0x1112   :  { %2170 = vtanh.f32 %v1366_v2  ;;  %v2020_v11 = vmul.f32 -1.442695, %v1366_v2 }
0x1118   :  { %v2171_v3 = vpop.eup %2170 }
0x1119   :  { %1395 = vrot.lane.b32.xlu0 %v2171_v3, %s2281_s24 }
0x1137   :  { %v1525_v49 = vpop.permute.xlu2 %1524 }
0x1152   :  { %v1499_v8 = vpop.f32.mrf.mxu1 }
0x1153   :  { %v1500_v9 = vadd.f32 %v2075_v4, %v1499_v8  ;;  %v2077_v8 = vld [vmem:[%s3133_s5 + $0x1] ss:$0 sm:$0xff] }
0x1155   :  { %2172 = vtanh.f32 %v1500_v9  ;;  %v2028_v35 = vmul.f32 -1.442695, %v1500_v9 }
0x1156   :  { %2174 = vpow2.f32 %v2020_v11 }
0x115b   :  { %v2173_v10 = vpop.eup %2172 }
0x115c   :  { %1529 = vrot.lane.b32.xlu1 %v2173_v10, %s2281_s24  ;;  %v2175_v6 = vpop.eup %2174 }
0x115d   :  { %v1371_v7 = vadd.f32 1.0, %v2175_v6 }
0x115f   :  { %2176 = vrcp.f32 %v1371_v7  ;;  %v1383_v21 = vand.u32 2147483648, %v1371_v7  ;;  %vm1377_vm5 = vweird.f32 %v1371_v7  ;;  %v1381_v22 = vand.u32 2147483647, %v1371_v7 }
0x1160   :  { %2178 = vpow2.f32 %v2028_v35 }
0x1161   :  { %v1384_v24 = vor.u32 1.1754944e-38, %v1383_v21  ;;  %vm1382_vm7 = vcmp.eq.f32.partialorder %v1381_v22, 8.507059e+37 }
0x1165   :  { %v2177_v12 = vpop.eup %2176 }
0x1166   :  { %v1373_v15 = vmul.f32 %v2177_v12, %v1371_v7  ;;  %vm1378_vm15 = vweird.f32 %v2177_v12  ;;  %v2179_v41 = vpop.eup %2178 }
0x1167   :  { %vm1379_vm6 = vmor %vm1377_vm5, %vm1378_vm15  ;;  %v1505_v45 = vadd.f32 1.0, %v2179_v41  ;;  %v2078_v41 = vld [vmem:[%s3133_s5] ss:$0 sm:$0xff] }
0x1168   :  { %v1374_v16 = vsub.f32 1.0, %v1373_v15 }
0x1169   :  { %2180 = vrcp.f32 %v1505_v45  ;;  %v1517_v56 = vand.u32 2147483648, %v1505_v45  ;;  %vm1511_vm9 = vweird.f32 %v1505_v45  ;;  %v1515_v57 = vand.u32 2147483647, %v1505_v45 }
0x116a   :  { %v1375_v17 = vmul.f32 %v2177_v12, %v1374_v16 }
0x116b   :  { %v1518_v59 = vor.u32 1.1754944e-38, %v1517_v56  ;;  %vm1516_vm11 = vcmp.eq.f32.partialorder %v1515_v57, 8.507059e+37 }
0x116c   :  { %v1376_v20 = vadd.f32 %v2177_v12, %v1375_v17 }
0x116e   :  { %v1380_v23 = vsel %vm1379_vm6, %v2177_v12, %v1376_v20 }
0x116f   :  { %v1385_v33 = vsel %vm1382_vm7, %v1384_v24, %v1380_v23  ;;  %v2181_v46 = vpop.eup %2180 }
0x1170   :  { %v1507_v47 = vmul.f32 %v2181_v46, %v1505_v45  ;;  %vm1512_vm8 = vweird.f32 %v2181_v46  ;;  %v1393_v0 = vmul.f32 %v1391_v63, %v1385_v33 }
0x1171   :  { %vm1513_vm10 = vmor %vm1511_vm9, %vm1512_vm8 }
0x1172   :  { %v1508_v48 = vsub.f32 1.0, %v1507_v47 }
0x1174   :  { %v1509_v54 = vmul.f32 %v2181_v46, %v1508_v48 }
0x1176   :  { %v1510_v55 = vadd.f32 %v2181_v46, %v1509_v54 }
0x1178   :  { %v1514_v58 = vsel %vm1513_vm10, %v2181_v46, %v1510_v55 }
0x1179   :  { %v1519_v61 = vsel %vm1516_vm11, %v1518_v59, %v1514_v58 }
0x117a   :  { %v1527_v50 = vmul.f32 %v1525_v49, %v1519_v61 }
0x118b   :  { %v1396_v32 = vpop.permute.xlu0 %1395 }
0x118c   :  { %v1398_v34 = vmul.f32 %v1396_v32, %v1385_v33 }
0x118e   :  { %1400 = vrot.lane.b32.xlu0 %v1398_v34, %s2280_s16 }
0x11ce   :  { %v1530_v60 = vpop.permute.xlu1 %1529 }
0x11cf   :  { %v1532_v62 = vmul.f32 %v1530_v60, %v1519_v61 }
0x11d1   :  { %1534 = vrot.lane.b32.xlu0 %v1532_v62, %s2280_s16 }
0x1200   :  { %v1401_v42 = vpop.permute.xlu0 %1400 }
0x1201   :  { %v1403_v43 = vadd.f32 %v1401_v42, %v1393_v0 }
0x1203   :  { %2182 = vtanh.f32 %v1403_v43 }
0x1209   :  { %v2183_v44 = vpop.eup %2182 }
0x120a   :  { %1406 = vrot.lane.b32.xlu1 %v2183_v44, %s2281_s24 }
0x1243   :  { %v1535_v25 = vpop.permute.xlu0 %1534 }
0x1244   :  { %v1537_v26 = vadd.f32 %v1535_v25, %v1527_v50 }
0x1246   :  { %2184 = vtanh.f32 %v1537_v26 }
0x124c   :  { %v2185_v31 = vpop.eup %2184 }
0x124d   :  { %1540 = vrot.lane.b32.xlu0 %v2185_v31, %s2281_s24 }
0x127c   :  { %v1407_v36 = vpop.permute.xlu1 %1406 }
0x127d   :  { %v1409_v13 = vmul.f32 %v1407_v36, %v1385_v33 }
0x127f   :  { %1411 = vrot.lane.b32.xlu2 %v1409_v13, %s2280_s16 }
0x12bf   :  { %v1541_v14 = vpop.permute.xlu0 %1540 }
0x12c0   :  { %v1543_v18 = vmul.f32 %v1541_v14, %v1519_v61 }
0x12c2   :  { %1545 = vrot.lane.b32.xlu1 %v1543_v18, %s2280_s16 }
0x12ca   :  { %1416 = vrot.lane.b32.xlu1 %v1403_v43, %s2282_s2 }
0x12d9   :  { %v1412_v19 = vpop.permute.xlu2 %1411 }
0x12da   :  { %2022 = vst.msk [vmem:[%s3137_s9 + $0x2] sm:$0x3] %vm64_vm0, %v1412_v19  ;;  %2024 = vmatmul.msk.f32.vlgmr.msra.gmra.mxu3 %vm283_vm4, %v1412_v19 }
0x12e1   :  { %v2029_v27 = vld [vmem:[%s3137_s9 + $0x2] sm:$0x3] }
0x12e2   :  { %1557 = vrot.lane.b32.xlu2 %v2029_v27, %s2280_s16 }
0x1334   :  { %v1546_v28 = vpop.permute.xlu1 %1545 }
0x1335   :  { %1548 = vst.msk [vmem:[%s3137_s9] sm:$0x3] %vm64_vm0, %v1546_v28 }
0x1336   :  { %1554 = vst.msk [vmem:[#allocation2] sm:$0x3] %vm64_vm0, %v1546_v28 }
0x133c   :  { %v1558_v29 = vpop.permute.xlu2 %1557  ;;  %v1417_v30 = vpop.permute.xlu1 %1416  ;;  %v1689_v37 = vld [vmem:[%s3137_s9] sm:$0x3] }
0x133d   :  { %1560 = vst.msk [vmem:[#allocation2] sm:$0x3] %vm85_vm2, %v1558_v29  ;;  %1691 = vrot.lane.b32.xlu0 %v1689_v37, %s2280_s16 }
0x133e   :  { %2023 = vst.msk [vmem:[%s3138_s10 + $0x2] sm:$0x3] %vm64_vm0, %v1417_v30 }
0x1344   :  { %v1561_v40 = vld [vmem:[#allocation2] sm:$0x3] }
0x1345   :  { %2031 = vmatmul.msk.f32.vlgmr.msrb.gmra.mxu3 %vm100_vm3, %v1561_v40  ;;  %1684 = vst.msk [vmem:[#allocation2] sm:$0x1] %vm74_vm1, %v1683_v38  ;;  %1550 = vrot.lane.b32.xlu0 %v1537_v26, %s2282_s2  ;;  %v2033_v5 = vld [vmem:[%s3138_s10 + $0x2] sm:$0x3] }
0x1346   :  { %1688 = vst.msk [vmem:[#allocation2 + $0x1] sm:$0x1] %vm74_vm1, %v1687_v39  ;;  %1619 = vrot.lane.b32.xlu1 %v2033_v5, %s2280_s16 }
0x135d   :  { %v1447_v52 = vpop.f32.mrf.mxu3 }
0x135e   :  { %v1448_v53 = vadd.f32 %v2076_v51, %v1447_v52  ;;  %v2079_v52 = vld [vmem:[%s3135_s7] ss:$0 sm:$0xff] }
0x1360   :  { %1451 = vst [vmem:[#allocation8 + $0xa] sm:$0x3] %v1448_v53 }
0x13af   :  { %v1692_v1 = vpop.permute.xlu0 %1691 }
0x13b0   :  { %1694 = vst.msk [vmem:[#allocation2] sm:$0x3] %vm85_vm2, %v1692_v1 }
0x13b7   :  { %v1551_v2 = vpop.permute.xlu0 %1550  ;;  %v1695_v3 = vld [vmem:[#allocation2] sm:$0x3] }
0x13b8   :  { %1553 = vst.msk [vmem:[%s3138_s10] sm:$0x3] %vm64_vm0, %v1551_v2  ;;  %2039 = vmatmul.msk.f32.vlgmr.msrb.gmra.mxu2 %vm100_vm3, %v1695_v3  ;;  %v1620_v48 = vpop.permute.xlu1 %1619  ;;  %v2080_v3 = vld [vmem:[%s3133_s5 + $0x1] ss:$0 sm:$0xff] }
0x13bf   :  { %v1751_v4 = vld [vmem:[%s3138_s10] sm:$0x3] }
0x13c0   :  { %1753 = vrot.lane.b32.xlu1 %v1751_v4, %s2280_s16 }
0x13c8   :  { %v1594_v9 = vpop.f32.mrf.mxu3 }
0x13c9   :  { %v1595_v10 = vadd.f32 %v2077_v8, %v1594_v9 }
0x13cb   :  { %2186 = vtanh.f32 %v1595_v10  ;;  %v2032_v6 = vmul.f32 -1.442695, %v1595_v10 }
0x13cd   :  { %2188 = vpow2.f32 %v2032_v6 }
0x13d1   :  { %v2187_v11 = vpop.eup %2186 }
0x13d2   :  { %1624 = vrot.lane.b32.xlu2 %v2187_v11, %s2281_s24 }
0x13d3   :  { %v2189_v7 = vpop.eup %2188 }
0x13d4   :  { %v1600_v12 = vadd.f32 1.0, %v2189_v7 }
0x13d6   :  { %2190 = vrcp.f32 %v1600_v12  ;;  %v1612_v22 = vand.u32 2147483648, %v1600_v12  ;;  %vm1606_vm12 = vweird.f32 %v1600_v12  ;;  %v1610_v23 = vand.u32 2147483647, %v1600_v12 }
0x13d8   :  { %v1613_v32 = vor.u32 1.1754944e-38, %v1612_v22  ;;  %vm1611_vm14 = vcmp.eq.f32.partialorder %v1610_v23, 8.507059e+37 }
0x13dc   :  { %v2191_v15 = vpop.eup %2190 }
0x13dd   :  { %v1602_v16 = vmul.f32 %v2191_v15, %v1600_v12  ;;  %vm1607_vm1 = vweird.f32 %v2191_v15 }
0x13de   :  { %vm1608_vm13 = vmor %vm1606_vm12, %vm1607_vm1 }
0x13df   :  { %v1603_v17 = vsub.f32 1.0, %v1602_v16 }
0x13e1   :  { %v1604_v20 = vmul.f32 %v2191_v15, %v1603_v17 }
0x13e3   :  { %v1605_v21 = vadd.f32 %v2191_v15, %v1604_v20 }
0x13e5   :  { %v1609_v24 = vsel %vm1608_vm13, %v2191_v15, %v1605_v21 }
0x13e6   :  { %v1614_v34 = vsel %vm1611_vm14, %v1613_v32, %v1609_v24 }
0x13e7   :  { %v1622_v54 = vmul.f32 %v1620_v48, %v1614_v34 }
0x142c   :  { %v1625_v33 = vpop.permute.xlu2 %1624 }
0x142d   :  { %v1627_v35 = vmul.f32 %v1625_v33, %v1614_v34 }
0x142f   :  { %1629 = vrot.lane.b32.xlu2 %v1627_v35, %s2280_s16 }
0x1432   :  { %v1754_v14 = vpop.permute.xlu1 %1753 }
0x143b   :  { %v1728_v45 = vpop.f32.mrf.mxu2 }
0x143c   :  { %v1729_v46 = vadd.f32 %v2078_v41, %v1728_v45 }
0x143e   :  { %2192 = vtanh.f32 %v1729_v46  ;;  %v2040_v56 = vmul.f32 -1.442695, %v1729_v46 }
0x1444   :  { %v2193_v47 = vpop.eup %2192 }
0x1445   :  { %1758 = vrot.lane.b32.xlu0 %v2193_v47, %s2281_s24 }
0x1489   :  { %v1630_v55 = vpop.permute.xlu2 %1629 }
0x148a   :  { %v1632_v57 = vadd.f32 %v1630_v55, %v1622_v54 }
0x148c   :  { %2194 = vtanh.f32 %v1632_v57 }
0x148d   :  { %2196 = vpow2.f32 %v2040_v56 }
0x1492   :  { %v2195_v58 = vpop.eup %2194 }
0x1493   :  { %1635 = vrot.lane.b32.xlu0 %v2195_v58, %s2281_s24  ;;  %v2197_v59 = vpop.eup %2196 }
0x1494   :  { %v1734_v60 = vadd.f32 1.0, %v2197_v59 }
0x1496   :  { %2198 = vrcp.f32 %v1734_v60  ;;  %v1746_v43 = vand.u32 2147483648, %v1734_v60  ;;  %vm1740_vm5 = vweird.f32 %v1734_v60  ;;  %v1744_v44 = vand.u32 2147483647, %v1734_v60 }
0x1498   :  { %v1747_v50 = vor.u32 1.1754944e-38, %v1746_v43  ;;  %vm1745_vm7 = vcmp.eq.f32.partialorder %v1744_v44, 8.507059e+37 }
0x149c   :  { %v2199_v61 = vpop.eup %2198 }
0x149d   :  { %v1736_v62 = vmul.f32 %v2199_v61, %v1734_v60  ;;  %vm1741_vm15 = vweird.f32 %v2199_v61 }
0x149e   :  { %vm1742_vm6 = vmor %vm1740_vm5, %vm1741_vm15 }
0x149f   :  { %v1737_v63 = vsub.f32 1.0, %v1736_v62 }
0x14a1   :  { %v1738_v0 = vmul.f32 %v2199_v61, %v1737_v63 }
0x14a3   :  { %v1739_v42 = vadd.f32 %v2199_v61, %v1738_v0 }
0x14a5   :  { %v1743_v49 = vsel %vm1742_vm6, %v2199_v61, %v1739_v42 }
0x14a6   :  { %v1748_v25 = vsel %vm1745_vm7, %v1747_v50, %v1743_v49 }
0x14a7   :  { %v1756_v18 = vmul.f32 %v1754_v14, %v1748_v25 }
0x14b7   :  { %v1759_v26 = vpop.permute.xlu0 %1758 }
0x14b8   :  { %v1761_v31 = vmul.f32 %v1759_v26, %v1748_v25 }
0x14ba   :  { %1763 = vrot.lane.b32.xlu2 %v1761_v31, %s2280_s16 }
0x1505   :  { %v1636_v36 = vpop.permute.xlu0 %1635 }
0x1506   :  { %v1638_v13 = vmul.f32 %v1636_v36, %v1614_v34 }
0x1508   :  { %1640 = vrot.lane.b32.xlu1 %v1638_v13, %s2280_s16 }
0x1514   :  { %v1764_v19 = vpop.permute.xlu2 %1763 }
0x1515   :  { %v1766_v27 = vadd.f32 %v1764_v19, %v1756_v18 }
0x1517   :  { %2200 = vtanh.f32 %v1766_v27 }
0x151d   :  { %v2201_v28 = vpop.eup %2200 }
0x151e   :  { %1769 = vrot.lane.b32.xlu2 %v2201_v28, %s2281_s24 }
0x1526   :  { %1645 = vrot.lane.b32.xlu2 %v1632_v57, %s2282_s2  ;;  %v2081_v57 = vld [vmem:[%s3135_s7] ss:$0 sm:$0xff] }
0x1578   :  { %v1770_v29 = vpop.permute.xlu2 %1769 }
0x1579   :  { %v1772_v30 = vmul.f32 %v1770_v29, %v1748_v25 }
0x157a   :  { %v1641_v37 = vpop.permute.xlu1 %1640 }
0x157b   :  { %2034 = vst.msk [vmem:[%s3137_s9 + $0x2] sm:$0x3] %vm64_vm0, %v1641_v37  ;;  %2036 = vmatmul.msk.f32.vlgmr.msra.gmra.mxu0 %vm283_vm4, %v1641_v37  ;;  %1774 = vrot.lane.b32.xlu0 %v1772_v30, %s2280_s16 }
0x1580   :  { %v1646_v38 = vpop.permute.xlu2 %1645 }
0x1581   :  { %2035 = vst.msk [vmem:[%s3138_s10 + $0x2] sm:$0x3] %vm64_vm0, %v1646_v38 }
0x1582   :  { %v2041_v39 = vld [vmem:[%s3137_s9 + $0x2] sm:$0x3] }
0x1583   :  { %1786 = vrot.lane.b32.xlu1 %v2041_v39, %s2280_s16 }
0x1588   :  { %v2045_v40 = vld [vmem:[%s3138_s10 + $0x2] sm:$0x3] }
0x158b   :  { %1848 = vrot.lane.b32.xlu1 %v2045_v40, %s2280_s16 }
0x15ed   :  { %v1775_v5 = vpop.permute.xlu0 %1774 }
0x15ee   :  { %1777 = vst.msk [vmem:[%s3137_s9] sm:$0x3] %vm64_vm0, %v1775_v5 }
0x15ef   :  { %1783 = vst.msk [vmem:[#allocation2] sm:$0x3] %vm64_vm0, %v1775_v5 }
0x15f5   :  { %v1787_v51 = vpop.permute.xlu1 %1786 }
0x15f6   :  { %1789 = vst.msk [vmem:[#allocation2] sm:$0x3] %vm85_vm2, %v1787_v51 }
0x15f8   :  { %v1676_v53 = vpop.f32.mrf.mxu0 }
0x15f9   :  { %v1677_v1 = vadd.f32 %v2079_v52, %v1676_v53 }
0x15fb   :  { %1680 = vst [vmem:[#allocation8 + $0xc] sm:$0x3] %v1677_v1 }
0x15fd   :  { %v1790_v2 = vld [vmem:[#allocation2] sm:$0x3]  ;;  %v1849_v34 = vpop.permute.xlu1 %1848 }
0x15fe   :  { %2043 = vmatmul.msk.f32.vlgmr.msrb.gmra.mxu0 %vm100_vm3, %v1790_v2 }
0x167b   :  { %v1823_v4 = vpop.f32.mrf.mxu0 }
0x167c   :  { %v1824_v8 = vadd.f32 %v2080_v3, %v1823_v4 }
0x167e   :  { %2202 = vtanh.f32 %v1824_v8  ;;  %v2044_v10 = vmul.f32 -1.442695, %v1824_v8 }
0x1680   :  { %2204 = vpow2.f32 %v2044_v10 }
0x1684   :  { %v2203_v9 = vpop.eup %2202 }
0x1685   :  { %1853 = vrot.lane.b32.xlu0 %v2203_v9, %s2281_s24 }
0x1686   :  { %v2205_v11 = vpop.eup %2204 }
0x1687   :  { %v1829_v6 = vadd.f32 1.0, %v2205_v11 }
0x1689   :  { %2206 = vrcp.f32 %v1829_v6  ;;  %v1841_v20 = vand.u32 2147483648, %v1829_v6  ;;  %vm1835_vm3 = vweird.f32 %v1829_v6  ;;  %v1839_v21 = vand.u32 2147483647, %v1829_v6 }
0x168b   :  { %v1842_v23 = vor.u32 1.1754944e-38, %v1841_v20  ;;  %vm1840_vm9 = vcmp.eq.f32.partialorder %v1839_v21, 8.507059e+37 }
0x168f   :  { %v2207_v7 = vpop.eup %2206 }
0x1690   :  { %v1831_v12 = vmul.f32 %v2207_v7, %v1829_v6  ;;  %vm1836_vm2 = vweird.f32 %v2207_v7 }
0x1691   :  { %vm1837_vm8 = vmor %vm1835_vm3, %vm1836_vm2 }
0x1692   :  { %v1832_v15 = vsub.f32 1.0, %v1831_v12 }
0x1694   :  { %v1833_v16 = vmul.f32 %v2207_v7, %v1832_v15 }
0x1696   :  { %v1834_v17 = vadd.f32 %v2207_v7, %v1833_v16 }
0x1698   :  { %v1838_v22 = vsel %vm1837_vm8, %v2207_v7, %v1834_v17 }
0x1699   :  { %v1843_v32 = vsel %vm1840_vm9, %v1842_v23, %v1838_v22 }
0x169a   :  { %v1851_v35 = vmul.f32 %v1849_v34, %v1843_v32 }
0x16f7   :  { %v1854_v24 = vpop.permute.xlu0 %1853 }
0x16f8   :  { %v1856_v33 = vmul.f32 %v1854_v24, %v1843_v32 }
0x16fa   :  { %1858 = vrot.lane.b32.xlu2 %v1856_v33, %s2280_s16 }
0x1702   :  { %1779 = vrot.lane.b32.xlu2 %v1766_v27, %s2282_s2 }
0x1754   :  { %v1859_v41 = vpop.permute.xlu2 %1858 }
0x1755   :  { %v1861_v45 = vadd.f32 %v1859_v41, %v1851_v35 }
0x1757   :  { %2208 = vtanh.f32 %v1861_v45 }
0x175c   :  { %v1780_v46 = vpop.permute.xlu2 %1779 }
0x175d   :  { %v2209_v47 = vpop.eup %2208  ;;  %1782 = vst.msk [vmem:[%s3138_s10] sm:$0x3] %vm64_vm0, %v1780_v46 }
0x175e   :  { %1864 = vrot.lane.b32.xlu0 %v2209_v47, %s2281_s24 }
0x1766   :  { %1874 = vrot.lane.b32.xlu0 %v1861_v45, %s2282_s2 }
0x17d0   :  { %v1865_v48 = vpop.permute.xlu0 %1864 }
0x17d1   :  { %v1867_v54 = vmul.f32 %v1865_v48, %v1843_v32 }
0x17d3   :  { %1869 = vrot.lane.b32.xlu1 %v1867_v54, %s2280_s16 }
0x17d8   :  { %v1875_v55 = vpop.permute.xlu0 %1874 }
0x17d9   :  { %2047 = vst.msk [vmem:[%s3138_s10 + $0x2] sm:$0x3] %vm64_vm0, %v1875_v55  ;;  %s2284_s10 = smov 2  }
0x1845   :  { %v1870_v56 = vpop.permute.xlu1 %1869 }
0x1846   :  { %2046 = vst.msk [vmem:[%s3137_s9 + $0x2] sm:$0x3] %vm64_vm0, %v1870_v56  ;;  %2048 = vmatmul.msk.f32.vlgmr.msrb.gmra.mxu1 %vm283_vm4, %v1870_v56 }
0x18c3   :  { %v1905_v58 = vpop.f32.mrf.mxu1 }
0x18c4   :  { %v1906_v59 = vadd.f32 %v2081_v57, %v1905_v58 }
0x18c6   :  { %1909 = vst [vmem:[#allocation8 + $0xe] sm:$0x3] %v1906_v59 }
0x18c7   :  { %1922 = dma.vmem_to_hbm [thread:$0]  %s1915_s15, 256, %s1917_s18, [#allocation5], %s2280_s16, %s2280_s16, %s2284_s10  }
0x18c8   :  { %2274 = dma.done.wait [#allocation5], 256  }
0x18c9   :  { %2275 = vsyncadd [#allocation5], 4294967040 }
0x18ca   :  { %1935 = vsyncpa [#allocation4], 1 }
0x18cb   :  { %1936 = vsyncpa [#allocation5], 1 }
0x18cc   :  { %1937 = vsyncpa [#allocation6], 1 }

</bundles_post_ra>
